<compile_context>
chip_gen: v7x
topology: tpu7x:2x2x1
jax: 0.10.0
libtpu: 0.0.40
codegen_flags: <defaults>
</compile_context>

<pallas_src>
import functools

import numpy as np
import jax
import jax.numpy as jnp
from jax.experimental import pallas as pl
from jax.experimental.pallas import tpu as pltpu


def _round_up(x, m):
    return -(-x // m) * m


# ---------------------------------------------------------------------------
# Flattened channel-major layouts (all sizes are compile-time constants).
#   "padded"  : (C, (H+2)*(W+2) + 2)  -- 1px zero border, row stride W+2,
#               +2 trailing zero lanes so the last 3x3 tap of the last output
#               row stays in range.
#   "convout" : (C, H*(W+2))          -- raw conv result; columns W, W+1 of
#               every row are junk and are dropped by the next selection
#               matrix (their rows are all-zero), so junk never propagates.
# Pool / upsample / re-pad are constant 0/1 selection matmuls built on host.
# ---------------------------------------------------------------------------
def _padded_len(h, w):
    return (h + 2) * (w + 2) + 2


def _conv_out_len(h, w):
    return h * (w + 2)


def _tap_offsets(w):
    wp = w + 2
    return tuple(dh * wp + dw for dh in range(3) for dw in range(3))


def _pool_select(h, w):
    """(Lm, Lpad(h/2,w/2)) 0/1: maxed conv-output-flat(h,w) -> padded-flat(h/2,w/2)."""
    wp = w + 2
    lm = h * wp - (wp + 1)
    h2, w2 = h // 2, w // 2
    wp2 = w2 + 2
    s = np.zeros((lm, _padded_len(h2, w2)), np.float32)
    for r2 in range(h2):
        for c2 in range(w2):
            s[(2 * r2) * wp + 2 * c2, (r2 + 1) * wp2 + (c2 + 1)] = 1.0
    return s


def _upsample_select(h, w, src_is_padded):
    """(Lsrc, Lpad(2h,2w)) 0/1: nearest-2x upsample into the padded layout."""
    wps = w + 2
    hb, wb = 2 * h, 2 * w
    wpb = wb + 2
    lsrc = _padded_len(h, w) if src_is_padded else _conv_out_len(h, w)
    u = np.zeros((lsrc, _padded_len(hb, wb)), np.float32)
    for r in range(hb):
        for c in range(wb):
            rs, cs = r // 2, c // 2
            p = (rs + 1) * wps + (cs + 1) if src_is_padded else rs * wps + cs
            u[p, (r + 1) * wpb + (c + 1)] = 1.0
    return u


def _repad_select(h, w):
    """(Lout, Lpad) 0/1: conv-output-flat(h,w) -> padded-flat(h,w) (drops junk)."""
    wp = w + 2
    m = np.zeros((_conv_out_len(h, w), _padded_len(h, w)), np.float32)
    for r in range(h):
        for c in range(w):
            m[r * wp + c, (r + 1) * wp + (c + 1)] = 1.0
    return m


def _extract_select(h, w):
    """(Lout, h*w) 0/1: conv-output-flat(h,w) -> dense row-major h*w."""
    wp = w + 2
    e = np.zeros((_conv_out_len(h, w), h * w), np.float32)
    for r in range(h):
        for c in range(w):
            e[r * wp + c, r * w + c] = 1.0
    return e


# ---------------------------------------------------------------------------
# The fused whole-net Pallas kernel (one grid step per batch element).
# ---------------------------------------------------------------------------
def _fused_net_kernel(*refs, plan, n_w, n_s):
    x_ref = refs[0]
    w_refs = refs[1:1 + n_w]
    b_refs = refs[1 + n_w:1 + 2 * n_w]
    s_refs = refs[1 + 2 * n_w:1 + 2 * n_w + n_s]
    o_ref = refs[-1]

    cur = x_ref[...]                                       # bf16, padded layout
    for op in plan:
        kind = op[0]
        if kind == "conv":
            _, li, h, w, relu = op
            wp = w + 2
            l_out = h * wp
            offs = _tap_offsets(w)
            xb = cur.astype(jnp.bfloat16)
            wv = w_refs[li][...]                           # (Cout_p, 9*Cin_p) bf16
            bv = b_refs[li][...]                           # (Cout_p, 1) f32
            # no runtime VMEM bounds check: tie the layout length to the taps
            assert xb.shape[-1] >= offs[-1] + l_out
            assert 9 * xb.shape[0] == wv.shape[1]
            # single K = 9*Cin_p MXU matmul (merged taps), f32 accumulate
            rhs = jnp.concatenate([xb[:, o:o + l_out] for o in offs], axis=0)
            y = jnp.dot(wv, rhs, preferred_element_type=jnp.float32)
            y = y + bv                                     # folded-BN bias
            if relu:
                y = jnp.maximum(y, 0.0)
            cur = y                                        # f32, convout layout
        elif kind == "pool":                               # 2x2 max pool
            _, si, h, w = op
            wp = w + 2
            lm = h * wp - (wp + 1)
            m = jnp.maximum(
                jnp.maximum(cur[:, 0:lm], cur[:, 1:1 + lm]),
                jnp.maximum(cur[:, wp:wp + lm], cur[:, wp + 1:wp + 1 + lm]))
            cur = jnp.dot(m.astype(jnp.bfloat16), s_refs[si][...],
                          preferred_element_type=jnp.float32)
        else:                                              # "sel": up / repad / extract
            _, si, cast_bf16 = op
            lhs = cur.astype(jnp.bfloat16) if cast_bf16 else cur
            cur = jnp.dot(lhs, s_refs[si][...],
                          preferred_element_type=jnp.float32)
    o_ref[...] = cur.astype(o_ref.dtype)


# ---------------------------------------------------------------------------
# Parameter construction (deterministic, synthetic — no checkpoint load).
# ---------------------------------------------------------------------------
def init_params(key, in_channels, enc_sizes, dec_sizes, final_conv_sizes,
                out_channels, bn_eps):
    keys = iter(jax.random.split(key, 64))

    def conv(cin, cout):  # kaiming-like init (PoolNet.init_weights intent)
        return (jax.random.normal(next(keys), (3, 3, cin, cout), jnp.float32)
                * jnp.sqrt(2.0 / (9 * cin)))

    def block(cin, cout):  # conv (bias=False) + eval BN folded to (scale, bias)
        return {"w": conv(cin, cout),
                "scale": jnp.full((cout,), 1.0 / jnp.sqrt(1.0 + bn_eps), jnp.float32),
                "bias": jnp.zeros((cout,), jnp.float32)}

    enc, c = [], in_channels
    for s in enc_sizes:
        enc.append(block(c, s))
        c = s

    decoders = []
    for _ in range(2):  # decoders[0] = CoC, decoders[1] = depth
        dec, c = [], enc_sizes[-1]
        for s in dec_sizes:
            dec.append(block(c, s))
            c = s
        fin = []
        for s in final_conv_sizes:
            fin.append(block(c, s))
            c = s
        final_out = {"w": conv(c, out_channels),            # plain conv, no BN
                     "scale": jnp.ones((out_channels,), jnp.float32),
                     "bias": jnp.zeros((out_channels,), jnp.float32)}
        decoders.append({"dec": dec, "final": fin, "final_out": final_out})

    return {"enc": enc, "decoders": decoders}


# ---------------------------------------------------------------------------
# One-time prep (outside jit): fuse the two decoders, fold BN, pad channels,
# flatten weights to (Cout_p, 9*Cin_p), build selection matrices + layer plan.
# ---------------------------------------------------------------------------
def build_fused_net(params, *, in_channels, enc_pool_layers, dec_pool_layers,
                    last_act, height, width):
    def fuse(a, b, share_input):
        wa = np.asarray(a["w"], np.float32)
        wb = np.asarray(b["w"], np.float32)
        if share_input:                       # same input tensor: concat Cout
            w = np.concatenate([wa, wb], axis=3)
        else:                                 # independent paths: block-diagonal
            kh, kw, ca_in, ca_out = wa.shape
            cb_in, cb_out = wb.shape[2], wb.shape[3]
            w = np.zeros((kh, kw, ca_in + cb_in, ca_out + cb_out), np.float32)
            w[:, :, :ca_in, :ca_out] = wa
            w[:, :, ca_in:, ca_out:] = wb
        return {"w": w,
                "scale": np.concatenate([np.asarray(a["scale"], np.float32),
                                         np.asarray(b["scale"], np.float32)]),
                "bias": np.concatenate([np.asarray(a["bias"], np.float32),
                                        np.asarray(b["bias"], np.float32)])}

    da, db = params["decoders"]
    layers = []
    for blk in params["enc"]:
        layers.append({"w": np.asarray(blk["w"], np.float32),
                       "scale": np.asarray(blk["scale"], np.float32),
                       "bias": np.asarray(blk["bias"], np.float32),
                       "relu": True})
    for i, (a, b) in enumerate(zip(da["dec"], db["dec"])):
        d = fuse(a, b, share_input=(i == 0)); d["relu"] = True; layers.append(d)
    for a, b in zip(da["final"], db["final"]):
        d = fuse(a, b, False); d["relu"] = True; layers.append(d)
    d = fuse(da["final_out"], db["final_out"], False)
    d["relu"] = bool(last_act)
    layers.append(d)

    # event sequence: convs interleaved with pool (encoder) / upsample (decoder)
    events, li = [], 0
    for do_pool in enc_pool_layers:
        events.append(("conv", li)); li += 1
        if do_pool:
            events.append(("pool", None))
    for do_up in dec_pool_layers:
        if do_up:
            events.append(("up", None))
        events.append(("conv", li)); li += 1
    for _ in range(len(da["final"]) + 1):
        events.append(("conv", li)); li += 1
    assert li == len(layers)

    # channel padding chain: multiples of 16 (bf16 sublane packing), final
    # layer keeps its true Cout (= 2*out_channels).
    cins = [l["w"].shape[2] for l in layers]
    couts = [l["w"].shape[3] for l in layers]
    for i in range(1, len(layers)):
        assert cins[i] == couts[i - 1], "channel chain mismatch"
    cin_pad = [_round_up(in_channels, 16)]
    cout_pad = []
    for i in range(len(layers)):
        cp = couts[i] if i == len(layers) - 1 else _round_up(couts[i], 16)
        cout_pad.append(cp)
        if i + 1 < len(layers):
            cin_pad.append(cp)

    # fold BN scale into weights (f32, before the bf16 cast), pad, flatten
    ws, bs = [], []
    for i, lyr in enumerate(layers):
        wmat = lyr["w"] * lyr["scale"][None, None, None, :]
        wmat = np.pad(wmat, ((0, 0), (0, 0),
                             (0, cin_pad[i] - cins[i]),
                             (0, cout_pad[i] - couts[i])))
        wmat = wmat.reshape(9, cin_pad[i], cout_pad[i]).transpose(2, 0, 1)
        wmat = wmat.reshape(cout_pad[i], 9 * cin_pad[i])
        bvec = np.pad(lyr["bias"], (0, cout_pad[i] - couts[i])).reshape(cout_pad[i], 1)
        ws.append(jnp.asarray(wmat, jnp.bfloat16))
        bs.append(jnp.asarray(bvec, jnp.float32))

    # walk events: emit the static kernel plan + constant selection matrices
    plan, sels, cache = [], [], {}

    def sel_index(key_, builder, dtype):
        if key_ not in cache:
            cache[key_] = len(sels)
            sels.append(jnp.asarray(builder(), dtype))
        return cache[key_]

    h, w = height, width
    layout = "padded"
    for ev, idx in events:
        if ev == "conv":
            if layout == "convout":          # conv -> conv, no resampling between
                si = sel_index(("repad", h, w),
                               lambda h=h, w=w: _repad_select(h, w), jnp.bfloat16)
                plan.append(("sel", si, True))
            plan.append(("conv", idx, h, w, layers[idx]["relu"]))
            layout = "convout"
        elif ev == "pool":
            assert layout == "convout" and h % 2 == 0 and w % 2 == 0
            si = sel_index(("pool", h, w),
                           lambda h=h, w=w: _pool_select(h, w), jnp.bfloat16)
            plan.append(("pool", si, h, w))
            h, w = h // 2, w // 2
            layout = "padded"
        else:                                # "up"
            sp = layout == "padded"
            si = sel_index(("up", h, w, sp),
                           lambda h=h, w=w, sp=sp: _upsample_select(h, w, sp),
                           jnp.bfloat16)
            plan.append(("sel", si, True))
            h, w = 2 * h, 2 * w
            layout = "padded"
    # final lane-dense f32 extraction (drops junk columns exactly)
    si = sel_index(("extract", h, w),
                   lambda h=h, w=w: _extract_select(h, w), jnp.float32)
    plan.append(("sel", si, False))

    const_bytes = sum(int(np.prod(a.shape)) * a.dtype.itemsize
                      for a in ws + bs + sels)
    # TODO(synk): tiled per-layer fallback for configs that do not fit VMEM.
    assert const_bytes < 8 * 2 ** 20, "config too large for fused VMEM-resident path"

    return {"plan": tuple(plan), "ws": ws, "bs": bs, "sels": sels,
            "cin0_pad": cin_pad[0], "out_ch": couts[-1],
            "height": height, "width": width,
            "out_h": h, "out_w": w, "out_hw": h * w}


# ---------------------------------------------------------------------------
# Forward pass (single pallas_call per forward).
# ---------------------------------------------------------------------------
def coc_depth_enc_share_forward(prep, x_nchw):
    n, cin, h, w = x_nchw.shape
    assert (h, w) == (prep["height"], prep["width"])
    cin_p = prep["cin0_pad"]
    wp = w + 2
    lpad = _padded_len(h, w)

    # one-time input prep: zero-pad channels + 1px border, flatten, +2 lanes
    xp = jnp.pad(x_nchw, ((0, 0), (0, cin_p - cin), (1, 1), (1, 1)))
    xp = xp.reshape(n, cin_p, (h + 2) * wp)
    xp = jnp.pad(xp, ((0, 0), (0, 0), (0, 2))).astype(jnp.bfloat16)

    ws, bs, sels = prep["ws"], prep["bs"], prep["sels"]
    n_w, n_s = len(ws), len(sels)
    out_ch, out_hw = prep["out_ch"], prep["out_hw"]
    out_h, out_w = prep["out_h"], prep["out_w"]

    operands = [xp] + list(ws) + list(bs) + list(sels)
    in_specs = [pl.BlockSpec((None, cin_p, lpad), lambda g: (g, 0, 0))]
    for a in operands[1:]:   # grid-invariant constants: full-array blocks
        in_specs.append(pl.BlockSpec(a.shape, lambda g, nd=a.ndim: (0,) * nd))

    kernel = functools.partial(_fused_net_kernel, plan=prep["plan"],
                               n_w=n_w, n_s=n_s)

    out = pl.pallas_call(
        kernel,
        out_shape=jax.ShapeDtypeStruct((n, out_ch, out_hw), jnp.float32),
        grid=(n,),                            # even batch -> both v7x TCs busy
        in_specs=in_specs,
        out_specs=pl.BlockSpec((None, out_ch, out_hw), lambda g: (g, 0, 0)),
        compiler_params=pltpu.CompilerParams(
            dimension_semantics=("parallel",),
            vmem_limit_bytes=32 * 1024 * 1024,   # well above actual use; <= all gens
        ),
    )(*operands)

    half = out_ch // 2
    x_coc = out[:, :half].reshape(n, half, out_h, out_w)
    x_depth = out[:, half:].reshape(n, half, out_h, out_w)
    return x_coc, x_depth


# ---------------------------------------------------------------------------
# Pure-JAX f32 reference (for a tolerance check of the bf16 kernel).
# ---------------------------------------------------------------------------
def _reference_forward(params, x, *, enc_pool_layers, dec_pool_layers, last_act):
    def conv_bn_act(h, blk, relu):
        y = jax.lax.conv_general_dilated(
            h, blk["w"], window_strides=(1, 1), padding="SAME",
            dimension_numbers=("NCHW", "HWIO", "NCHW"),
            precision=jax.lax.Precision.HIGHEST)
        y = y * blk["scale"][None, :, None, None] + blk["bias"][None, :, None, None]
        return jnp.maximum(y, 0.0) if relu else y

    def pool(h):
        n, c, hh, ww = h.shape
        return h.reshape(n, c, hh // 2, 2, ww // 2, 2).max(axis=(3, 5))

    def up(h):
        return jnp.repeat(jnp.repeat(h, 2, axis=2), 2, axis=3)

    h = x
    for blk, p in zip(params["enc"], enc_pool_layers):
        h = conv_bn_act(h, blk, True)
        if p:
            h = pool(h)
    enc = h
    outs = []
    for d in params["decoders"]:
        h = enc
        for blk, u in zip(d["dec"], dec_pool_layers):
            if u:
                h = up(h)
            h = conv_bn_act(h, blk, True)
        for blk in d["final"]:
            h = conv_bn_act(h, blk, True)
        outs.append(conv_bn_act(h, d["final_out"], last_act))
    return outs[0], outs[1]


# ---------------------------------------------------------------------------
if __name__ == "__main__":
    key = jax.random.PRNGKey(0)
    k_param, k_x = jax.random.split(key)

    # small config consistent with the module's constructor
    in_channels, out_channels = 3, 1
    enc_sizes = [8, 16]
    dec_sizes = [16, 8]
    final_conv_sizes = [enc_sizes[0]]          # default in __init__
    bn_eps = 1e-5
    enc_pool_layers = [True, True]
    dec_pool_layers = [True, True]
    last_act = False
    height = width = 16
    batch = 2

    params = init_params(k_param, in_channels, enc_sizes, dec_sizes,
                         final_conv_sizes, out_channels, bn_eps)
    prep = build_fused_net(params, in_channels=in_channels,
                           enc_pool_layers=enc_pool_layers,
                           dec_pool_layers=dec_pool_layers,
                           last_act=last_act, height=height, width=width)

    x = jax.random.normal(k_x, (batch, in_channels, height, width), jnp.float32)

    fwd = jax.jit(functools.partial(coc_depth_enc_share_forward, prep))
    x_coc, x_depth = fwd(x)
    jax.block_until_ready((x_coc, x_depth))

    assert x_coc.shape == (batch, out_channels, height, width), x_coc.shape
    assert x_depth.shape == (batch, out_channels, height, width), x_depth.shape
    assert x_coc.dtype == jnp.float32 and x_depth.dtype == jnp.float32
    assert bool(jnp.all(jnp.isfinite(x_coc))) and bool(jnp.all(jnp.isfinite(x_depth)))

    # correctness vs pure-JAX f32 reference (kernel uses bf16 activations/weights)
    r_coc, r_depth = _reference_forward(
        params, x, enc_pool_layers=enc_pool_layers,
        dec_pool_layers=dec_pool_layers, last_act=last_act)
    np.testing.assert_allclose(np.asarray(x_coc), np.asarray(r_coc),
                               rtol=0.15, atol=0.15)
    np.testing.assert_allclose(np.asarray(x_depth), np.asarray(r_depth),
                               rtol=0.15, atol=0.15)
    print("KERNEL_OK")
</pallas_src>

<mosaic_0001>
module attributes {stable_mosaic.version = 11 : i64} {
  func.func @_fused_net_kernel(%arg0: i32, %arg1: memref<1x16x326xbf16, #tpu.memory_space<vmem>>, %arg2: memref<16x144xbf16, #tpu.memory_space<vmem>>, %arg3: memref<16x144xbf16, #tpu.memory_space<vmem>>, %arg4: memref<32x144xbf16, #tpu.memory_space<vmem>>, %arg5: memref<16x288xbf16, #tpu.memory_space<vmem>>, %arg6: memref<16x144xbf16, #tpu.memory_space<vmem>>, %arg7: memref<2x144xbf16, #tpu.memory_space<vmem>>, %arg8: memref<16x1xf32, #tpu.memory_space<vmem>>, %arg9: memref<16x1xf32, #tpu.memory_space<vmem>>, %arg10: memref<32x1xf32, #tpu.memory_space<vmem>>, %arg11: memref<16x1xf32, #tpu.memory_space<vmem>>, %arg12: memref<16x1xf32, #tpu.memory_space<vmem>>, %arg13: memref<2x1xf32, #tpu.memory_space<vmem>>, %arg14: memref<269x102xbf16, #tpu.memory_space<vmem>>, %arg15: memref<69x38xbf16, #tpu.memory_space<vmem>>, %arg16: memref<38x102xbf16, #tpu.memory_space<vmem>>, %arg17: memref<80x326xbf16, #tpu.memory_space<vmem>>, %arg18: memref<288x326xbf16, #tpu.memory_space<vmem>>, %arg19: memref<288x256xf32, #tpu.memory_space<vmem>>, %arg20: memref<1x2x256xf32, #tpu.memory_space<vmem>>) attributes {dimension_semantics = [#tpu.dimension_semantics<parallel>], iteration_bounds = array<i64: 2>, scalar_prefetch = 0 : i64, scratch_operands = 0 : i64, tpu.core_type = #tpu.core_type<tc>, window_params = [{transform_indices = @transform_0, window_bounds = array<i64: 1, 16, 326>}, {pipeline_mode = #tpu.pipeline_mode<synchronous>, transform_indices = @transform_1, window_bounds = array<i64: 16, 144>}, {pipeline_mode = #tpu.pipeline_mode<synchronous>, transform_indices = @transform_2, window_bounds = array<i64: 16, 144>}, {pipeline_mode = #tpu.pipeline_mode<synchronous>, transform_indices = @transform_3, window_bounds = array<i64: 32, 144>}, {pipeline_mode = #tpu.pipeline_mode<synchronous>, transform_indices = @transform_4, window_bounds = array<i64: 16, 288>}, {pipeline_mode = #tpu.pipeline_mode<synchronous>, transform_indices = @transform_5, window_bounds = array<i64: 16, 144>}, {pipeline_mode = #tpu.pipeline_mode<synchronous>, transform_indices = @transform_6, window_bounds = array<i64: 2, 144>}, {pipeline_mode = #tpu.pipeline_mode<synchronous>, transform_indices = @transform_7, window_bounds = array<i64: 16, 1>}, {pipeline_mode = #tpu.pipeline_mode<synchronous>, transform_indices = @transform_8, window_bounds = array<i64: 16, 1>}, {pipeline_mode = #tpu.pipeline_mode<synchronous>, transform_indices = @transform_9, window_bounds = array<i64: 32, 1>}, {pipeline_mode = #tpu.pipeline_mode<synchronous>, transform_indices = @transform_10, window_bounds = array<i64: 16, 1>}, {pipeline_mode = #tpu.pipeline_mode<synchronous>, transform_indices = @transform_11, window_bounds = array<i64: 16, 1>}, {pipeline_mode = #tpu.pipeline_mode<synchronous>, transform_indices = @transform_12, window_bounds = array<i64: 2, 1>}, {pipeline_mode = #tpu.pipeline_mode<synchronous>, transform_indices = @transform_13, window_bounds = array<i64: 269, 102>}, {pipeline_mode = #tpu.pipeline_mode<synchronous>, transform_indices = @transform_14, window_bounds = array<i64: 69, 38>}, {pipeline_mode = #tpu.pipeline_mode<synchronous>, transform_indices = @transform_15, window_bounds = array<i64: 38, 102>}, {pipeline_mode = #tpu.pipeline_mode<synchronous>, transform_indices = @transform_16, window_bounds = array<i64: 80, 326>}, {pipeline_mode = #tpu.pipeline_mode<synchronous>, transform_indices = @transform_17, window_bounds = array<i64: 288, 326>}, {pipeline_mode = #tpu.pipeline_mode<synchronous>, transform_indices = @transform_18, window_bounds = array<i64: 288, 256>}, {transform_indices = @transform_19, window_bounds = array<i64: 1, 2, 256>}]} {
    %c0 = arith.constant 0 : index
    %c0_0 = arith.constant 0 : index
    %c0_1 = arith.constant 0 : index
    %0 = vector.load %arg1[%c0, %c0_0, %c0_1] : memref<1x16x326xbf16, #tpu.memory_space<vmem>>, vector<1x16x326xbf16>
    %1 = vector.shape_cast %0 : vector<1x16x326xbf16> to vector<16x326xbf16>
    %c0_2 = arith.constant 0 : index
    %c0_3 = arith.constant 0 : index
    %2 = vector.load %arg2[%c0_2, %c0_3] : memref<16x144xbf16, #tpu.memory_space<vmem>>, vector<16x144xbf16>
    %c0_4 = arith.constant 0 : index
    %c0_5 = arith.constant 0 : index
    %3 = vector.load %arg8[%c0_4, %c0_5] : memref<16x1xf32, #tpu.memory_space<vmem>>, vector<16x1xf32>
    %4 = vector.extract_strided_slice %1 {offsets = [0, 0], sizes = [16, 288], strides = [1, 1]} : vector<16x326xbf16> to vector<16x288xbf16>
    %5 = vector.extract_strided_slice %1 {offsets = [0, 1], sizes = [16, 288], strides = [1, 1]} : vector<16x326xbf16> to vector<16x288xbf16>
    %6 = vector.extract_strided_slice %1 {offsets = [0, 2], sizes = [16, 288], strides = [1, 1]} : vector<16x326xbf16> to vector<16x288xbf16>
    %7 = vector.extract_strided_slice %1 {offsets = [0, 18], sizes = [16, 288], strides = [1, 1]} : vector<16x326xbf16> to vector<16x288xbf16>
    %8 = vector.extract_strided_slice %1 {offsets = [0, 19], sizes = [16, 288], strides = [1, 1]} : vector<16x326xbf16> to vector<16x288xbf16>
    %9 = vector.extract_strided_slice %1 {offsets = [0, 20], sizes = [16, 288], strides = [1, 1]} : vector<16x326xbf16> to vector<16x288xbf16>
    %10 = vector.extract_strided_slice %1 {offsets = [0, 36], sizes = [16, 288], strides = [1, 1]} : vector<16x326xbf16> to vector<16x288xbf16>
    %11 = vector.extract_strided_slice %1 {offsets = [0, 37], sizes = [16, 288], strides = [1, 1]} : vector<16x326xbf16> to vector<16x288xbf16>
    %12 = vector.extract_strided_slice %1 {offsets = [0, 38], sizes = [16, 288], strides = [1, 1]} : vector<16x326xbf16> to vector<16x288xbf16>
    %13 = tpu.concatenate %4, %5, %6, %7, %8, %9, %10, %11, %12 in 0 : vector<16x288xbf16>, vector<16x288xbf16>, vector<16x288xbf16>, vector<16x288xbf16>, vector<16x288xbf16>, vector<16x288xbf16>, vector<16x288xbf16>, vector<16x288xbf16>, vector<16x288xbf16> -> vector<144x288xbf16>
    %cst = arith.constant dense<0.000000e+00> : vector<16x288xf32>
    %14 = tpu.matmul %2, %13, %cst {dimension_numbers = #tpu.dot_dimension_numbers<[1], [0], [0], [1], [0, 0, 1, 1], [], []>} : vector<16x144xbf16>, vector<144x288xbf16>, vector<16x288xf32> -> vector<16x288xf32>
    %15 = vector.broadcast %3 : vector<16x1xf32> to vector<16x288xf32>
    %16 = arith.addf %14, %15 : vector<16x288xf32>
    %cst_6 = arith.constant 0.000000e+00 : f32
    %17 = vector.broadcast %cst_6 : f32 to vector<16x288xf32>
    %18 = arith.maximumf %16, %17 : vector<16x288xf32>
    %19 = vector.extract_strided_slice %18 {offsets = [0, 0], sizes = [16, 269], strides = [1, 1]} : vector<16x288xf32> to vector<16x269xf32>
    %20 = vector.extract_strided_slice %18 {offsets = [0, 1], sizes = [16, 269], strides = [1, 1]} : vector<16x288xf32> to vector<16x269xf32>
    %21 = arith.maximumf %19, %20 : vector<16x269xf32>
    %22 = vector.extract_strided_slice %18 {offsets = [0, 18], sizes = [16, 269], strides = [1, 1]} : vector<16x288xf32> to vector<16x269xf32>
    %23 = vector.extract_strided_slice %18 {offsets = [0, 19], sizes = [16, 269], strides = [1, 1]} : vector<16x288xf32> to vector<16x269xf32>
    %24 = arith.maximumf %22, %23 : vector<16x269xf32>
    %25 = arith.maximumf %21, %24 : vector<16x269xf32>
    %26 = arith.truncf %25 : vector<16x269xf32> to vector<16x269xbf16>
    %c0_7 = arith.constant 0 : index
    %c0_8 = arith.constant 0 : index
    %27 = vector.load %arg14[%c0_7, %c0_8] : memref<269x102xbf16, #tpu.memory_space<vmem>>, vector<269x102xbf16>
    %cst_9 = arith.constant dense<0.000000e+00> : vector<16x102xf32>
    %28 = tpu.matmul %26, %27, %cst_9 {dimension_numbers = #tpu.dot_dimension_numbers<[1], [0], [0], [1], [0, 0, 1, 1], [], []>} : vector<16x269xbf16>, vector<269x102xbf16>, vector<16x102xf32> -> vector<16x102xf32>
    %29 = arith.truncf %28 : vector<16x102xf32> to vector<16x102xbf16>
    %c0_10 = arith.constant 0 : index
    %c0_11 = arith.constant 0 : index
    %30 = vector.load %arg3[%c0_10, %c0_11] : memref<16x144xbf16, #tpu.memory_space<vmem>>, vector<16x144xbf16>
    %c0_12 = arith.constant 0 : index
    %c0_13 = arith.constant 0 : index
    %31 = vector.load %arg9[%c0_12, %c0_13] : memref<16x1xf32, #tpu.memory_space<vmem>>, vector<16x1xf32>
    %32 = vector.extract_strided_slice %29 {offsets = [0, 0], sizes = [16, 80], strides = [1, 1]} : vector<16x102xbf16> to vector<16x80xbf16>
    %33 = vector.extract_strided_slice %29 {offsets = [0, 1], sizes = [16, 80], strides = [1, 1]} : vector<16x102xbf16> to vector<16x80xbf16>
    %34 = vector.extract_strided_slice %29 {offsets = [0, 2], sizes = [16, 80], strides = [1, 1]} : vector<16x102xbf16> to vector<16x80xbf16>
    %35 = vector.extract_strided_slice %29 {offsets = [0, 10], sizes = [16, 80], strides = [1, 1]} : vector<16x102xbf16> to vector<16x80xbf16>
    %36 = vector.extract_strided_slice %29 {offsets = [0, 11], sizes = [16, 80], strides = [1, 1]} : vector<16x102xbf16> to vector<16x80xbf16>
    %37 = vector.extract_strided_slice %29 {offsets = [0, 12], sizes = [16, 80], strides = [1, 1]} : vector<16x102xbf16> to vector<16x80xbf16>
    %38 = vector.extract_strided_slice %29 {offsets = [0, 20], sizes = [16, 80], strides = [1, 1]} : vector<16x102xbf16> to vector<16x80xbf16>
    %39 = vector.extract_strided_slice %29 {offsets = [0, 21], sizes = [16, 80], strides = [1, 1]} : vector<16x102xbf16> to vector<16x80xbf16>
    %40 = vector.extract_strided_slice %29 {offsets = [0, 22], sizes = [16, 80], strides = [1, 1]} : vector<16x102xbf16> to vector<16x80xbf16>
    %41 = tpu.concatenate %32, %33, %34, %35, %36, %37, %38, %39, %40 in 0 : vector<16x80xbf16>, vector<16x80xbf16>, vector<16x80xbf16>, vector<16x80xbf16>, vector<16x80xbf16>, vector<16x80xbf16>, vector<16x80xbf16>, vector<16x80xbf16>, vector<16x80xbf16> -> vector<144x80xbf16>
    %cst_14 = arith.constant dense<0.000000e+00> : vector<16x80xf32>
    %42 = tpu.matmul %30, %41, %cst_14 {dimension_numbers = #tpu.dot_dimension_numbers<[1], [0], [0], [1], [0, 0, 1, 1], [], []>} : vector<16x144xbf16>, vector<144x80xbf16>, vector<16x80xf32> -> vector<16x80xf32>
    %43 = vector.broadcast %31 : vector<16x1xf32> to vector<16x80xf32>
    %44 = arith.addf %42, %43 : vector<16x80xf32>
    %cst_15 = arith.constant 0.000000e+00 : f32
    %45 = vector.broadcast %cst_15 : f32 to vector<16x80xf32>
    %46 = arith.maximumf %44, %45 : vector<16x80xf32>
    %47 = vector.extract_strided_slice %46 {offsets = [0, 0], sizes = [16, 69], strides = [1, 1]} : vector<16x80xf32> to vector<16x69xf32>
    %48 = vector.extract_strided_slice %46 {offsets = [0, 1], sizes = [16, 69], strides = [1, 1]} : vector<16x80xf32> to vector<16x69xf32>
    %49 = arith.maximumf %47, %48 : vector<16x69xf32>
    %50 = vector.extract_strided_slice %46 {offsets = [0, 10], sizes = [16, 69], strides = [1, 1]} : vector<16x80xf32> to vector<16x69xf32>
    %51 = vector.extract_strided_slice %46 {offsets = [0, 11], sizes = [16, 69], strides = [1, 1]} : vector<16x80xf32> to vector<16x69xf32>
    %52 = arith.maximumf %50, %51 : vector<16x69xf32>
    %53 = arith.maximumf %49, %52 : vector<16x69xf32>
    %54 = arith.truncf %53 : vector<16x69xf32> to vector<16x69xbf16>
    %c0_16 = arith.constant 0 : index
    %c0_17 = arith.constant 0 : index
    %55 = vector.load %arg15[%c0_16, %c0_17] : memref<69x38xbf16, #tpu.memory_space<vmem>>, vector<69x38xbf16>
    %cst_18 = arith.constant dense<0.000000e+00> : vector<16x38xf32>
    %56 = tpu.matmul %54, %55, %cst_18 {dimension_numbers = #tpu.dot_dimension_numbers<[1], [0], [0], [1], [0, 0, 1, 1], [], []>} : vector<16x69xbf16>, vector<69x38xbf16>, vector<16x38xf32> -> vector<16x38xf32>
    %57 = arith.truncf %56 : vector<16x38xf32> to vector<16x38xbf16>
    %c0_19 = arith.constant 0 : index
    %c0_20 = arith.constant 0 : index
    %58 = vector.load %arg16[%c0_19, %c0_20] : memref<38x102xbf16, #tpu.memory_space<vmem>>, vector<38x102xbf16>
    %cst_21 = arith.constant dense<0.000000e+00> : vector<16x102xf32>
    %59 = tpu.matmul %57, %58, %cst_21 {dimension_numbers = #tpu.dot_dimension_numbers<[1], [0], [0], [1], [0, 0, 1, 1], [], []>} : vector<16x38xbf16>, vector<38x102xbf16>, vector<16x102xf32> -> vector<16x102xf32>
    %60 = arith.truncf %59 : vector<16x102xf32> to vector<16x102xbf16>
    %c0_22 = arith.constant 0 : index
    %c0_23 = arith.constant 0 : index
    %61 = vector.load %arg4[%c0_22, %c0_23] : memref<32x144xbf16, #tpu.memory_space<vmem>>, vector<32x144xbf16>
    %c0_24 = arith.constant 0 : index
    %c0_25 = arith.constant 0 : index
    %62 = vector.load %arg10[%c0_24, %c0_25] : memref<32x1xf32, #tpu.memory_space<vmem>>, vector<32x1xf32>
    %63 = vector.extract_strided_slice %60 {offsets = [0, 0], sizes = [16, 80], strides = [1, 1]} : vector<16x102xbf16> to vector<16x80xbf16>
    %64 = vector.extract_strided_slice %60 {offsets = [0, 1], sizes = [16, 80], strides = [1, 1]} : vector<16x102xbf16> to vector<16x80xbf16>
    %65 = vector.extract_strided_slice %60 {offsets = [0, 2], sizes = [16, 80], strides = [1, 1]} : vector<16x102xbf16> to vector<16x80xbf16>
    %66 = vector.extract_strided_slice %60 {offsets = [0, 10], sizes = [16, 80], strides = [1, 1]} : vector<16x102xbf16> to vector<16x80xbf16>
    %67 = vector.extract_strided_slice %60 {offsets = [0, 11], sizes = [16, 80], strides = [1, 1]} : vector<16x102xbf16> to vector<16x80xbf16>
    %68 = vector.extract_strided_slice %60 {offsets = [0, 12], sizes = [16, 80], strides = [1, 1]} : vector<16x102xbf16> to vector<16x80xbf16>
    %69 = vector.extract_strided_slice %60 {offsets = [0, 20], sizes = [16, 80], strides = [1, 1]} : vector<16x102xbf16> to vector<16x80xbf16>
    %70 = vector.extract_strided_slice %60 {offsets = [0, 21], sizes = [16, 80], strides = [1, 1]} : vector<16x102xbf16> to vector<16x80xbf16>
    %71 = vector.extract_strided_slice %60 {offsets = [0, 22], sizes = [16, 80], strides = [1, 1]} : vector<16x102xbf16> to vector<16x80xbf16>
    %72 = tpu.concatenate %63, %64, %65, %66, %67, %68, %69, %70, %71 in 0 : vector<16x80xbf16>, vector<16x80xbf16>, vector<16x80xbf16>, vector<16x80xbf16>, vector<16x80xbf16>, vector<16x80xbf16>, vector<16x80xbf16>, vector<16x80xbf16>, vector<16x80xbf16> -> vector<144x80xbf16>
    %cst_26 = arith.constant dense<0.000000e+00> : vector<32x80xf32>
    %73 = tpu.matmul %61, %72, %cst_26 {dimension_numbers = #tpu.dot_dimension_numbers<[1], [0], [0], [1], [0, 0, 1, 1], [], []>} : vector<32x144xbf16>, vector<144x80xbf16>, vector<32x80xf32> -> vector<32x80xf32>
    %74 = vector.broadcast %62 : vector<32x1xf32> to vector<32x80xf32>
    %75 = arith.addf %73, %74 : vector<32x80xf32>
    %cst_27 = arith.constant 0.000000e+00 : f32
    %76 = vector.broadcast %cst_27 : f32 to vector<32x80xf32>
    %77 = arith.maximumf %75, %76 : vector<32x80xf32>
    %78 = arith.truncf %77 : vector<32x80xf32> to vector<32x80xbf16>
    %c0_28 = arith.constant 0 : index
    %c0_29 = arith.constant 0 : index
    %79 = vector.load %arg17[%c0_28, %c0_29] : memref<80x326xbf16, #tpu.memory_space<vmem>>, vector<80x326xbf16>
    %cst_30 = arith.constant dense<0.000000e+00> : vector<32x326xf32>
    %80 = tpu.matmul %78, %79, %cst_30 {dimension_numbers = #tpu.dot_dimension_numbers<[1], [0], [0], [1], [0, 0, 1, 1], [], []>} : vector<32x80xbf16>, vector<80x326xbf16>, vector<32x326xf32> -> vector<32x326xf32>
    %81 = arith.truncf %80 : vector<32x326xf32> to vector<32x326xbf16>
    %c0_31 = arith.constant 0 : index
    %c0_32 = arith.constant 0 : index
    %82 = vector.load %arg5[%c0_31, %c0_32] : memref<16x288xbf16, #tpu.memory_space<vmem>>, vector<16x288xbf16>
    %c0_33 = arith.constant 0 : index
    %c0_34 = arith.constant 0 : index
    %83 = vector.load %arg11[%c0_33, %c0_34] : memref<16x1xf32, #tpu.memory_space<vmem>>, vector<16x1xf32>
    %84 = vector.extract_strided_slice %81 {offsets = [0, 0], sizes = [32, 288], strides = [1, 1]} : vector<32x326xbf16> to vector<32x288xbf16>
    %85 = vector.extract_strided_slice %81 {offsets = [0, 1], sizes = [32, 288], strides = [1, 1]} : vector<32x326xbf16> to vector<32x288xbf16>
    %86 = vector.extract_strided_slice %81 {offsets = [0, 2], sizes = [32, 288], strides = [1, 1]} : vector<32x326xbf16> to vector<32x288xbf16>
    %87 = vector.extract_strided_slice %81 {offsets = [0, 18], sizes = [32, 288], strides = [1, 1]} : vector<32x326xbf16> to vector<32x288xbf16>
    %88 = vector.extract_strided_slice %81 {offsets = [0, 19], sizes = [32, 288], strides = [1, 1]} : vector<32x326xbf16> to vector<32x288xbf16>
    %89 = vector.extract_strided_slice %81 {offsets = [0, 20], sizes = [32, 288], strides = [1, 1]} : vector<32x326xbf16> to vector<32x288xbf16>
    %90 = vector.extract_strided_slice %81 {offsets = [0, 36], sizes = [32, 288], strides = [1, 1]} : vector<32x326xbf16> to vector<32x288xbf16>
    %91 = vector.extract_strided_slice %81 {offsets = [0, 37], sizes = [32, 288], strides = [1, 1]} : vector<32x326xbf16> to vector<32x288xbf16>
    %92 = vector.extract_strided_slice %81 {offsets = [0, 38], sizes = [32, 288], strides = [1, 1]} : vector<32x326xbf16> to vector<32x288xbf16>
    %93 = tpu.concatenate %84, %85, %86, %87, %88, %89, %90, %91, %92 in 0 : vector<32x288xbf16>, vector<32x288xbf16>, vector<32x288xbf16>, vector<32x288xbf16>, vector<32x288xbf16>, vector<32x288xbf16>, vector<32x288xbf16>, vector<32x288xbf16>, vector<32x288xbf16> -> vector<288x288xbf16>
    %cst_35 = arith.constant dense<0.000000e+00> : vector<16x288xf32>
    %94 = tpu.matmul %82, %93, %cst_35 {dimension_numbers = #tpu.dot_dimension_numbers<[1], [0], [0], [1], [0, 0, 1, 1], [], []>} : vector<16x288xbf16>, vector<288x288xbf16>, vector<16x288xf32> -> vector<16x288xf32>
    %95 = vector.broadcast %83 : vector<16x1xf32> to vector<16x288xf32>
    %96 = arith.addf %94, %95 : vector<16x288xf32>
    %cst_36 = arith.constant 0.000000e+00 : f32
    %97 = vector.broadcast %cst_36 : f32 to vector<16x288xf32>
    %98 = arith.maximumf %96, %97 : vector<16x288xf32>
    %99 = arith.truncf %98 : vector<16x288xf32> to vector<16x288xbf16>
    %c0_37 = arith.constant 0 : index
    %c0_38 = arith.constant 0 : index
    %100 = vector.load %arg18[%c0_37, %c0_38] : memref<288x326xbf16, #tpu.memory_space<vmem>>, vector<288x326xbf16>
    %cst_39 = arith.constant dense<0.000000e+00> : vector<16x326xf32>
    %101 = tpu.matmul %99, %100, %cst_39 {dimension_numbers = #tpu.dot_dimension_numbers<[1], [0], [0], [1], [0, 0, 1, 1], [], []>} : vector<16x288xbf16>, vector<288x326xbf16>, vector<16x326xf32> -> vector<16x326xf32>
    %102 = arith.truncf %101 : vector<16x326xf32> to vector<16x326xbf16>
    %c0_40 = arith.constant 0 : index
    %c0_41 = arith.constant 0 : index
    %103 = vector.load %arg6[%c0_40, %c0_41] : memref<16x144xbf16, #tpu.memory_space<vmem>>, vector<16x144xbf16>
    %c0_42 = arith.constant 0 : index
    %c0_43 = arith.constant 0 : index
    %104 = vector.load %arg12[%c0_42, %c0_43] : memref<16x1xf32, #tpu.memory_space<vmem>>, vector<16x1xf32>
    %105 = vector.extract_strided_slice %102 {offsets = [0, 0], sizes = [16, 288], strides = [1, 1]} : vector<16x326xbf16> to vector<16x288xbf16>
    %106 = vector.extract_strided_slice %102 {offsets = [0, 1], sizes = [16, 288], strides = [1, 1]} : vector<16x326xbf16> to vector<16x288xbf16>
    %107 = vector.extract_strided_slice %102 {offsets = [0, 2], sizes = [16, 288], strides = [1, 1]} : vector<16x326xbf16> to vector<16x288xbf16>
    %108 = vector.extract_strided_slice %102 {offsets = [0, 18], sizes = [16, 288], strides = [1, 1]} : vector<16x326xbf16> to vector<16x288xbf16>
    %109 = vector.extract_strided_slice %102 {offsets = [0, 19], sizes = [16, 288], strides = [1, 1]} : vector<16x326xbf16> to vector<16x288xbf16>
    %110 = vector.extract_strided_slice %102 {offsets = [0, 20], sizes = [16, 288], strides = [1, 1]} : vector<16x326xbf16> to vector<16x288xbf16>
    %111 = vector.extract_strided_slice %102 {offsets = [0, 36], sizes = [16, 288], strides = [1, 1]} : vector<16x326xbf16> to vector<16x288xbf16>
    %112 = vector.extract_strided_slice %102 {offsets = [0, 37], sizes = [16, 288], strides = [1, 1]} : vector<16x326xbf16> to vector<16x288xbf16>
    %113 = vector.extract_strided_slice %102 {offsets = [0, 38], sizes = [16, 288], strides = [1, 1]} : vector<16x326xbf16> to vector<16x288xbf16>
    %114 = tpu.concatenate %105, %106, %107, %108, %109, %110, %111, %112, %113 in 0 : vector<16x288xbf16>, vector<16x288xbf16>, vector<16x288xbf16>, vector<16x288xbf16>, vector<16x288xbf16>, vector<16x288xbf16>, vector<16x288xbf16>, vector<16x288xbf16>, vector<16x288xbf16> -> vector<144x288xbf16>
    %cst_44 = arith.constant dense<0.000000e+00> : vector<16x288xf32>
    %115 = tpu.matmul %103, %114, %cst_44 {dimension_numbers = #tpu.dot_dimension_numbers<[1], [0], [0], [1], [0, 0, 1, 1], [], []>} : vector<16x144xbf16>, vector<144x288xbf16>, vector<16x288xf32> -> vector<16x288xf32>
    %116 = vector.broadcast %104 : vector<16x1xf32> to vector<16x288xf32>
    %117 = arith.addf %115, %116 : vector<16x288xf32>
    %cst_45 = arith.constant 0.000000e+00 : f32
    %118 = vector.broadcast %cst_45 : f32 to vector<16x288xf32>
    %119 = arith.maximumf %117, %118 : vector<16x288xf32>
    %120 = arith.truncf %119 : vector<16x288xf32> to vector<16x288xbf16>
    %c0_46 = arith.constant 0 : index
    %c0_47 = arith.constant 0 : index
    %121 = vector.load %arg18[%c0_46, %c0_47] : memref<288x326xbf16, #tpu.memory_space<vmem>>, vector<288x326xbf16>
    %cst_48 = arith.constant dense<0.000000e+00> : vector<16x326xf32>
    %122 = tpu.matmul %120, %121, %cst_48 {dimension_numbers = #tpu.dot_dimension_numbers<[1], [0], [0], [1], [0, 0, 1, 1], [], []>} : vector<16x288xbf16>, vector<288x326xbf16>, vector<16x326xf32> -> vector<16x326xf32>
    %123 = arith.truncf %122 : vector<16x326xf32> to vector<16x326xbf16>
    %c0_49 = arith.constant 0 : index
    %c0_50 = arith.constant 0 : index
    %124 = vector.load %arg7[%c0_49, %c0_50] : memref<2x144xbf16, #tpu.memory_space<vmem>>, vector<2x144xbf16>
    %c0_51 = arith.constant 0 : index
    %c0_52 = arith.constant 0 : index
    %125 = vector.load %arg13[%c0_51, %c0_52] : memref<2x1xf32, #tpu.memory_space<vmem>>, vector<2x1xf32>
    %126 = vector.extract_strided_slice %123 {offsets = [0, 0], sizes = [16, 288], strides = [1, 1]} : vector<16x326xbf16> to vector<16x288xbf16>
    %127 = vector.extract_strided_slice %123 {offsets = [0, 1], sizes = [16, 288], strides = [1, 1]} : vector<16x326xbf16> to vector<16x288xbf16>
    %128 = vector.extract_strided_slice %123 {offsets = [0, 2], sizes = [16, 288], strides = [1, 1]} : vector<16x326xbf16> to vector<16x288xbf16>
    %129 = vector.extract_strided_slice %123 {offsets = [0, 18], sizes = [16, 288], strides = [1, 1]} : vector<16x326xbf16> to vector<16x288xbf16>
    %130 = vector.extract_strided_slice %123 {offsets = [0, 19], sizes = [16, 288], strides = [1, 1]} : vector<16x326xbf16> to vector<16x288xbf16>
    %131 = vector.extract_strided_slice %123 {offsets = [0, 20], sizes = [16, 288], strides = [1, 1]} : vector<16x326xbf16> to vector<16x288xbf16>
    %132 = vector.extract_strided_slice %123 {offsets = [0, 36], sizes = [16, 288], strides = [1, 1]} : vector<16x326xbf16> to vector<16x288xbf16>
    %133 = vector.extract_strided_slice %123 {offsets = [0, 37], sizes = [16, 288], strides = [1, 1]} : vector<16x326xbf16> to vector<16x288xbf16>
    %134 = vector.extract_strided_slice %123 {offsets = [0, 38], sizes = [16, 288], strides = [1, 1]} : vector<16x326xbf16> to vector<16x288xbf16>
    %135 = tpu.concatenate %126, %127, %128, %129, %130, %131, %132, %133, %134 in 0 : vector<16x288xbf16>, vector<16x288xbf16>, vector<16x288xbf16>, vector<16x288xbf16>, vector<16x288xbf16>, vector<16x288xbf16>, vector<16x288xbf16>, vector<16x288xbf16>, vector<16x288xbf16> -> vector<144x288xbf16>
    %cst_53 = arith.constant dense<0.000000e+00> : vector<2x288xf32>
    %136 = tpu.matmul %124, %135, %cst_53 {dimension_numbers = #tpu.dot_dimension_numbers<[1], [0], [0], [1], [0, 0, 1, 1], [], []>} : vector<2x144xbf16>, vector<144x288xbf16>, vector<2x288xf32> -> vector<2x288xf32>
    %137 = vector.broadcast %125 : vector<2x1xf32> to vector<2x288xf32>
    %138 = arith.addf %136, %137 : vector<2x288xf32>
    %c0_54 = arith.constant 0 : index
    %c0_55 = arith.constant 0 : index
    %139 = vector.load %arg19[%c0_54, %c0_55] : memref<288x256xf32, #tpu.memory_space<vmem>>, vector<288x256xf32>
    %cst_56 = arith.constant dense<0.000000e+00> : vector<2x256xf32>
    %140 = tpu.matmul %138, %139, %cst_56 {dimension_numbers = #tpu.dot_dimension_numbers<[1], [0], [0], [1], [0, 0, 1, 1], [], []>} : vector<2x288xf32>, vector<288x256xf32>, vector<2x256xf32> -> vector<2x256xf32>
    %c0_57 = arith.constant 0 : index
    %c0_58 = arith.constant 0 : index
    %c0_59 = arith.constant 0 : index
    %141 = vector.load %arg20[%c0_57, %c0_58, %c0_59] : memref<1x2x256xf32, #tpu.memory_space<vmem>>, vector<1x2x256xf32>
    %142 = vector.shape_cast %141 : vector<1x2x256xf32> to vector<2x256xf32>
    %143 = vector.shape_cast %140 : vector<2x256xf32> to vector<1x2x256xf32>
    tpu.vector_store %arg20[%c0_57, %c0_58, %c0_59], %143 {strides = array<i32>} : memref<1x2x256xf32, #tpu.memory_space<vmem>>, vector<1x2x256xf32>,
    return
  }
  func.func @transform_0(%arg0: i32) -> (i32, i32, i32) {
    %c0_i32 = arith.constant 0 : i32
    %c0_i32_0 = arith.constant 0 : i32
    %c0_i32_1 = arith.constant 0 : i32
    return %arg0, %c0_i32, %c0_i32_0 : i32, i32, i32
  }
  func.func @transform_1(%arg0: i32) -> (i32, i32) {
    %c0_i32 = arith.constant 0 : i32
    %c0_i32_0 = arith.constant 0 : i32
    %c0_i32_1 = arith.constant 0 : i32
    return %c0_i32, %c0_i32_0 : i32, i32
  }
  func.func @transform_2(%arg0: i32) -> (i32, i32) {
    %c0_i32 = arith.constant 0 : i32
    %c0_i32_0 = arith.constant 0 : i32
    %c0_i32_1 = arith.constant 0 : i32
    return %c0_i32, %c0_i32_0 : i32, i32
  }
  func.func @transform_3(%arg0: i32) -> (i32, i32) {
    %c0_i32 = arith.constant 0 : i32
    %c0_i32_0 = arith.constant 0 : i32
    %c0_i32_1 = arith.constant 0 : i32
    return %c0_i32, %c0_i32_0 : i32, i32
  }
  func.func @transform_4(%arg0: i32) -> (i32, i32) {
    %c0_i32 = arith.constant 0 : i32
    %c0_i32_0 = arith.constant 0 : i32
    %c0_i32_1 = arith.constant 0 : i32
    return %c0_i32, %c0_i32_0 : i32, i32
  }
  func.func @transform_5(%arg0: i32) -> (i32, i32) {
    %c0_i32 = arith.constant 0 : i32
    %c0_i32_0 = arith.constant 0 : i32
    %c0_i32_1 = arith.constant 0 : i32
    return %c0_i32, %c0_i32_0 : i32, i32
  }
  func.func @transform_6(%arg0: i32) -> (i32, i32) {
    %c0_i32 = arith.constant 0 : i32
    %c0_i32_0 = arith.constant 0 : i32
    %c0_i32_1 = arith.constant 0 : i32
    return %c0_i32, %c0_i32_0 : i32, i32
  }
  func.func @transform_7(%arg0: i32) -> (i32, i32) {
    %c0_i32 = arith.constant 0 : i32
    %c0_i32_0 = arith.constant 0 : i32
    %c0_i32_1 = arith.constant 0 : i32
    return %c0_i32, %c0_i32_0 : i32, i32
  }
  func.func @transform_8(%arg0: i32) -> (i32, i32) {
    %c0_i32 = arith.constant 0 : i32
    %c0_i32_0 = arith.constant 0 : i32
    %c0_i32_1 = arith.constant 0 : i32
    return %c0_i32, %c0_i32_0 : i32, i32
  }
  func.func @transform_9(%arg0: i32) -> (i32, i32) {
    %c0_i32 = arith.constant 0 : i32
    %c0_i32_0 = arith.constant 0 : i32
    %c0_i32_1 = arith.constant 0 : i32
    return %c0_i32, %c0_i32_0 : i32, i32
  }
  func.func @transform_10(%arg0: i32) -> (i32, i32) {
    %c0_i32 = arith.constant 0 : i32
    %c0_i32_0 = arith.constant 0 : i32
    %c0_i32_1 = arith.constant 0 : i32
    return %c0_i32, %c0_i32_0 : i32, i32
  }
  func.func @transform_11(%arg0: i32) -> (i32, i32) {
    %c0_i32 = arith.constant 0 : i32
    %c0_i32_0 = arith.constant 0 : i32
    %c0_i32_1 = arith.constant 0 : i32
    return %c0_i32, %c0_i32_0 : i32, i32
  }
  func.func @transform_12(%arg0: i32) -> (i32, i32) {
    %c0_i32 = arith.constant 0 : i32
    %c0_i32_0 = arith.constant 0 : i32
    %c0_i32_1 = arith.constant 0 : i32
    return %c0_i32, %c0_i32_0 : i32, i32
  }
  func.func @transform_13(%arg0: i32) -> (i32, i32) {
    %c0_i32 = arith.constant 0 : i32
    %c0_i32_0 = arith.constant 0 : i32
    %c0_i32_1 = arith.constant 0 : i32
    return %c0_i32, %c0_i32_0 : i32, i32
  }
  func.func @transform_14(%arg0: i32) -> (i32, i32) {
    %c0_i32 = arith.constant 0 : i32
    %c0_i32_0 = arith.constant 0 : i32
    %c0_i32_1 = arith.constant 0 : i32
    return %c0_i32, %c0_i32_0 : i32, i32
  }
  func.func @transform_15(%arg0: i32) -> (i32, i32) {
    %c0_i32 = arith.constant 0 : i32
    %c0_i32_0 = arith.constant 0 : i32
    %c0_i32_1 = arith.constant 0 : i32
    return %c0_i32, %c0_i32_0 : i32, i32
  }
  func.func @transform_16(%arg0: i32) -> (i32, i32) {
    %c0_i32 = arith.constant 0 : i32
    %c0_i32_0 = arith.constant 0 : i32
    %c0_i32_1 = arith.constant 0 : i32
    return %c0_i32, %c0_i32_0 : i32, i32
  }
  func.func @transform_17(%arg0: i32) -> (i32, i32) {
    %c0_i32 = arith.constant 0 : i32
    %c0_i32_0 = arith.constant 0 : i32
    %c0_i32_1 = arith.constant 0 : i32
    return %c0_i32, %c0_i32_0 : i32, i32
  }
  func.func @transform_18(%arg0: i32) -> (i32, i32) {
    %c0_i32 = arith.constant 0 : i32
    %c0_i32_0 = arith.constant 0 : i32
    %c0_i32_1 = arith.constant 0 : i32
    return %c0_i32, %c0_i32_0 : i32, i32
  }
  func.func @transform_19(%arg0: i32) -> (i32, i32, i32) {
    %c0_i32 = arith.constant 0 : i32
    %c0_i32_0 = arith.constant 0 : i32
    %c0_i32_1 = arith.constant 0 : i32
    return %arg0, %c0_i32, %c0_i32_0 : i32, i32, i32
  }
}

</mosaic_0001>

<bundles_post_ra>
// kernel: coc_depth_enc_share_forward.1
= control target key start
LH: loop header
LB: loop body
LE: loop exit
PB: predicated region body
PF: predicated region fallthrough
CT: control target
= control target key end

     0   :  { %s5565_s0 = inlined_call_operand.vmem [shape: bf16[2,16,326], index: 0, kind: input, shape index: {}]   ;;  %s5566_s1 = inlined_call_operand.vmem [shape: bf16[16,144], index: 1, kind: input, shape index: {}]   ;;  %s5567_s2 = inlined_call_operand.vmem [shape: bf16[16,144], index: 2, kind: input, shape index: {}]   ;;  %s5568_s3 = inlined_call_operand.vmem [shape: bf16[32,144], index: 3, kind: input, shape index: {}]   ;;  %s5569_s4 = inlined_call_operand.vmem [shape: bf16[16,288], index: 4, kind: input, shape index: {}]   ;;  %s5570_s5 = inlined_call_operand.vmem [shape: bf16[16,144], index: 5, kind: input, shape index: {}]   ;;  %s5571_s6 = inlined_call_operand.vmem [shape: bf16[2,144], index: 6, kind: input, shape index: {}]   ;;  %s5572_s7 = inlined_call_operand.vmem [shape: f32[16,1], index: 7, kind: input, shape index: {}, may-alias: {7,8,10,11}]   ;;  %s5573_s8 = inlined_call_operand.vmem [shape: f32[16,1], index: 8, kind: input, shape index: {}, may-alias: {7,8,10,11}]   ;;  %s5574_s9 = inlined_call_operand.vmem [shape: f32[32,1], index: 9, kind: input, shape index: {}]   ;;  %s5575_s10 = inlined_call_operand.vmem [shape: f32[16,1], index: 10, kind: input, shape index: {}, may-alias: {7,8,10,11}]   ;;  %s5576_s11 = inlined_call_operand.vmem [shape: f32[16,1], index: 11, kind: input, shape index: {}, may-alias: {7,8,10,11}]   ;;  %s5577_s12 = inlined_call_operand.vmem [shape: f32[2,1], index: 12, kind: input, shape index: {}]   ;;  %s5578_s13 = inlined_call_operand.vmem [shape: bf16[269,102], index: 13, kind: input, shape index: {}]   ;;  %s5579_s14 = inlined_call_operand.vmem [shape: bf16[69,38], index: 14, kind: input, shape index: {}]   ;;  %s5580_s15 = inlined_call_operand.vmem [shape: bf16[38,102], index: 15, kind: input, shape index: {}]   ;;  %s5581_s16 = inlined_call_operand.vmem [shape: bf16[80,326], index: 16, kind: input, shape index: {}]   ;;  %s5582_s17 = inlined_call_operand.vmem [shape: bf16[288,326], index: 17, kind: input, shape index: {}]   ;;  %s5583_s18 = inlined_call_operand.vmem [shape: f32[288,256], index: 18, kind: input, shape index: {}]   ;;  %s5584_s19 = inlined_call_operand.vmem [shape: f32[2,2,256], index: 19, kind: output, shape index: {}]  }
   0x1   :  { %5622 = sst [smem:[#allocation13_spill]] %s5565_s0  ;;  %s4316_s0 = smov 0  }
   0x2   :  { %5623 = sst [smem:[#allocation14_spill]] %s5566_s1 }
   0x3   :  { %5624 = sst [smem:[#allocation15_spill]] %s5567_s2 }
   0x4   :  { %5625 = sst [smem:[#allocation16_spill]] %s5568_s3 }
   0x5   :  { %5626 = sst [smem:[#allocation17_spill]] %s5569_s4 }
   0x6   :  { %5627 = sst [smem:[#allocation18_spill]] %s5572_s7 }
   0x7   :  { %5628 = sst [smem:[#allocation19_spill]] %s5573_s8 }
   0x8   :  { %5629 = sst [smem:[#allocation20_spill]] %s5574_s9 }
   0x9   :  { %5630 = sst [smem:[#allocation21_spill]] %s5575_s10 }
   0xa   :  { %5631 = sst [smem:[#allocation22_spill]] %s5578_s13 }
   0xb LB: > { %s3561_s30 = sadd.s32 4294967295, %s4196_s0   ;;  %p3565_p0 = scmp.ge.s32.totalorder %s4196_s0, 1  ;;  %s4196_s0 = sphi %s4316_s0, %s29_s0  }
   0xc   : > { %p537_p1 = scmp.lt.s32.totalorder %s4196_s0, 3 }
   0xe   : > { %p538_p2 = pnand %p3565_p0, %p537_p1 }
  0x10   : > { %541 = sbr.rel (%p538_p2) target bundleno = 4388 (0x1124), region = 96 }
  0x17   : > { %p593_p3 = scmp.lt.s32.totalorder %s3561_s30, 1  ;;  %v5607_v0 = vmov 0   ;;  %s5632_s22 = sld [smem:[#allocation13_spill]]  ;;  %vm743_vm0 = vcmask 130048   ;;  %vm634_vm1 = vcmask 1039360   ;;  %vm646_vm2 = vcmask 1031168  }
  0x18   : > { %790 = vmatprep.subr.bf16.mxu1 %v5607_v0  ;;  %4008 = vset.pattern.permute.xlu0 %v5607_v0  ;;  %s5598_s23 = smov 127   ;;  %s5603_s24 = smov 126   ;;  %vm658_vm3 = vcmask 900096   ;;  %vm670_vm4 = vcmask 891904   ;;  %vm682_vm5 = vcmask 883712   ;;  %vm694_vm6 = vcmask 752640  }
  0x19   : > { %s5677_s30 = smov (!%p593_p3, %s3561_s30), 1  ;;  %4009 = vset.pattern.permute.xlu1 %v5607_v0  ;;  %s5600_s25 = smov 110   ;;  %vm706_vm7 = vcmask 744448   ;;  %vm718_vm8 = vcmask 736256   ;;  %vm1049_vm9 = vcmask 1045504   ;;  %vm1050_vm10 = vcmask 1046528  }
  0x1a   : > { %s3981_s20 = smul.u32 24, %s5677_s30  ;;  %s5594_s3 = smov 109   ;;  %vm4209_vm11 = vmmov 0   ;;  %vm1045_vm12 = vcmask 105472   ;;  %vm1294_vm13 = vcmask 1041408   ;;  %vm1295_vm14 = vcmask 1042432  }
  0x1b   : > { %s5596_s26 = smov 108   ;;  %s5592_s27 = smov 92   ;;  %vm1290_vm15 = vcmask 564224  }
  0x1c   : > { %s5590_s21 = smov 91   ;;  %s5588_s1 = smov 90  }
  0x1d   : > { %s597_s2 = scalar_lea.vmem %s5632_s22, %s3981_s20  ;;  %s5633_s20 = sld [smem:[#allocation14_spill]] }
  0x1e   : > { %v4050_v1 = vld [vmem:[%s597_s2 + $0x4] ss:$12 sps:$4 sm:$0xff]   ;;  %v4052_v2 = vld [vmem:[%s597_s2] ss:$12 sps:$4 sm:$0xff]   ;;  %v4053_v3 = vld [vmem:[%s597_s2 + $0x8] ss:$12 sps:$4 sm:$0xff]  }
  0x1f   : > { %630 = vrot.lane.b32.xlu0 %v4050_v1, %s5598_s23  ;;  %747 = vmatprep.subr.bf16.mxu0 %v4050_v1  ;;  %s5634_s7 = sld [smem:[#allocation18_spill]]  ;;  %s5635_s13 = sld [smem:[#allocation22_spill]] }
  0x20   : > { %628 = vrot.lane.b32.xlu1 %v4052_v2, %s5598_s23  ;;  %748 = vmatpush1.bf16.msra.mxu0 %v4052_v2  ;;  %s5636_s2 = smov 127   ;;  %s5602_s28 = smov 117  }
  0x21   : > { %791 = vmatpush1.bf16.msra.mxu1 %v4053_v3  ;;  %s4214_s29 = smov 107   ;;  %s5638_s8 = sld [smem:[#allocation19_spill]] }
  0x22   : > { %792 = vmatprep.subr.bf16.mxu1 %v5607_v0  ;;  %s5643_s9 = sld [smem:[#allocation20_spill]]  ;;  %s5649_s4 = sld [smem:[#allocation17_spill]] }
  0x23   : > { %632 = vrot.lane.b32.xlu0 %v4053_v3, %s5598_s23  ;;  %v4056_v4 = vld [vmem:[%s5633_s20 + $0x4] ss:$8 sps:$4 sm:$0xff]   ;;  %v4054_v44 = vld [vmem:[%s5633_s20] ss:$8 sps:$4 sm:$0xff]   ;;  %s5651_s10 = sld [smem:[#allocation21_spill]] }
  0x24   : > { %642 = vrot.lane.b32.xlu1 %v4050_v1, %s5603_s24  ;;  %3575 = vmatprep.mubr.msk.bf16.mxu1 %vm743_vm0, %v4056_v4 }
  0x25   : > { %3574 = vmatprep.mubr.msk.bf16.mxu0 %vm743_vm0, %v4056_v4  ;;  %v610_v5 = vld [vmem:[%s5634_s7] sm:$0xff]  ;;  %v611_v6 = vld [vmem:[%s5634_s7 + $0x8] sm:$0xff] }
  0x27   : > { %644 = vrot.lane.b32.xlu0 %v4053_v3, %s5603_s24 }
  0x28   : > { %640 = vrot.lane.b32.xlu1 %v4052_v2, %s5603_s24 }
  0x2b   : > { %654 = vrot.lane.b32.xlu0 %v4050_v1, %s5600_s25 }
  0x2c   : > { %656 = vrot.lane.b32.xlu1 %v4053_v3, %s5600_s25 }
  0x2f   : > { %652 = vrot.lane.b32.xlu0 %v4052_v2, %s5600_s25 }
  0x30   : > { %666 = vrot.lane.b32.xlu1 %v4050_v1, %s5594_s3 }
  0x33   : > { %668 = vrot.lane.b32.xlu0 %v4053_v3, %s5594_s3 }
  0x34   : > { %664 = vrot.lane.b32.xlu1 %v4052_v2, %s5594_s3 }
  0x37   : > { %678 = vrot.lane.b32.xlu0 %v4050_v1, %s5596_s26 }
  0x38   : > { %680 = vrot.lane.b32.xlu1 %v4053_v3, %s5596_s26 }
  0x3b   : > { %676 = vrot.lane.b32.xlu0 %v4052_v2, %s5596_s26  ;;  %s4212_s26 = smov 116  }
  0x3c   : > { %690 = vrot.lane.b32.xlu1 %v4050_v1, %s5592_s27 }
  0x3f   : > { %692 = vrot.lane.b32.xlu0 %v4053_v3, %s5592_s27 }
  0x40   : > { %688 = vrot.lane.b32.xlu1 %v4052_v2, %s5592_s27  ;;  %s5640_s27 = smov 118  }
  0x43   : > { %702 = vrot.lane.b32.xlu0 %v4050_v1, %s5590_s21 }
  0x44   : > { %704 = vrot.lane.b32.xlu1 %v4053_v3, %s5590_s21 }
  0x47   : > { %700 = vrot.lane.b32.xlu0 %v4052_v2, %s5590_s21  ;;  %s5605_s21 = smov 118  }
  0x48   : > { %714 = vrot.lane.b32.xlu1 %v4050_v1, %s5588_s1 }
  0x4b   : > { %716 = vrot.lane.b32.xlu0 %v4053_v3, %s5588_s1 }
  0x4c   : > { %712 = vrot.lane.b32.xlu1 %v4052_v2, %s5588_s1  ;;  %s4213_s1 = smov 106  }
  0x4f   : > { %726 = vperm.xlu0 %4008, %v610_v5  }
  0x50   : > { %731 = vperm.xlu1 %4009, %v611_v6  }
  0x91   : > { %v631_v7 = vpop.permute.xlu0 %630 }
  0x92   : > { %v629_v8 = vpop.permute.xlu1 %628 }
  0x93   : > { %v635_v12 = vsel %vm634_vm1, %v629_v8, %v631_v7  ;;  %v4058_v8 = vld [vmem:[%s5635_s13] sm:$0xff]  }
  0x95   : > { %v633_v9 = vpop.permute.xlu0 %632 }
  0x96   : > { %v643_v10 = vpop.permute.xlu1 %642  ;;  %793 = vmatpush1.bf16.msra.mxu1 %v633_v9  ;;  %v636_v11 = vsel %vm634_vm1, %v631_v7, %v633_v9  ;;  %v4057_v7 = vld [vmem:[%s5635_s13 + $0x40] sm:$0xff]   ;;  %v4059_v9 = vld [vmem:[%s5635_s13 + $0x48] sm:$0xff]  }
  0x97   : > { %749 = vmatprep.subr.bf16.mxu0 %v636_v11  ;;  %794 = vmatprep.subr.bf16.mxu1 %v5607_v0 }
  0x98   : > { %750 = vmatpush1.bf16.msra.mxu0 %v635_v12  ;;  %v4060_v12 = vld [vmem:[%s5635_s13 + $0x8] sm:$0xff]  }
  0x99   : > { %v645_v13 = vpop.permute.xlu0 %644 }
  0x9a   : > { %v641_v14 = vpop.permute.xlu1 %640  ;;  %795 = vmatpush1.bf16.msra.mxu1 %v645_v13  ;;  %v648_v15 = vsel %vm646_vm2, %v643_v10, %v645_v13 }
  0x9b   : > { %751 = vmatprep.subr.bf16.mxu0 %v648_v15  ;;  %v647_v16 = vsel %vm646_vm2, %v641_v14, %v643_v10  ;;  %796 = vmatprep.subr.bf16.mxu1 %v5607_v0  ;;  %v4061_v14 = vld [vmem:[%s5635_s13 + $0x50] sm:$0xff]  }
  0x9c   : > { %752 = vmatpush1.bf16.msra.mxu0 %v647_v16  ;;  %v4062_v15 = vld [vmem:[%s5635_s13 + $0x10] sm:$0xff]   ;;  %v4063_v16 = vld [vmem:[%s5635_s13 + $0x58] sm:$0xff]  }
  0x9d   : > { %v655_v17 = vpop.permute.xlu0 %654 }
  0x9e   : > { %v657_v18 = vpop.permute.xlu1 %656 }
  0x9f   : > { %v660_v19 = vsel %vm658_vm3, %v655_v17, %v657_v18  ;;  %797 = vmatpush1.bf16.msra.mxu1 %v657_v18  ;;  %v4065_v18 = vld [vmem:[%s5635_s13 + $0x60] sm:$0xff]  }
  0xa0   : > { %753 = vmatprep.subr.bf16.mxu0 %v660_v19  ;;  %798 = vmatprep.subr.bf16.mxu1 %v5607_v0  ;;  %v4066_v19 = vld [vmem:[%s5635_s13 + $0x20] sm:$0xff]  }
  0xa1   : > { %v653_v20 = vpop.permute.xlu0 %652 }
  0xa2   : > { %v667_v21 = vpop.permute.xlu1 %666  ;;  %v659_v22 = vsel %vm658_vm3, %v653_v20, %v655_v17  ;;  %v4064_v17 = vld [vmem:[%s5635_s13 + $0x18] sm:$0xff]   ;;  %v4067_v20 = vld [vmem:[%s5635_s13 + $0x68] sm:$0xff]  }
  0xa3   : > { %754 = vmatpush1.bf16.msra.mxu0 %v659_v22  ;;  %v4069_v22 = vld [vmem:[%s5635_s13 + $0x70] sm:$0xff]  }
  0xa5   : > { %v669_v23 = vpop.permute.xlu0 %668 }
  0xa6   : > { %v665_v24 = vpop.permute.xlu1 %664  ;;  %799 = vmatpush1.bf16.msra.mxu1 %v669_v23  ;;  %v672_v25 = vsel %vm670_vm4, %v667_v21, %v669_v23  ;;  %v4071_v23 = vld [vmem:[%s5635_s13 + $0x80] sm:$0x7f]  }
  0xa7   : > { %755 = vmatprep.subr.bf16.mxu0 %v672_v25  ;;  %v671_v26 = vsel %vm670_vm4, %v665_v24, %v667_v21  ;;  %800 = vmatprep.subr.bf16.mxu1 %v5607_v0  ;;  %v4068_v21 = vld [vmem:[%s5635_s13 + $0x28] sm:$0xff]   ;;  %v4207_v24 = vmov 65535  }
  0xa8   : > { %756 = vmatpush1.bf16.msra.mxu0 %v671_v26  ;;  %v1051_v25 = vsel %vm1049_vm9, 4294967295, %v4207_v24  ;;  %v4070_v26 = vld [vmem:[%s5635_s13 + $0x30] sm:$0xff]   ;;  %vm1363_vm9 = vcmask 310272  }
  0xa9   : > { %v679_v27 = vpop.permute.xlu0 %678 }
  0xaa   : > { %v681_v28 = vpop.permute.xlu1 %680 }
  0xab   : > { %v684_v29 = vsel %vm682_vm5, %v679_v27, %v681_v28  ;;  %801 = vmatpush1.bf16.msra.mxu1 %v681_v28 }
  0xac   : > { %757 = vmatprep.subr.bf16.mxu0 %v684_v29  ;;  %802 = vmatprep.subr.bf16.mxu1 %v5607_v0 }
  0xad   : > { %v677_v30 = vpop.permute.xlu0 %676 }
  0xae   : > { %v691_v31 = vpop.permute.xlu1 %690  ;;  %v683_v32 = vsel %vm682_vm5, %v677_v30, %v679_v27  ;;  %v1052_v27 = vsel %vm1050_vm10, %v1051_v25, 0  ;;  %v5609_v30 = vmov 0.0   ;;  %vm1644_vm10 = vcmask 654336  }
  0xaf   : > { %758 = vmatpush1.bf16.msra.mxu0 %v683_v32  ;;  %v1054_v28 = vand.u32 %v4071_v23, %v1052_v27  ;;  %v1142_v27 = vld [vmem:[%s5638_s8 + $0x8] sm:$0xff] }
  0xb1   : > { %v693_v33 = vpop.permute.xlu0 %692 }
  0xb2   : > { %v689_v34 = vpop.permute.xlu1 %688  ;;  %803 = vmatpush1.bf16.msra.mxu1 %v693_v33  ;;  %v696_v35 = vsel %vm694_vm6, %v691_v31, %v693_v33  ;;  %v4072_v33 = vld [vmem:[%s5635_s13 + $0x78] sm:$0xff]  }
  0xb3   : > { %759 = vmatprep.subr.bf16.mxu0 %v696_v35  ;;  %v695_v36 = vsel %vm694_vm6, %v689_v34, %v691_v31  ;;  %804 = vmatprep.subr.bf16.mxu1 %v5607_v0  ;;  %v4073_v35 = vld [vmem:[%s5635_s13 + $0x38] sm:$0xff]   ;;  %s5644_s13 = sld [smem:[#allocation16_spill]] }
  0xb4   : > { %760 = vmatpush1.bf16.msra.mxu0 %v695_v36 }
  0xb5   : > { %v703_v37 = vpop.permute.xlu0 %702 }
  0xb6   : > { %v705_v38 = vpop.permute.xlu1 %704 }
  0xb7   : > { %v708_v39 = vsel %vm706_vm7, %v703_v37, %v705_v38  ;;  %805 = vmatpush1.bf16.msra.mxu1 %v705_v38 }
  0xb8   : > { %761 = vmatprep.subr.bf16.mxu0 %v708_v39  ;;  %806 = vmatprep.subr.bf16.mxu1 %v5607_v0 }
  0xb9   : > { %v701_v40 = vpop.permute.xlu0 %700 }
  0xba   : > { %v715_v41 = vpop.permute.xlu1 %714  ;;  %v707_v42 = vsel %vm706_vm7, %v701_v40, %v703_v37 }
  0xbb   : > { %762 = vmatpush1.bf16.msra.mxu0 %v707_v42 }
  0xbd   : > { %v717_v43 = vpop.permute.xlu0 %716 }
  0xbe   : > { %v713_v45 = vpop.permute.xlu1 %712  ;;  %807 = vmatpush1.bf16.msra.mxu1 %v717_v43  ;;  %v720_v46 = vsel %vm718_vm8, %v715_v41, %v717_v43 }
  0xbf   : > { %763 = vmatprep.subr.bf16.mxu0 %v720_v46  ;;  %v719_v47 = vsel %vm718_vm8, %v713_v45, %v715_v41  ;;  %3823 = vmatprep.subr.bf16.mxu1 %v5609_v30 }
  0xc0   : > { %764 = vmatpush1.bf16.msra.mxu0 %v719_v47 }
  0xc1   : > { %823 = vmatmul.mubr.bf16.vlgmr.msra.gmra.mrb[0].mxu1 %v4054_v44  ;;  %3707 = vmatprep.subr.bf16.mxu0 %v4057_v7 }
  0xc2   : > { %3824 = vmatpush3.bf16.msra.mxu1 %v1054_v28  ;;  %3825 = vmatprep.mubr.msk.bf16.mxu1 %vm4209_vm11, %v5609_v30  ;;  %v1141_v28 = vld [vmem:[%s5638_s8] sm:$0xff]  ;;  %s5650_s8 = smov 90  }
  0xc3   : > { %780 = vmatmul.mubr.bf16.vlgmr.msra.gmra.mrb[0].mxu0 %v4054_v44  ;;  %1190 = vmatprep.subr.bf16.mxu1 %v5607_v0 }
  0xc4   : > { %3708 = vmatpush3.bf16.msra.mxu0 %v4058_v8 }
  0xc5   : > { %3709 = vmatprep.subr.bf16.mxu0 %v4059_v9 }
  0xc8   : > { %3710 = vmatpush3.bf16.msra.mxu0 %v4060_v12 }
  0xc9   : > { %3711 = vmatprep.subr.bf16.mxu0 %v4061_v14 }
  0xcc   : > { %3712 = vmatpush3.bf16.msra.mxu0 %v4062_v15 }
  0xcd   : > { %3713 = vmatprep.subr.bf16.mxu0 %v4063_v16 }
  0xce   : > { %v727_v48 = vpop.permute.xlu0 %726 }
  0xcf   : > { %v732_v51 = vpop.permute.xlu1 %731 }
  0xd0   : > { %3714 = vmatpush3.bf16.msra.mxu0 %v4064_v17 }
  0xd1   : > { %3715 = vmatprep.subr.bf16.mxu0 %v4065_v18 }
  0xd4   : > { %3716 = vmatpush3.bf16.msra.mxu0 %v4066_v19 }
  0xd5   : > { %3717 = vmatprep.subr.bf16.mxu0 %v4067_v20 }
  0xd8   : > { %3718 = vmatpush3.bf16.msra.mxu0 %v4068_v21 }
  0xd9   : > { %3719 = vmatprep.subr.bf16.mxu0 %v4069_v22 }
  0xdc   : > { %3720 = vmatpush3.bf16.msra.mxu0 %v4070_v26 }
  0xdd   : > { %3721 = vmatprep.subr.bf16.mxu0 %v4072_v33 }
  0xe0   : > { %3722 = vmatpush3.bf16.msra.mxu0 %v4073_v35 }
  0xe1   : > { %3829 = vmatprep.subr.bf16.mxu0 %v5609_v30 }
 0x194   : > { %v824_v49 = vpop.f32.mrb[0].mxu1 }
 0x195   : > { %v826_v50 = vpop.f32.mrb[1].mxu1  ;;  %v4395_v52 = vadd.f32 %v824_v49, %v727_v48 }
 0x196   : > { %v781_v53 = vpop.f32.mrb[0].mxu0  ;;  %v827_v54 = vpop.f32.mrb[2].mxu1 }
 0x197   : > { %v829_v55 = vpop.f32.mrb[3].mxu1  ;;  %v783_v56 = vpop.f32.mrb[1].mxu0  ;;  %v833_v58 = vmax.f32 %v4395_v52, 0.0  ;;  %v4400_v60 = vadd.f32 %v827_v54, %v732_v51  ;;  %v4404_v63 = vadd.f32 %v781_v53, %v727_v48 }
 0x198   : > { %v4397_v57 = vadd.f32 %v783_v56, %v727_v48  ;;  %v785_v59 = vpop.f32.mrb[2].mxu0 }
 0x199   : > { %v4402_v61 = vadd.f32 %v785_v59, %v732_v51  ;;  %v787_v62 = vpop.f32.mrb[3].mxu0  ;;  %v836_v6 = vmax.f32 %v4400_v60, 0.0  ;;  %v831_v10 = vmax.f32 %v4404_v63, 0.0 }
 0x19a   : > { %v832_v1 = vmax.f32 %v4397_v57, 0.0  ;;  %v4407_v2 = vadd.f32 %v787_v62, %v732_v51 }
 0x19b   : > { %v834_v4 = vmax.f32 %v4402_v61, 0.0 }
 0x19c   : > { %v4010_v3 = vpack.i.bf16 %v833_v58, %v832_v1  ;;  %v835_v5 = vmax.f32 %v4407_v2, 0.0 }
 0x19d   : > { %v4020_v13 = vpack.i.bf16 %v834_v4, %v831_v10 }
 0x19e   : > { %v4015_v11 = vpack.i.bf16 %v836_v6, %v835_v5  ;;  %4011 = vrot.lane.b32.xlu1 %v4010_v3, %s5598_s23 }
 0x1a0   : > { %4016 = vrot.lane.b32.xlu0 %v4015_v11, %s5598_s23 }
 0x1a2   : > { %4021 = vrot.lane.b32.xlu1 %v4020_v13, %s5598_s23  ;;  %s5637_s23 = smov 108  }
 0x210   : > { %v4012_v29 = vpop.permute.xlu1 %4011 }
 0x211   : > { %v4014_v31 = vunpack.i.h.bf16 %v4012_v29  ;;  %v4013_v32 = vunpack.i.l.bf16 %v4012_v29 }
 0x212   : > { %v4017_v34 = vpop.permute.xlu0 %4016 }
 0x213   : > { %v868_v36 = vmax.f32 %v833_v58, %v4014_v31  ;;  %v4019_v37 = vunpack.i.h.bf16 %v4017_v34  ;;  %v4018_v38 = vunpack.i.l.bf16 %v4017_v34  ;;  %v857_v39 = vsel %vm634_vm1, %v4013_v32, %v4014_v31 }
 0x214   : > { %v4022_v40 = vpop.permute.xlu1 %4021  ;;  %v867_v41 = vmax.f32 %v832_v1, %v857_v39 }
 0x215   : > { %v871_v42 = vmax.f32 %v836_v6, %v4019_v37  ;;  %v4024_v43 = vunpack.i.h.bf16 %v4022_v40  ;;  %v4023_v44 = vunpack.i.l.bf16 %v4022_v40  ;;  %v859_v45 = vsel %vm634_vm1, %v4018_v38, %v4019_v37 }
 0x216   : > { %v4025_v46 = vpack.i.bf16 %v868_v36, %v867_v41  ;;  %v870_v47 = vmax.f32 %v835_v5, %v859_v45 }
 0x217   : > { %v856_v48 = vsel %vm634_vm1, %v4023_v44, %v4013_v32  ;;  %v858_v49 = vsel %vm634_vm1, %v4024_v43, %v4018_v38 }
 0x218   : > { %4026 = vrot.lane.b32.xlu0 %v4025_v46, %s5600_s25  ;;  %v4030_v50 = vpack.i.bf16 %v871_v42, %v870_v47  ;;  %v866_v51 = vmax.f32 %v831_v10, %v856_v48  ;;  %v869_v52 = vmax.f32 %v834_v4, %v858_v49  ;;  %v4077_v46 = vld [vmem:[%s5579_s14] sm:$0xff]   ;;  %v4078_v49 = vld [vmem:[%s5579_s14 + $0x8] sm:$0xff]  }
 0x21a   : > { %4031 = vrot.lane.b32.xlu1 %v4030_v50, %s5600_s25  ;;  %v4035_v53 = vpack.i.bf16 %v869_v52, %v866_v51 }
 0x21c   : > { %4036 = vrot.lane.b32.xlu0 %v4035_v53, %s5600_s25  ;;  %v4079_v53 = vld [vmem:[%s5579_s14 + $0x10] sm:$0xff]   ;;  %s5641_s25 = smov 126  }
 0x28a   : > { %v4027_v54 = vpop.permute.xlu0 %4026 }
 0x28b   : > { %v4029_v55 = vunpack.i.h.bf16 %v4027_v54  ;;  %v4028_v56 = vunpack.i.l.bf16 %v4027_v54  ;;  %v4080_v54 = vld [vmem:[%s5579_s14 + $0x18] sm:$0xff]  }
 0x28c   : > { %v4032_v57 = vpop.permute.xlu1 %4031 }
 0x28d   : > { %v4034_v58 = vunpack.i.h.bf16 %v4032_v57  ;;  %v4033_v59 = vunpack.i.l.bf16 %v4032_v57  ;;  %v892_v60 = vsel %vm658_vm3, %v4028_v56, %v4029_v55  ;;  %v903_v62 = vmax.f32 %v868_v36, %v4029_v55  ;;  %v4081_v55 = vld [vmem:[%s5579_s14 + $0x20] ss:$0 sps:$4 sm:$0x77]  }
 0x28e   : > { %v4037_v1 = vpop.permute.xlu0 %4036  ;;  %v902_v4 = vmax.f32 %v867_v41, %v892_v60  ;;  %v4082_v60 = vld [vmem:[%s5580_s15] sm:$0xff]  }
 0x28f   : > { %v906_v63 = vmax.f32 %v871_v42, %v4034_v58  ;;  %v4039_v2 = vunpack.i.h.bf16 %v4037_v1  ;;  %v4038_v3 = vunpack.i.l.bf16 %v4037_v1  ;;  %v894_v61 = vsel %vm658_vm3, %v4033_v59, %v4034_v58 }
 0x290   : > { %v905_v5 = vmax.f32 %v870_v47, %v894_v61 }
 0x291   : > { %v909_v6 = vpack.c.bf16 %v906_v63, %v903_v62  ;;  %v893_v7 = vsel %vm658_vm3, %v4039_v2, %v4033_v59  ;;  %v891_v8 = vsel %vm658_vm3, %v4038_v3, %v4028_v56  ;;  %v1296_v56 = vsel %vm1294_vm13, 4294967295, %v4207_v24  ;;  %v4083_v63 = vld [vmem:[%s5580_s15 + $0x8] sm:$0xff]  }
 0x292   : > { %v904_v9 = vmax.f32 %v869_v52, %v893_v7  ;;  %v901_v10 = vmax.f32 %v866_v51, %v891_v8  ;;  %v908_v11 = vpack.c.bf16 %v905_v5, %v902_v4  ;;  %v1297_v57 = vsel %vm1295_vm14, %v1296_v56, 0 }
 0x293   : > { %3826 = vmatmul.mubr.msk.bf16.vlgmr.msra.gmra.mrb[4].mxu1 %vm1045_vm12, %v909_v6  ;;  %v1299_v58 = vand.u32 %v4081_v55, %v1297_v57  ;;  %vm1972_vm12 = vcmask 261120  }
 0x294   : > { %1088 = vmatprep.mubr.bf16.mxu0 %v908_v11  ;;  %v907_v12 = vpack.c.bf16 %v904_v9, %v901_v10  ;;  %v4084_v9 = vld [vmem:[%s5580_s15 + $0x10] ss:$0 sps:$4 sm:$0x77]  }
 0x295   : > { %v1368_v10 = vsel %vm1295_vm14, %v4084_v9, 0 }
 0x296   : > { %1089 = vmatmul.mubr.bf16.vlgmr.msra.gmra.mrb[4].mxu0 %v907_v12 }
 0x297   : > { %3839 = vmatprep.mubr.msk.bf16.mxu0 %vm4209_vm11, %v5609_v30  ;;  %3830 = vmatpush3.bf16.msra.mxu0 %v4077_v46  ;;  %v4103_v46 = vld [vmem:[%s5581_s16 + $0x4c] ss:$12 sps:$4 sm:$0xff]  }
 0x298   : > { %3831 = vmatprep.subr.bf16.mxu0 %v5609_v30 }
 0x29b   : > { %3832 = vmatpush3.bf16.msra.mxu0 %v4078_v49  ;;  %v4107_v49 = vld [vmem:[%s5581_s16 + $0x64] ss:$12 sps:$4 sm:$0xff]  }
 0x29c   : > { %3833 = vmatprep.subr.bf16.mxu0 %v5609_v30 }
 0x29f   : > { %3834 = vmatpush3.bf16.msra.mxu0 %v4079_v53  ;;  %v4110_v53 = vld [vmem:[%s5581_s16 + $0x68] ss:$12 sps:$4 sm:$0xff]  }
 0x2a0   : > { %3835 = vmatprep.subr.bf16.mxu0 %v5609_v30 }
 0x2a3   : > { %3836 = vmatpush3.bf16.msra.mxu0 %v4080_v54 }
 0x2a4   : > { %3837 = vmatprep.subr.bf16.mxu0 %v5609_v30 }
 0x2a7   : > { %3838 = vmatpush3.bf16.msra.mxu0 %v1299_v58 }
 0x2a8   : > { %1489 = vmatprep.subr.bf16.mxu0 %v5607_v0 }
 0x366   : > { %v1131_v13 = vpop.f32.mrb[4].mxu1 }
 0x367   : > { %v3827_v14 = vpop.f32.mrb[5].mxu1 }
 0x368   : > { %v1134_v15 = vpop.f32.mrb[6].mxu1 }
 0x369   : > { %v3723_v16 = vpop.f32.mrb[4].mxu0  ;;  %v3828_v17 = vpop.f32.mrb[7].mxu1 }
 0x36a   : > { %v3724_v18 = vpop.f32.mrb[5].mxu0 }
 0x36b   : > { %v3725_v19 = vadd.f32 %v3724_v18, %v3723_v16  ;;  %v3726_v20 = vpop.f32.mrb[6].mxu0 }
 0x36c   : > { %v3727_v21 = vpop.f32.mrb[7].mxu0 }
 0x36d   : > { %v1132_v22 = vadd.f32 %v3725_v19, %v1131_v13  ;;  %v3728_v23 = vadd.f32 %v3727_v21, %v3726_v20  ;;  %v1417_v21 = vld [vmem:[%s5643_s9 + $0x8] sm:$0xff] }
 0x36f   : > { %v1135_v25 = vadd.f32 %v3728_v23, %v1134_v15  ;;  %v4085_v23 = vld [vmem:[%s5644_s13 + $0x4] ss:$8 sps:$4 sm:$0xff]  }
 0x371   : > { %v1138_v26 = vpack.c.bf16 %v1135_v25, %v1132_v22  ;;  %v1416_v22 = vld [vmem:[%s5643_s9] sm:$0xff]  ;;  %v1419_v25 = vld [vmem:[%s5643_s9 + $0x18] sm:$0xff] }
 0x373   : > { %1147 = vrot.lane.b32.xlu0 %v1138_v26, %s5603_s24  ;;  %1144 = vrot.lane.b32.xlu1 %v1138_v26, %s5636_s2 }
 0x374   : > { %1191 = vmatpush1.bf16.msra.mxu1 %v1138_v26 }
 0x375   : > { %1192 = vmatprep.subr.bf16.mxu1 %v5607_v0 }
 0x377   : > { %1153 = vrot.lane.b32.xlu0 %v1138_v26, %s5602_s28  ;;  %1150 = vrot.lane.b32.xlu1 %v1138_v26, %s5605_s21  ;;  %s5639_s21 = sld [smem:[#allocation15_spill]]  ;;  %s5642_s28 = smov 117  }
 0x37b   : > { %1159 = vrot.lane.b32.xlu0 %v1138_v26, %s5637_s23  ;;  %1156 = vrot.lane.b32.xlu1 %v1138_v26, %s4212_s26 }
 0x37d   : > { %v4074_v29 = vld [vmem:[%s5639_s21 + $0x4] ss:$8 sps:$4 sm:$0xff]   ;;  %v4076_v39 = vld [vmem:[%s5639_s21] ss:$8 sps:$4 sm:$0xff]  }
 0x37e   : > { %3596 = vmatprep.mubr.msk.bf16.mxu1 %vm743_vm0, %v4074_v29 }
 0x37f   : > { %1165 = vrot.lane.b32.xlu0 %v1138_v26, %s4213_s1  ;;  %1162 = vrot.lane.b32.xlu1 %v1138_v26, %s4214_s29  ;;  %v1418_v26 = vld [vmem:[%s5643_s9 + $0x10] sm:$0xff] }
 0x383   : > { %1175 = vperm.xlu0 %4008, %v1142_v27   ;;  %1170 = vperm.xlu1 %4009, %v1141_v28   ;;  %v4100_v27 = vld [vmem:[%s5581_s16 + $0x8] ss:$12 sps:$4 sm:$0xff]  }
 0x3e5   : > { %v1145_v31 = vpop.permute.xlu1 %1144  ;;  %v1148_v32 = vpop.permute.xlu0 %1147 }
 0x3e6   : > { %1193 = vmatpush1.bf16.msra.mxu1 %v1145_v31 }
 0x3e7   : > { %1194 = vmatprep.subr.bf16.mxu1 %v5607_v0 }
 0x3e9   : > { %v1151_v33 = vpop.permute.xlu1 %1150  ;;  %v1154_v34 = vpop.permute.xlu0 %1153 }
 0x3ea   : > { %1195 = vmatpush1.bf16.msra.mxu1 %v1148_v32 }
 0x3eb   : > { %1196 = vmatprep.subr.bf16.mxu1 %v5607_v0 }
 0x3ed   : > { %v1157_v35 = vpop.permute.xlu1 %1156  ;;  %v1160_v36 = vpop.permute.xlu0 %1159 }
 0x3ee   : > { %1197 = vmatpush1.bf16.msra.mxu1 %v1151_v33 }
 0x3ef   : > { %1198 = vmatprep.subr.bf16.mxu1 %v5607_v0 }
 0x3f1   : > { %v1163_v37 = vpop.permute.xlu1 %1162  ;;  %v1166_v38 = vpop.permute.xlu0 %1165 }
 0x3f2   : > { %1199 = vmatpush1.bf16.msra.mxu1 %v1154_v34 }
 0x3f3   : > { %1200 = vmatprep.subr.bf16.mxu1 %v5607_v0 }
 0x3f6   : > { %1201 = vmatpush1.bf16.msra.mxu1 %v1157_v35 }
 0x3f7   : > { %1202 = vmatprep.subr.bf16.mxu1 %v5607_v0 }
 0x3fa   : > { %1203 = vmatpush1.bf16.msra.mxu1 %v1160_v36  ;;  %v4093_v36 = vld [vmem:[%s5581_s16 + $0x4] ss:$12 sps:$4 sm:$0xff]  }
 0x3fb   : > { %1204 = vmatprep.subr.bf16.mxu1 %v5607_v0 }
 0x3fe   : > { %1205 = vmatpush1.bf16.msra.mxu1 %v1163_v37 }
 0x3ff   : > { %1206 = vmatprep.subr.bf16.mxu1 %v5607_v0 }
 0x402   : > { %1207 = vmatpush1.bf16.msra.mxu1 %v1166_v38  ;;  %v1171_v40 = vpop.permute.xlu1 %1170  ;;  %v1176_v44 = vpop.permute.xlu0 %1175  ;;  %v4087_v38 = vld [vmem:[%s5644_s13] ss:$8 sps:$4 sm:$0xff]  }
 0x403   : > { %3843 = vmatprep.subr.bf16.mxu1 %v5609_v30 }
 0x405   : > { %1223 = vmatmul.mubr.bf16.vlgmr.msra.gmra.mrb[8].mxu1 %v4076_v39  ;;  %v4088_v39 = vld [vmem:[%s5644_s13 + $0x14] ss:$8 sps:$4 sm:$0xff]  }
 0x406   : > { %3849 = vmatprep.mubr.msk.bf16.mxu1 %vm4209_vm11, %v5609_v30  ;;  %3844 = vmatpush3.bf16.msra.mxu1 %v4082_v60 }
 0x407   : > { %3845 = vmatprep.subr.bf16.mxu1 %v5609_v30 }
 0x40a   : > { %3846 = vmatpush3.bf16.msra.mxu1 %v4083_v63 }
 0x40b   : > { %3847 = vmatprep.subr.bf16.mxu1 %v5609_v30 }
 0x40e   : > { %3848 = vmatpush3.bf16.msra.mxu1 %v1368_v10 }
 0x40f   : > { %3853 = vmatprep.subr.bf16.mxu1 %v4100_v27 }
 0x4d8   : > { %v1224_v41 = vpop.f32.mrb[8].mxu1 }
 0x4d9   : > { %v1225_v42 = vadd.f32 %v1224_v41, %v1171_v40  ;;  %v1226_v43 = vpop.f32.mrb[9].mxu1  ;;  %v4091_v40 = vld [vmem:[%s5581_s16] ss:$12 sps:$4 sm:$0xff]   ;;  %v4096_v41 = vld [vmem:[%s5581_s16 + $0x1c] ss:$12 sps:$4 sm:$0xff]  }
 0x4da   : > { %v1227_v45 = vpop.f32.mrb[10].mxu1  ;;  %v4099_v43 = vld [vmem:[%s5581_s16 + $0x34] ss:$12 sps:$4 sm:$0xff]  }
 0x4db   : > { %v1228_v47 = vadd.f32 %v1227_v45, %v1176_v44  ;;  %v1229_v48 = vpop.f32.mrb[11].mxu1  ;;  %v1231_v50 = vmax.f32 %v1225_v42, 0.0  ;;  %v4094_v42 = vld [vmem:[%s5581_s16 + $0x18] ss:$12 sps:$4 sm:$0xff]   ;;  %v4097_v45 = vld [vmem:[%s5581_s16 + $0x30] ss:$12 sps:$4 sm:$0xff]  }
 0x4dc   : > { %v4090_v44 = vld [vmem:[%s5644_s13 + $0x10] ss:$8 sps:$4 sm:$0xff]   ;;  %v4101_v48 = vld [vmem:[%s5581_s16 + $0x48] ss:$12 sps:$4 sm:$0xff]  }
 0x4dd   : > { %v1232_v51 = vmax.f32 %v1228_v47, 0.0  ;;  %v4104_v47 = vld [vmem:[%s5581_s16 + $0x20] ss:$12 sps:$4 sm:$0xff]  }
 0x4df   : > { %v4040_v52 = vpack.i.bf16 %v1232_v51, %v1231_v50 }
 0x4e1   : > { %4041 = vrot.lane.b32.xlu1 %v4040_v52, %s5636_s2  ;;  %v4109_v52 = vld [vmem:[%s5581_s16 + $0x50] ss:$12 sps:$4 sm:$0xff]  }
 0x553   : > { %v4042_v59 = vpop.permute.xlu1 %4041 }
 0x554   : > { %v4044_v62 = vunpack.i.h.bf16 %v4042_v59  ;;  %v4043_v1 = vunpack.i.l.bf16 %v4042_v59 }
 0x556   : > { %v1242_v2 = vmax.f32 %v1232_v51, %v4044_v62  ;;  %v1241_v24 = vmax.f32 %v1231_v50, %v4043_v1  ;;  %v4108_v50 = vld [vmem:[%s5581_s16 + $0x38] ss:$12 sps:$4 sm:$0xff]   ;;  %v4105_v51 = vld [vmem:[%s5581_s16 + $0x60] ss:$12 sps:$4 sm:$0xff]  }
 0x558   : > { %v4045_v3 = vpack.i.bf16 %v1242_v2, %v1241_v24 }
 0x55a   : > { %4046 = vrot.lane.b32.xlu0 %v4045_v3, %s5640_s27 }
 0x5cc   : > { %v4047_v61 = vpop.permute.xlu0 %4046 }
 0x5cd   : > { %v4049_v4 = vunpack.i.h.bf16 %v4047_v61  ;;  %v4048_v5 = vunpack.i.l.bf16 %v4047_v61 }
 0x5cf   : > { %v1252_v6 = vmax.f32 %v1242_v2, %v4049_v4  ;;  %v1251_v7 = vmax.f32 %v1241_v24, %v4048_v5 }
 0x5d1   : > { %v1253_v8 = vpack.c.bf16 %v1252_v6, %v1251_v7 }
 0x5d3   : > { %3840 = vmatmul.mubr.msk.bf16.vlgmr.msra.gmra.mrb[8].mxu0 %vm1290_vm15, %v1253_v8 }
 0x5d4   : > { %3611 = vmatprep.mubr.msk.bf16.mxu0 %vm743_vm0, %v4085_v23 }
 0x6a6   : > { %v1335_v11 = vpop.f32.mrb[8].mxu0 }
 0x6a7   : > { %v3841_v12 = vpop.f32.mrb[9].mxu0 }
 0x6a8   : > { %v1338_v13 = vpop.f32.mrb[10].mxu0 }
 0x6a9   : > { %v1342_v14 = vpack.c.bf16 %v1338_v13, %v1335_v11  ;;  %v3842_v15 = vpop.f32.mrb[11].mxu0 }
 0x6ab   : > { %3850 = vmatmul.mubr.msk.bf16.vlgmr.msra.gmra.mrb[12].mxu1 %vm1363_vm9, %v1342_v14 }
 0x6ac   : > { %3854 = vmatpush3.bf16.msra.mxu1 %v4100_v27 }
 0x6ad   : > { %3855 = vmatprep.subr.bf16.mxu1 %v4104_v47 }
 0x6b0   : > { %3856 = vmatpush3.bf16.msra.mxu1 %v4104_v47 }
 0x6b1   : > { %3857 = vmatprep.subr.bf16.mxu1 %v4108_v50 }
 0x6b4   : > { %3858 = vmatpush3.bf16.msra.mxu1 %v4108_v50 }
 0x6b5   : > { %3859 = vmatprep.subr.bf16.mxu1 %v4109_v52 }
 0x6b8   : > { %3860 = vmatpush3.bf16.msra.mxu1 %v4109_v52 }
 0x6b9   : > { %3861 = vmatprep.subr.bf16.mxu1 %v4110_v53 }
 0x6bc   : > { %3862 = vmatpush3.bf16.msra.mxu1 %v4110_v53 }
 0x77e   : > { %v1404_v16 = vpop.f32.mrb[12].mxu1 }
 0x77f   : > { %v3851_v17 = vpop.f32.mrb[13].mxu1 }
 0x780   : > { %v1407_v18 = vpop.f32.mrb[14].mxu1 }
 0x781   : > { %v1411_v19 = vpack.c.bf16 %v1407_v18, %v1404_v16  ;;  %v3852_v20 = vpop.f32.mrb[15].mxu1 }
 0x783   : > { %1424 = vrot.lane.b32.xlu0 %v1411_v19, %s5641_s25  ;;  %1421 = vrot.lane.b32.xlu1 %v1411_v19, %s5636_s2 }
 0x784   : > { %1490 = vmatpush1.bf16.msra.mxu0 %v1411_v19 }
 0x785   : > { %1491 = vmatprep.subr.bf16.mxu0 %v5607_v0 }
 0x787   : > { %1430 = vrot.lane.b32.xlu0 %v1411_v19, %s5642_s28  ;;  %1427 = vrot.lane.b32.xlu1 %v1411_v19, %s5640_s27  ;;  %s5645_s27 = smov 110  }
 0x78b   : > { %1436 = vrot.lane.b32.xlu0 %v1411_v19, %s5637_s23  ;;  %1433 = vrot.lane.b32.xlu1 %v1411_v19, %s4212_s26  ;;  %s5646_s26 = smov 109  }
 0x78f   : > { %1442 = vrot.lane.b32.xlu0 %v1411_v19, %s4213_s1  ;;  %1439 = vrot.lane.b32.xlu1 %v1411_v19, %s4214_s29  ;;  %s5647_s1 = smov 92   ;;  %s5648_s29 = smov 91  }
 0x793   : > { %1452 = vperm.xlu0 %4008, %v1417_v21   ;;  %1447 = vperm.xlu1 %4009, %v1416_v22  }
 0x797   : > { %1462 = vperm.xlu0 %4008, %v1419_v25   ;;  %1457 = vperm.xlu1 %4009, %v1418_v26  }
 0x7f5   : > { %v1422_v28 = vpop.permute.xlu1 %1421  ;;  %v1425_v29 = vpop.permute.xlu0 %1424 }
 0x7f6   : > { %1492 = vmatpush1.bf16.msra.mxu0 %v1422_v28 }
 0x7f7   : > { %1493 = vmatprep.subr.bf16.mxu0 %v5607_v0 }
 0x7f9   : > { %v1428_v31 = vpop.permute.xlu1 %1427  ;;  %v1431_v32 = vpop.permute.xlu0 %1430 }
 0x7fa   : > { %1494 = vmatpush1.bf16.msra.mxu0 %v1425_v29 }
 0x7fb   : > { %1495 = vmatprep.subr.bf16.mxu0 %v5607_v0 }
 0x7fd   : > { %v1434_v33 = vpop.permute.xlu1 %1433  ;;  %v1437_v34 = vpop.permute.xlu0 %1436 }
 0x7fe   : > { %1496 = vmatpush1.bf16.msra.mxu0 %v1428_v31 }
 0x7ff   : > { %1497 = vmatprep.subr.bf16.mxu0 %v5607_v0 }
 0x801   : > { %v1440_v35 = vpop.permute.xlu1 %1439  ;;  %v1443_v37 = vpop.permute.xlu0 %1442 }
 0x802   : > { %1498 = vmatpush1.bf16.msra.mxu0 %v1431_v32  ;;  %v4113_v32 = vld [vmem:[%s5649_s4 + $0x4] ss:$12 sps:$4 sm:$0xff]  }
 0x803   : > { %1499 = vmatprep.subr.bf16.mxu0 %v5607_v0 }
 0x806   : > { %1500 = vmatpush1.bf16.msra.mxu0 %v1434_v33  ;;  %v1763_v33 = vld [vmem:[%s5651_s10] sm:$0xff] }
 0x807   : > { %1501 = vmatprep.subr.bf16.mxu0 %v5607_v0 }
 0x80a   : > { %1502 = vmatpush1.bf16.msra.mxu0 %v1437_v34  ;;  %v1764_v34 = vld [vmem:[%s5651_s10 + $0x8] sm:$0xff] }
 0x80b   : > { %1503 = vmatprep.subr.bf16.mxu0 %v5607_v0 }
 0x80e   : > { %1504 = vmatpush1.bf16.msra.mxu0 %v1440_v35 }
 0x80f   : > { %1505 = vmatprep.subr.bf16.mxu0 %v5607_v0 }
 0x812   : > { %1506 = vmatpush1.bf16.msra.mxu0 %v1443_v37  ;;  %v1448_v54 = vpop.permute.xlu1 %1447  ;;  %v1453_v58 = vpop.permute.xlu0 %1452 }
 0x813   : > { %1651 = vmatprep.subr.bf16.mxu0 %v4093_v36 }
 0x815   : > { %1522 = vmatmul.mubr.bf16.vlgmr.msra.gmra.mrb[12].mxu0 %v4087_v38 }
 0x816   : > { %3612 = vmatprep.mubr.msk.bf16.mxu0 %vm743_vm0, %v4088_v39  ;;  %1652 = vmatpush1.bf16.msra.mxu0 %v4091_v40  ;;  %v1458_v24 = vpop.permute.xlu1 %1457  ;;  %v1463_v5 = vpop.permute.xlu0 %1462 }
 0x817   : > { %1653 = vmatprep.subr.bf16.mxu0 %v4096_v41 }
 0x81a   : > { %1654 = vmatpush1.bf16.msra.mxu0 %v4094_v42 }
 0x81b   : > { %1655 = vmatprep.subr.bf16.mxu0 %v4099_v43 }
 0x81d   : > { %1530 = vmatmul.mubr.bf16.gmra.mrb[16].mxu0 %v4090_v44 }
 0x81e   : > { %1656 = vmatpush1.bf16.msra.mxu0 %v4097_v45  ;;  %1683 = vmatprep.mubr.bf16.mxu0 %v5607_v0 }
 0x81f   : > { %1657 = vmatprep.subr.bf16.mxu0 %v4103_v46 }
 0x822   : > { %1658 = vmatpush1.bf16.msra.mxu0 %v4101_v48 }
 0x823   : > { %1659 = vmatprep.subr.bf16.mxu0 %v4107_v49 }
 0x826   : > { %1660 = vmatpush1.bf16.msra.mxu0 %v4105_v51 }
 0x8e8   : > { %v1523_v55 = vpop.f32.mrb[12].mxu0 }
 0x8e9   : > { %v1524_v56 = vadd.f32 %v1523_v55, %v1448_v54  ;;  %v1525_v57 = vpop.f32.mrb[13].mxu0 }
 0x8ea   : > { %v1526_v59 = vpop.f32.mrb[14].mxu0 }
 0x8eb   : > { %v1527_v60 = vadd.f32 %v1526_v59, %v1453_v58  ;;  %v1528_v62 = vpop.f32.mrb[15].mxu0  ;;  %v1538_v1 = vmax.f32 %v1524_v56, 0.0 }
 0x8ed   : > { %v1539_v63 = vmax.f32 %v1527_v60, 0.0 }
 0x8ef   : > { %v1542_v2 = vpack.c.bf16 %v1539_v63, %v1538_v1 }
 0x8f0   : > { %v1531_v3 = vpop.f32.mrb[16].mxu0 }
 0x8f1   : > { %v1532_v61 = vadd.f32 %v1531_v3, %v1458_v24  ;;  %v1533_v4 = vpop.f32.mrb[17].mxu0  ;;  %3628 = vmatmul.mubr.msk.bf16.vlgmr.msra.gmra.mrb[20].mxu0 %vm1644_vm10, %v1542_v2  ;;  %3863 = vmatprep.mubr.msk.bf16.mxu1 %vm1644_vm10, %v1542_v2 }
 0x8f2   : > { %v1534_v6 = vpop.f32.mrb[18].mxu0  ;;  %1693 = vmatprep.mubr.bf16.mxu0 %v5607_v0 }
 0x8f3   : > { %v1535_v7 = vadd.f32 %v1534_v6, %v1463_v5  ;;  %v1536_v8 = vpop.f32.mrb[19].mxu0  ;;  %v1540_v9 = vmax.f32 %v1532_v61, 0.0 }
 0x8f5   : > { %v1541_v10 = vmax.f32 %v1535_v7, 0.0 }
 0x8f7   : > { %v1543_v11 = vpack.c.bf16 %v1541_v10, %v1540_v9 }
 0x8f9   : > { %3629 = vmatmul.mubr.msk.bf16.gmra.mrb[24].mxu0 %vm1644_vm10, %v1543_v11  ;;  %3864 = vmatmul.mubr.msk.bf16.vlgmr.msra.gmra.mrb[16].mxu1 %vm1644_vm10, %v1543_v11 }
 0x8fa   : > { %2094 = vmatprep.mubr.bf16.mxu1 %v4113_v32  ;;  %2008 = vmatprep.mubr.bf16.mxu0 %v4113_v32 }
 0x9c4   : > { %v1685_v12 = vpop.f32.mrb[20].mxu0 }
 0x9c5   : > { %v1687_v13 = vpop.f32.mrb[21].mxu0 }
 0x9c6   : > { %v1689_v14 = vpop.f32.mrb[22].mxu0 }
 0x9c7   : > { %v4667_v15 = vpack.c.bf16 %v1689_v14, %v1685_v12  ;;  %v1691_v16 = vpop.f32.mrb[23].mxu0 }
 0x9c8   : > { %v1754_v17 = vpack.c.bf16 %v1691_v16, %v1687_v13 }
 0x9c9   : > { %1771 = vrot.lane.b32.xlu1 %v4667_v15, %s5636_s2 }
 0x9ca   : > { %1976 = vmatprep.subr.bf16.mxu0 %v1754_v17 }
 0x9cb   : > { %1977 = vmatpush1.bf16.msra.mxu0 %v4667_v15 }
 0x9cc   : > { %v1695_v18 = vpop.f32.mrb[24].mxu0  ;;  %v3865_v19 = vpop.f32.mrb[16].mxu1 }
 0x9cd   : > { %v1738_v20 = vpop.f32.mrb[17].mxu1  ;;  %1793 = vrot.lane.b32.xlu1 %v4667_v15, %s5641_s25  ;;  %v1697_v21 = vpop.f32.mrb[25].mxu0 }
 0x9ce   : > { %v1699_v22 = vpop.f32.mrb[26].mxu0  ;;  %v3866_v23 = vpop.f32.mrb[18].mxu1 }
 0x9cf   : > { %v1756_v25 = vpack.c.bf16 %v1699_v22, %v1695_v18  ;;  %v4674_v26 = vpack.c.bf16 %v3866_v23, %v3865_v19  ;;  %v1701_v27 = vpop.f32.mrb[27].mxu0  ;;  %v1741_v28 = vpop.f32.mrb[19].mxu1 }
 0x9d0   : > { %v1757_v29 = vpack.c.bf16 %v1701_v27, %v1697_v21  ;;  %v4676_v31 = vpack.c.bf16 %v1741_v28, %v1738_v20 }
 0x9d1   : > { %1815 = vrot.lane.b32.xlu1 %v4667_v15, %s5645_s27  ;;  %1777 = vrot.lane.b32.xlu0 %v1756_v25, %s5636_s2 }
 0x9d2   : > { %1978 = vmatprep.subr.bf16.mxu0 %v1757_v29 }
 0x9d3   : > { %1979 = vmatpush1.bf16.msra.mxu0 %v1756_v25 }
 0x9d5   : > { %1837 = vrot.lane.b32.xlu1 %v4667_v15, %s5646_s26  ;;  %1799 = vrot.lane.b32.xlu0 %v1756_v25, %s5641_s25 }
 0x9d9   : > { %1773 = vrot.lane.b32.xlu1 %v1754_v17, %s5636_s2  ;;  %1821 = vrot.lane.b32.xlu0 %v1756_v25, %s5645_s27 }
 0x9dd   : > { %1795 = vrot.lane.b32.xlu1 %v1754_v17, %s5641_s25  ;;  %1843 = vrot.lane.b32.xlu0 %v1756_v25, %s5646_s26 }
 0x9e1   : > { %1817 = vrot.lane.b32.xlu1 %v1754_v17, %s5645_s27  ;;  %1865 = vrot.lane.b32.xlu0 %v1756_v25, %s5637_s23 }
 0x9e5   : > { %1839 = vrot.lane.b32.xlu1 %v1754_v17, %s5646_s26  ;;  %1887 = vrot.lane.b32.xlu0 %v1756_v25, %s5647_s1 }
 0x9e9   : > { %1781 = vrot.lane.b32.xlu1 %v4674_v26, %s5636_s2  ;;  %1775 = vrot.lane.b32.xlu0 %v4676_v31, %s5636_s2 }
 0x9ed   : > { %1861 = vrot.lane.b32.xlu1 %v1754_v17, %s5637_s23  ;;  %1779 = vrot.lane.b32.xlu0 %v1757_v29, %s5636_s2 }
 0x9f1   : > { %1803 = vrot.lane.b32.xlu1 %v4674_v26, %s5641_s25  ;;  %1797 = vrot.lane.b32.xlu0 %v4676_v31, %s5641_s25 }
 0x9f5   : > { %1859 = vrot.lane.b32.xlu1 %v4667_v15, %s5637_s23  ;;  %1801 = vrot.lane.b32.xlu0 %v1757_v29, %s5641_s25 }
 0x9f9   : > { %1825 = vrot.lane.b32.xlu1 %v4674_v26, %s5645_s27  ;;  %1819 = vrot.lane.b32.xlu0 %v4676_v31, %s5645_s27 }
 0x9fd   : > { %1883 = vrot.lane.b32.xlu1 %v1754_v17, %s5647_s1  ;;  %1823 = vrot.lane.b32.xlu0 %v1757_v29, %s5645_s27 }
 0xa01   : > { %1847 = vrot.lane.b32.xlu1 %v4674_v26, %s5646_s26  ;;  %1841 = vrot.lane.b32.xlu0 %v4676_v31, %s5646_s26 }
 0xa05   : > { %1881 = vrot.lane.b32.xlu1 %v4667_v15, %s5647_s1  ;;  %1845 = vrot.lane.b32.xlu0 %v1757_v29, %s5646_s26 }
 0xa09   : > { %1869 = vrot.lane.b32.xlu1 %v4674_v26, %s5637_s23  ;;  %1863 = vrot.lane.b32.xlu0 %v4676_v31, %s5637_s23 }
 0xa0d   : > { %1905 = vrot.lane.b32.xlu1 %v1754_v17, %s5648_s29  ;;  %1867 = vrot.lane.b32.xlu0 %v1757_v29, %s5637_s23 }
 0xa11   : > { %1891 = vrot.lane.b32.xlu1 %v4674_v26, %s5647_s1  ;;  %1885 = vrot.lane.b32.xlu0 %v4676_v31, %s5647_s1 }
 0xa15   : > { %1903 = vrot.lane.b32.xlu1 %v4667_v15, %s5648_s29  ;;  %1889 = vrot.lane.b32.xlu0 %v1757_v29, %s5647_s1 }
 0xa19   : > { %1913 = vrot.lane.b32.xlu1 %v4674_v26, %s5648_s29  ;;  %1907 = vrot.lane.b32.xlu0 %v4676_v31, %s5648_s29 }
 0xa1d   : > { %1927 = vrot.lane.b32.xlu1 %v1754_v17, %s5650_s8  ;;  %1911 = vrot.lane.b32.xlu0 %v1757_v29, %s5648_s29 }
 0xa21   : > { %1925 = vrot.lane.b32.xlu1 %v4667_v15, %s5650_s8  ;;  %1909 = vrot.lane.b32.xlu0 %v1756_v25, %s5648_s29 }
 0xa25   : > { %1935 = vrot.lane.b32.xlu1 %v4674_v26, %s5650_s8  ;;  %1929 = vrot.lane.b32.xlu0 %v4676_v31, %s5650_s8 }
 0xa29   : > { %1949 = vperm.xlu1 %4009, %v1763_v33   ;;  %1933 = vrot.lane.b32.xlu0 %v1757_v29, %s5650_s8 }
 0xa2d   : > { %1931 = vrot.lane.b32.xlu0 %v1756_v25, %s5650_s8 }
 0xa31   : > { %1954 = vperm.xlu0 %4008, %v1764_v34  }
 0xa3b   : > { %v1772_v35 = vpop.permute.xlu1 %1771 }
 0xa3f   : > { %v1794_v36 = vpop.permute.xlu1 %1793 }
 0xa43   : > { %v1816_v37 = vpop.permute.xlu1 %1815  ;;  %v1778_v38 = vpop.permute.xlu0 %1777 }
 0xa47   : > { %v1838_v39 = vpop.permute.xlu1 %1837  ;;  %v1800_v40 = vpop.permute.xlu0 %1799 }
 0xa4b   : > { %v1774_v41 = vpop.permute.xlu1 %1773  ;;  %v1822_v42 = vpop.permute.xlu0 %1821 }
 0xa4c   : > { %v1783_v52 = vsel %vm634_vm1, %v1772_v35, %v1774_v41 }
 0xa4f   : > { %v1796_v43 = vpop.permute.xlu1 %1795  ;;  %v1844_v44 = vpop.permute.xlu0 %1843 }
 0xa50   : > { %v1805_v60 = vsel %vm646_vm2, %v1794_v36, %v1796_v43 }
 0xa53   : > { %v1818_v45 = vpop.permute.xlu1 %1817  ;;  %v4755_v46 = vpop.permute.xlu0 %1865 }
 0xa54   : > { %v1827_v4 = vsel %vm658_vm3, %v1816_v37, %v1818_v45 }
 0xa57   : > { %v1840_v47 = vpop.permute.xlu1 %1839  ;;  %v4757_v48 = vpop.permute.xlu0 %1887 }
 0xa58   : > { %v1849_v12 = vsel %vm670_vm4, %v1838_v39, %v1840_v47 }
 0xa5b   : > { %v4759_v49 = vpop.permute.xlu1 %1781  ;;  %v1776_v50 = vpop.permute.xlu0 %1775 }
 0xa5c   : > { %v1784_v51 = vsel %vm634_vm1, %v1774_v41, %v1776_v50 }
 0xa5d   : > { %1980 = vmatprep.subr.bf16.mxu0 %v1784_v51 }
 0xa5e   : > { %1981 = vmatpush1.bf16.msra.mxu0 %v1783_v52  ;;  %v4114_v52 = vld [vmem:[%s5649_s4 + $0x8] ss:$12 sps:$4 sm:$0xff]  }
 0xa5f   : > { %v1862_v53 = vpop.permute.xlu1 %1861  ;;  %v1780_v54 = vpop.permute.xlu0 %1779 }
 0xa60   : > { %v1785_v55 = vsel %vm634_vm1, %v1778_v38, %v1780_v54  ;;  %v1786_v56 = vsel %vm634_vm1, %v1780_v54, %v4759_v49  ;;  %v4829_v54 = vld [vmem:[%s5582_s17] ss:$12 sps:$4 sm:$0xff]  }
 0xa61   : > { %1982 = vmatprep.subr.bf16.mxu0 %v1786_v56  ;;  %v4840_v56 = vld [vmem:[%s5582_s17 + $0xc8] ss:$12 sps:$4 sm:$0xff]  }
 0xa62   : > { %1983 = vmatpush1.bf16.msra.mxu0 %v1785_v55  ;;  %v4835_v55 = vld [vmem:[%s5582_s17 + $0x1c] ss:$12 sps:$4 sm:$0xff]  }
 0xa63   : > { %v4766_v57 = vpop.permute.xlu1 %1803  ;;  %v1798_v58 = vpop.permute.xlu0 %1797 }
 0xa64   : > { %v1806_v59 = vsel %vm646_vm2, %v1796_v43, %v1798_v58 }
 0xa65   : > { %1984 = vmatprep.subr.bf16.mxu0 %v1806_v59  ;;  %v4848_v59 = vld [vmem:[%s5582_s17 + $0x18] ss:$12 sps:$4 sm:$0xff]  }
 0xa66   : > { %1985 = vmatpush1.bf16.msra.mxu0 %v1805_v60  ;;  %v4854_v60 = vld [vmem:[%s5582_s17 + $0x34] ss:$12 sps:$4 sm:$0xff]  }
 0xa67   : > { %v1860_v62 = vpop.permute.xlu1 %1859  ;;  %v1802_v1 = vpop.permute.xlu0 %1801 }
 0xa68   : > { %v1807_v63 = vsel %vm646_vm2, %v1800_v40, %v1802_v1  ;;  %v1808_v2 = vsel %vm646_vm2, %v1802_v1, %v4766_v57  ;;  %v1871_v20 = vsel %vm682_vm5, %v1860_v62, %v1862_v53  ;;  %v4859_v62 = vld [vmem:[%s5582_s17 + $0x8] ss:$12 sps:$4 sm:$0xff]   ;;  %v4865_v1 = vld [vmem:[%s5582_s17 + $0xe0] ss:$12 sps:$4 sm:$0xff]  }
 0xa69   : > { %1986 = vmatprep.subr.bf16.mxu0 %v1808_v2  ;;  %v4878_v2 = vld [vmem:[%s5582_s17 + $0x4c] ss:$12 sps:$4 sm:$0xff]  }
 0xa6a   : > { %1987 = vmatpush1.bf16.msra.mxu0 %v1807_v63  ;;  %v4872_v63 = vld [vmem:[%s5582_s17 + $0x30] ss:$12 sps:$4 sm:$0xff]  }
 0xa6b   : > { %v4773_v24 = vpop.permute.xlu1 %1825  ;;  %v4775_v3 = vpop.permute.xlu0 %1819 }
 0xa6c   : > { %v1828_v61 = vsel %vm658_vm3, %v1818_v45, %v4775_v3 }
 0xa6d   : > { %1988 = vmatprep.subr.bf16.mxu0 %v1828_v61  ;;  %v4898_v61 = vld [vmem:[%s5582_s17 + $0x60] ss:$12 sps:$4 sm:$0xff]  }
 0xa6e   : > { %1989 = vmatpush1.bf16.msra.mxu0 %v1827_v4  ;;  %v4904_v4 = vld [vmem:[%s5582_s17 + $0x7c] ss:$12 sps:$4 sm:$0xff]  }
 0xa6f   : > { %v1884_v5 = vpop.permute.xlu1 %1883  ;;  %v1824_v6 = vpop.permute.xlu0 %1823 }
 0xa70   : > { %v1829_v7 = vsel %vm658_vm3, %v1822_v42, %v1824_v6  ;;  %v1830_v8 = vsel %vm658_vm3, %v1824_v6, %v4773_v24  ;;  %v4111_v42 = vld [vmem:[%s5649_s4] ss:$12 sps:$4 sm:$0xff]  }
 0xa71   : > { %1990 = vmatprep.subr.bf16.mxu0 %v1830_v8  ;;  %v4916_v6 = vld [vmem:[%s5582_s17 + $0x94] ss:$12 sps:$4 sm:$0xff]   ;;  %v4928_v8 = vld [vmem:[%s5582_s17 + $0xac] ss:$12 sps:$4 sm:$0xff]  }
 0xa72   : > { %1991 = vmatpush1.bf16.msra.mxu0 %v1829_v7  ;;  %v4922_v7 = vld [vmem:[%s5582_s17 + $0x90] ss:$12 sps:$4 sm:$0xff]  }
 0xa73   : > { %v1848_v9 = vpop.permute.xlu1 %1847  ;;  %v1842_v10 = vpop.permute.xlu0 %1841 }
 0xa74   : > { %3748 = vmatprep.subr.bf16.mxu1 %v1842_v10  ;;  %v1850_v11 = vsel %vm670_vm4, %v1840_v47, %v1842_v10  ;;  %v4940_v10 = vld [vmem:[%s5582_s17 + $0xc4] ss:$12 sps:$4 sm:$0xff]  }
 0xa75   : > { %1992 = vmatprep.subr.bf16.mxu0 %v1850_v11  ;;  %3749 = vmatpush3.bf16.msra.mxu1 %v4676_v31  ;;  %v4946_v11 = vld [vmem:[%s5582_s17 + $0xc0] ss:$12 sps:$4 sm:$0xff]  }
 0xa76   : > { %1993 = vmatpush1.bf16.msra.mxu0 %v1849_v12  ;;  %3750 = vmatprep.subr.bf16.mxu1 %v1848_v9  ;;  %v4952_v12 = vld [vmem:[%s5582_s17 + $0xdc] ss:$12 sps:$4 sm:$0xff]  }
 0xa77   : > { %v1882_v13 = vpop.permute.xlu1 %1881  ;;  %v1846_v14 = vpop.permute.xlu0 %1845 }
 0xa78   : > { %v1851_v15 = vsel %vm670_vm4, %v1844_v44, %v1846_v14  ;;  %v1852_v16 = vsel %vm670_vm4, %v1846_v14, %v1848_v9  ;;  %v1893_v29 = vsel %vm694_vm6, %v1882_v13, %v1884_v5  ;;  %v4934_v9 = vld [vmem:[%s5582_s17 + $0xa8] ss:$12 sps:$4 sm:$0xff]   ;;  %v4958_v13 = vld [vmem:[%s5582_s17 + $0xd8] ss:$12 sps:$4 sm:$0xff]   ;;  %v4965_v14 = vld [vmem:[%s5582_s17 + $0x20] ss:$12 sps:$4 sm:$0xff]  }
 0xa79   : > { %1994 = vmatprep.subr.bf16.mxu0 %v1852_v16  ;;  %3751 = vmatpush3.bf16.msra.mxu1 %v4674_v26  ;;  %v4976_v16 = vld [vmem:[%s5582_s17 + $0xf8] ss:$12 sps:$4 sm:$0xff]  }
 0xa7a   : > { %1995 = vmatpush1.bf16.msra.mxu0 %v1851_v15  ;;  %v4971_v15 = vld [vmem:[%s5582_s17 + $0xf4] ss:$12 sps:$4 sm:$0xff]  }
 0xa7b   : > { %v1870_v17 = vpop.permute.xlu1 %1869  ;;  %v1864_v18 = vpop.permute.xlu0 %1863 }
 0xa7c   : > { %3752 = vmatprep.subr.bf16.mxu1 %v1864_v18  ;;  %v1872_v19 = vsel %vm682_vm5, %v1862_v53, %v1864_v18  ;;  %v4986_v18 = vld [vmem:[%s5582_s17 + $0x38] ss:$12 sps:$4 sm:$0xff]  }
 0xa7d   : > { %1996 = vmatprep.subr.bf16.mxu0 %v1872_v19  ;;  %3753 = vmatpush3.bf16.msra.mxu1 %v1776_v50  ;;  %v4993_v19 = vld [vmem:[%s5582_s17 + $0x10c] ss:$12 sps:$4 sm:$0xff]  }
 0xa7e   : > { %1997 = vmatpush1.bf16.msra.mxu0 %v1871_v20  ;;  %3754 = vmatprep.subr.bf16.mxu1 %v1870_v17  ;;  %v4998_v20 = vld [vmem:[%s5582_s17 + $0x110] ss:$12 sps:$4 sm:$0xff]  }
 0xa7f   : > { %v1906_v21 = vpop.permute.xlu1 %1905  ;;  %v1868_v22 = vpop.permute.xlu0 %1867 }
 0xa80   : > { %v1873_v23 = vsel %vm682_vm5, %v4755_v46, %v1868_v22  ;;  %v1874_v25 = vsel %vm682_vm5, %v1868_v22, %v1870_v17  ;;  %v4981_v17 = vld [vmem:[%s5582_s17 + $0xf0] ss:$12 sps:$4 sm:$0xff]  }
 0xa81   : > { %1998 = vmatprep.subr.bf16.mxu0 %v1874_v25  ;;  %3755 = vmatpush3.bf16.msra.mxu1 %v4759_v49  ;;  %v4819_v49 = vld [vmem:[%s5582_s17 + $0x4] ss:$12 sps:$4 sm:$0xff]   ;;  %v5024_v25 = vld [vmem:[%s5582_s17 + $0x128] ss:$12 sps:$4 sm:$0xff]  }
 0xa82   : > { %1999 = vmatpush1.bf16.msra.mxu0 %v1873_v23  ;;  %v5010_v22 = vld [vmem:[%s5582_s17 + $0x50] ss:$12 sps:$4 sm:$0xff]  }
 0xa83   : > { %v1892_v26 = vpop.permute.xlu1 %1891  ;;  %v1886_v27 = vpop.permute.xlu0 %1885  ;;  %v5019_v23 = vld [vmem:[%s5582_s17 + $0x124] ss:$12 sps:$4 sm:$0xff]  }
 0xa84   : > { %3756 = vmatprep.subr.bf16.mxu1 %v1886_v27  ;;  %v1894_v28 = vsel %vm694_vm6, %v1884_v5, %v1886_v27  ;;  %v4910_v5 = vld [vmem:[%s5582_s17 + $0x78] ss:$12 sps:$4 sm:$0xff]   ;;  %5653 = vst [vmem:[#allocation3_spill] sm:$0xff] %v5019_v23  ;;  %v5034_v27 = vld [vmem:[%s5582_s17 + $0x68] ss:$12 sps:$4 sm:$0xff]  }
 0xa85   : > { %2000 = vmatprep.subr.bf16.mxu0 %v1894_v28  ;;  %3757 = vmatpush3.bf16.msra.mxu1 %v1798_v58  ;;  %v5043_v28 = vld [vmem:[%s5582_s17 + $0x13c] ss:$12 sps:$4 sm:$0xff]  }
 0xa86   : > { %2001 = vmatpush1.bf16.msra.mxu0 %v1893_v29  ;;  %3758 = vmatprep.subr.bf16.mxu1 %v1892_v26  ;;  %5655 = vst [vmem:[#allocation5_spill] sm:$0xff] %v5043_v28  ;;  %v5048_v29 = vld [vmem:[%s5582_s17 + $0x140] ss:$12 sps:$4 sm:$0xff]  }
 0xa87   : > { %v1904_v31 = vpop.permute.xlu1 %1903  ;;  %v1890_v32 = vpop.permute.xlu0 %1889 }
 0xa88   : > { %v1895_v33 = vsel %vm694_vm6, %v4757_v48, %v1890_v32  ;;  %v1896_v34 = vsel %vm694_vm6, %v1890_v32, %v1892_v26  ;;  %v1915_v38 = vsel %vm706_vm7, %v1904_v31, %v1906_v21  ;;  %v5029_v26 = vld [vmem:[%s5582_s17 + $0x120] ss:$12 sps:$4 sm:$0xff]   ;;  %v5053_v31 = vld [vmem:[%s5582_s17 + $0x138] ss:$12 sps:$4 sm:$0xff]  }
 0xa89   : > { %2002 = vmatprep.subr.bf16.mxu0 %v1896_v34  ;;  %3759 = vmatpush3.bf16.msra.mxu1 %v4766_v57  ;;  %5654 = vst [vmem:[#allocation4_spill] sm:$0xff] %v5029_v26  ;;  %5656 = vst [vmem:[#allocation6_spill] sm:$0xff] %v5053_v31  ;;  %v5058_v32 = vld [vmem:[%s5582_s17 + $0x80] ss:$12 sps:$4 sm:$0xff]   ;;  %v5072_v34 = vld [vmem:[%s5582_s17 + $0x158] ss:$12 sps:$4 sm:$0xff]  }
 0xa8a   : > { %2003 = vmatpush1.bf16.msra.mxu0 %v1895_v33  ;;  %v5067_v33 = vld [vmem:[%s5582_s17 + $0x154] ss:$12 sps:$4 sm:$0xff]  }
 0xa8b   : > { %v1914_v35 = vpop.permute.xlu1 %1913  ;;  %v1908_v36 = vpop.permute.xlu0 %1907  ;;  %5657 = vst [vmem:[#allocation7_spill] sm:$0xff] %v5067_v33 }
 0xa8c   : > { %3760 = vmatprep.subr.bf16.mxu1 %v1908_v36  ;;  %v1916_v37 = vsel %vm706_vm7, %v1906_v21, %v1908_v36  ;;  %v5005_v21 = vld [vmem:[%s5582_s17 + $0x108] ss:$12 sps:$4 sm:$0xff]   ;;  %v5082_v36 = vld [vmem:[%s5582_s17 + $0x98] ss:$12 sps:$4 sm:$0xff]  }
 0xa8d   : > { %2004 = vmatprep.subr.bf16.mxu0 %v1916_v37  ;;  %3761 = vmatpush3.bf16.msra.mxu1 %v4775_v3  ;;  %v4892_v3 = vld [vmem:[%s5582_s17 + $0x64] ss:$12 sps:$4 sm:$0xff]   ;;  %5652 = vst [vmem:[#allocation2_spill] sm:$0xff] %v5005_v21  ;;  %v5091_v37 = vld [vmem:[%s5582_s17 + $0x16c] ss:$12 sps:$4 sm:$0xff]  }
 0xa8e   : > { %2005 = vmatpush1.bf16.msra.mxu0 %v1915_v38  ;;  %3762 = vmatprep.subr.bf16.mxu1 %v1914_v35  ;;  %5659 = vst [vmem:[#allocation9_spill] sm:$0xff] %v5091_v37  ;;  %v5096_v38 = vld [vmem:[%s5582_s17 + $0x170] ss:$12 sps:$4 sm:$0xff]  }
 0xa8f   : > { %v1928_v39 = vpop.permute.xlu1 %1927  ;;  %v1912_v40 = vpop.permute.xlu0 %1911 }
 0xa90   : > { %v1918_v41 = vsel %vm706_vm7, %v1912_v40, %v1914_v35  ;;  %v5077_v35 = vld [vmem:[%s5582_s17 + $0x150] ss:$12 sps:$4 sm:$0xff]  }
 0xa91   : > { %2006 = vmatprep.subr.bf16.mxu0 %v1918_v41  ;;  %3763 = vmatpush3.bf16.msra.mxu1 %v4773_v24  ;;  %v4886_v24 = vld [vmem:[%s5582_s17 + $0x48] ss:$12 sps:$4 sm:$0xff]   ;;  %5658 = vst [vmem:[#allocation8_spill] sm:$0xff] %v5077_v35  ;;  %v5116_v41 = vld [vmem:[%s5582_s17 + $0x184] ss:$12 sps:$4 sm:$0xff]  }
 0xa92   : > { %3867 = vmatprep.subr.bf16.mxu1 %v5609_v30  ;;  %5661 = vst [vmem:[#allocation11_spill] sm:$0xff] %v5116_v41 }
 0xa93   : > { %v1910_v43 = vpop.permute.xlu0 %1909  ;;  %v1926_v45 = vpop.permute.xlu1 %1925 }
 0xa94   : > { %v1917_v44 = vsel %vm706_vm7, %v1910_v43, %v1912_v40  ;;  %2095 = vmatmul.mubr.bf16.vlgmr.msra.gmra.mrb[20].mxu1 %v4111_v42  ;;  %v1937_v48 = vsel %vm718_vm8, %v1926_v45, %v1928_v39  ;;  %v5106_v40 = vld [vmem:[%s5582_s17 + $0xb0] ss:$12 sps:$4 sm:$0xff]  }
 0xa95   : > { %2007 = vmatpush1.bf16.msra.mxu0 %v1917_v44  ;;  %3871 = vmatprep.mubr.msk.bf16.mxu1 %vm4209_vm11, %v5609_v30 }
 0xa97   : > { %v1930_v46 = vpop.permute.xlu0 %1929  ;;  %v1936_v50 = vpop.permute.xlu1 %1935 }
 0xa98   : > { %2009 = vmatmul.mubr.bf16.vlgmr.msra.gmra.mrb[28].mxu0 %v4111_v42  ;;  %3868 = vmatpush3.bf16.msra.mxu1 %v1930_v46  ;;  %v1938_v47 = vsel %vm718_vm8, %v1928_v39, %v1930_v46  ;;  %v5101_v39 = vld [vmem:[%s5582_s17 + $0x168] ss:$12 sps:$4 sm:$0xff]  }
 0xa99   : > { %2019 = vmatprep.subr.bf16.mxu0 %v1938_v47  ;;  %3869 = vmatprep.subr.bf16.mxu1 %v5609_v30  ;;  %5660 = vst [vmem:[#allocation10_spill] sm:$0xff] %v5101_v39 }
 0xa9a   : > { %2020 = vmatpush1.bf16.msra.mxu0 %v1937_v48  ;;  %2051 = vmatprep.mubr.bf16.mxu0 %v5607_v0 }
 0xa9b   : > { %v1934_v51 = vpop.permute.xlu0 %1933 }
 0xa9c   : > { %3870 = vmatpush3.bf16.msra.mxu1 %v1936_v50  ;;  %v1940_v53 = vsel %vm718_vm8, %v1934_v51, %v1936_v50 }
 0xa9d   : > { %2021 = vmatprep.subr.bf16.mxu0 %v1940_v53  ;;  %2516 = vmatprep.subr.bf16.mxu1 %v4819_v49 }
 0xa9f   : > { %3872 = vmatmul.mubr.msk.bf16.vlgmr.msra.gmra.mrb[24].mxu1 %vm1972_vm12, %v4114_v52  ;;  %v1932_v57 = vpop.permute.xlu0 %1931 }
 0xaa0   : > { %v1939_v58 = vsel %vm718_vm8, %v1932_v57, %v1934_v51  ;;  %2517 = vmatpush1.bf16.msra.mxu1 %v4829_v54 }
 0xaa1   : > { %2022 = vmatpush1.bf16.msra.mxu0 %v1939_v58  ;;  %2518 = vmatprep.subr.bf16.mxu1 %v4835_v55 }
 0xaa2   : > { %3773 = vmatprep.subr.bf16.mxu0 %v4840_v56 }
 0xaa4   : > { %3635 = vmatmul.mubr.msk.bf16.vlgmr.msra.gmra.mrb[28].mxu0 %vm1972_vm12, %v4114_v52  ;;  %2519 = vmatpush1.bf16.msra.mxu1 %v4848_v59 }
 0xaa5   : > { %2520 = vmatprep.subr.bf16.mxu1 %v4854_v60  ;;  %3774 = vmatpush3.bf16.msra.mxu0 %v4859_v62 }
 0xaa6   : > { %3775 = vmatprep.subr.bf16.mxu0 %v4865_v1 }
 0xaa8   : > { %2521 = vmatpush1.bf16.msra.mxu1 %v4872_v63  ;;  %v1950_v48 = vpop.permute.xlu1 %1949 }
 0xaa9   : > { %2522 = vmatprep.subr.bf16.mxu1 %v4878_v2  ;;  %3776 = vmatpush3.bf16.msra.mxu0 %v4965_v14 }
 0xaaa   : > { %3777 = vmatprep.subr.bf16.mxu0 %v4976_v16 }
 0xaac   : > { %2523 = vmatpush1.bf16.msra.mxu1 %v4886_v24 }
 0xaad   : > { %2524 = vmatprep.subr.bf16.mxu1 %v4892_v3  ;;  %3778 = vmatpush3.bf16.msra.mxu0 %v4986_v18 }
 0xaae   : > { %3779 = vmatprep.subr.bf16.mxu0 %v4998_v20 }
 0xab0   : > { %2525 = vmatpush1.bf16.msra.mxu1 %v4898_v61  ;;  %v1955_v51 = vpop.permute.xlu0 %1954 }
 0xab1   : > { %2526 = vmatprep.subr.bf16.mxu1 %v4904_v4  ;;  %3780 = vmatpush3.bf16.msra.mxu0 %v5010_v22 }
 0xab2   : > { %3781 = vmatprep.subr.bf16.mxu0 %v5024_v25 }
 0xab4   : > { %2527 = vmatpush1.bf16.msra.mxu1 %v4910_v5 }
 0xab5   : > { %2528 = vmatprep.subr.bf16.mxu1 %v4916_v6  ;;  %3782 = vmatpush3.bf16.msra.mxu0 %v5034_v27 }
 0xab6   : > { %3783 = vmatprep.subr.bf16.mxu0 %v5048_v29 }
 0xab8   : > { %2529 = vmatpush1.bf16.msra.mxu1 %v4922_v7 }
 0xab9   : > { %2530 = vmatprep.subr.bf16.mxu1 %v4928_v8  ;;  %3784 = vmatpush3.bf16.msra.mxu0 %v5058_v32 }
 0xaba   : > { %3785 = vmatprep.subr.bf16.mxu0 %v5072_v34 }
 0xabc   : > { %2531 = vmatpush1.bf16.msra.mxu1 %v4934_v9 }
 0xabd   : > { %2532 = vmatprep.subr.bf16.mxu1 %v4940_v10  ;;  %3786 = vmatpush3.bf16.msra.mxu0 %v5082_v36 }
 0xabe   : > { %3787 = vmatprep.subr.bf16.mxu0 %v5096_v38 }
 0xac0   : > { %2533 = vmatpush1.bf16.msra.mxu1 %v4946_v11 }
 0xac1   : > { %2534 = vmatprep.subr.bf16.mxu1 %v4952_v12  ;;  %3788 = vmatpush3.bf16.msra.mxu0 %v5106_v40 }
 0xac2   : > { %3875 = vmatprep.subr.bf16.mxu0 %v5609_v30 }
 0xac4   : > { %2535 = vmatpush1.bf16.msra.mxu1 %v4958_v13 }
 0xac5   : > { %2536 = vmatprep.subr.bf16.mxu1 %v4971_v15 }
 0xac8   : > { %2537 = vmatpush1.bf16.msra.mxu1 %v4981_v17 }
 0xac9   : > { %2538 = vmatprep.subr.bf16.mxu1 %v4993_v19 }
 0xacc   : > { %2539 = vmatpush1.bf16.msra.mxu1 %v5005_v21 }
 0xacd   : > { %2540 = vmatprep.subr.bf16.mxu1 %v5019_v23 }
 0xad0   : > { %2541 = vmatpush1.bf16.msra.mxu1 %v5029_v26 }
 0xad1   : > { %2542 = vmatprep.subr.bf16.mxu1 %v5043_v28 }
 0xad4   : > { %2543 = vmatpush1.bf16.msra.mxu1 %v5053_v31 }
 0xad5   : > { %2544 = vmatprep.subr.bf16.mxu1 %v5067_v33 }
 0xad8   : > { %2545 = vmatpush1.bf16.msra.mxu1 %v5077_v35 }
 0xad9   : > { %2546 = vmatprep.subr.bf16.mxu1 %v5091_v37 }
 0xadc   : > { %2547 = vmatpush1.bf16.msra.mxu1 %v5101_v39 }
 0xadd   : > { %2559 = vmatprep.subr.bf16.mxu1 %v5116_v41 }
 0xb67   : > { %v3764_v42 = vpop.f32.mrb[20].mxu1 }
 0xb68   : > { %v3765_v43 = vpop.f32.mrb[21].mxu1 }
 0xb69   : > { %v3766_v44 = vadd.f32 %v3765_v43, %v3764_v42  ;;  %v3767_v45 = vpop.f32.mrb[22].mxu1 }
 0xb6a   : > { %v3768_v46 = vpop.f32.mrb[23].mxu1 }
 0xb6b   : > { %v3769_v47 = vadd.f32 %v3768_v46, %v3767_v45  ;;  %v2097_v50 = vadd.f32 %v3766_v44, %v1950_v48 }
 0xb6d   : > { %v2100_v58 = vadd.f32 %v3769_v47, %v1955_v51 }
 0xb72   : > { %v2137_v52 = vpop.f32.mrb[24].mxu1 }
 0xb73   : > { %v2138_v53 = vadd.f32 %v2137_v52, %v2097_v50  ;;  %v3873_v57 = vpop.f32.mrb[25].mxu1 }
 0xb74   : > { %v2140_v0 = vpop.f32.mrb[26].mxu1 }
 0xb75   : > { %v2141_v30 = vadd.f32 %v2140_v0, %v2100_v58  ;;  %v3874_v39 = vpop.f32.mrb[27].mxu1  ;;  %v2146_v37 = vmax.f32 %v2138_v53, 0.0  ;;  %v5122_v0 = vld [vmem:[%s5582_s17 + $0x188] ss:$12 sps:$4 sm:$0xff]  }
 0xb77   : > { %v2149_v35 = vmax.f32 %v2141_v30, 0.0  ;;  %v2053_v33 = vpop.f32.mrb[28].mxu0  ;;  %v5127_v30 = vld [vmem:[%s5582_s17 + $0x180] ss:$12 sps:$4 sm:$0xff]  }
 0xb78   : > { %v3963_v41 = vadd.f32 %v2053_v33, %v1950_v48  ;;  %v2055_v31 = vpop.f32.mrb[29].mxu0  ;;  %v5664_v33 = vmov 0  }
 0xb79   : > { %v2152_v28 = vpack.c.bf16 %v2149_v35, %v2146_v37  ;;  %v3964_v42 = vadd.f32 %v2055_v31, %v1950_v48  ;;  %v2057_v43 = vpop.f32.mrb[30].mxu0  ;;  %v5663_v31 = vmov 0.0  }
 0xb7a   : > { %v3965_v26 = vadd.f32 %v2057_v43, %v1955_v51  ;;  %v2059_v45 = vpop.f32.mrb[31].mxu0  ;;  %v2144_v44 = vmax.f32 %v3963_v41, 0.0 }
 0xb7b   : > { %v3966_v46 = vadd.f32 %v2059_v45, %v1955_v51  ;;  %v2145_v21 = vmax.f32 %v3964_v42, 0.0 }
 0xb7c   : > { %v2147_v23 = vmax.f32 %v3965_v26, 0.0  ;;  %v5132_v26 = vld [vmem:[%s5582_s17 + $0x19c] ss:$12 sps:$4 sm:$0xff]  }
 0xb7d   : > { %v2148_v50 = vmax.f32 %v3966_v46, 0.0 }
 0xb7e   : > { %v2150_v52 = vpack.c.bf16 %v2147_v23, %v2144_v44  ;;  %v5144_v23 = vld [vmem:[%s5582_s17 + $0x198] ss:$12 sps:$4 sm:$0xff]  }
 0xb7f   : > { %v2151_v47 = vpack.c.bf16 %v2148_v50, %v2145_v21  ;;  %v5139_v21 = vld [vmem:[%s5582_s17 + $0x1a0] ss:$12 sps:$4 sm:$0xff]   ;;  %5662 = vst [vmem:[#allocation12_spill] sm:$0xff] %v5144_v23 }
 0xb81   : > { %2548 = vmatprep.mubr.bf16.mxu1 %v2151_v47  ;;  %2634 = vmatprep.mubr.bf16.mxu0 %v2151_v47 }
 0xb82   : > { %2549 = vmatmul.mubr.bf16.vlgmr.msra.gmra.mrb[28].mxu1 %v2150_v52  ;;  %2635 = vmatmul.mubr.bf16.vlgmr.msra.gmra.mrb[32].mxu0 %v2150_v52 }
 0xb83   : > { %3876 = vmatpush3.bf16.msra.mxu0 %v5122_v0  ;;  %2560 = vmatpush1.bf16.msra.mxu1 %v5127_v30 }
 0xb84   : > { %3877 = vmatprep.subr.bf16.mxu0 %v5663_v31  ;;  %3879 = vmatprep.mubr.msk.bf16.mxu0 %vm4209_vm11, %v5663_v31 }
 0xb85   : > { %2561 = vmatprep.subr.bf16.mxu1 %v5132_v26  ;;  %2591 = vmatprep.mubr.bf16.mxu1 %v5664_v33 }
 0xb87   : > { %3878 = vmatpush3.bf16.msra.mxu0 %v5139_v21  ;;  %2562 = vmatpush1.bf16.msra.mxu1 %v5144_v23 }
 0xb88   : > { %2847 = vmatprep.subr.bf16.mxu1 %v5664_v33 }
 0xb8a   : > { %3880 = vmatmul.mubr.msk.bf16.vlgmr.msra.gmra.mrb[36].mxu0 %vm1972_vm12, %v2152_v28 }
 0xb8e   : > { %3691 = vmatmul.mubr.msk.bf16.vlgmr.msra.gmra.mrb[28].mxu1 %vm1972_vm12, %v2152_v28 }
 0xc55   : > { %v3789_v35 = vpop.f32.mrb[32].mxu0 }
 0xc56   : > { %v3790_v37 = vpop.f32.mrb[33].mxu0 }
 0xc57   : > { %v3791_v39 = vadd.f32 %v3790_v37, %v3789_v35  ;;  %v3792_v41 = vpop.f32.mrb[34].mxu0  ;;  %v4187_v37 = vld [vmem:[%s5570_s5 + $0x4] ss:$8 sps:$4 sm:$0xff]  }
 0xc58   : > { %v3793_v48 = vpop.f32.mrb[35].mxu0  ;;  %3696 = vmatprep.mubr.msk.bf16.mxu1 %vm743_vm0, %v4187_v37  ;;  %3695 = vmatprep.mubr.msk.bf16.mxu0 %vm743_vm0, %v4187_v37 }
 0xc59   : > { %v3794_v51 = vadd.f32 %v3793_v48, %v3792_v41  ;;  %v2689_v41 = vld [vmem:[%s5576_s11] sm:$0xff] }
 0xc5d   : > { %v2677_v53 = vpop.f32.mrb[36].mxu0 }
 0xc5e   : > { %v2678_v57 = vadd.f32 %v3791_v39, %v2677_v53  ;;  %v3881_v58 = vpop.f32.mrb[37].mxu0  ;;  %v2690_v39 = vld [vmem:[%s5576_s11 + $0x8] sm:$0xff] }
 0xc5f   : > { %v2680_v42 = vpop.f32.mrb[38].mxu0 }
 0xc60   : > { %v2681_v43 = vadd.f32 %v3794_v51, %v2680_v42  ;;  %v3882_v45 = vpop.f32.mrb[39].mxu0 }
 0xc61   : > { %v2593_v46 = vpop.f32.mrb[28].mxu1 }
 0xc62   : > { %v2686_v44 = vpack.c.bf16 %v2681_v43, %v2678_v57  ;;  %v2595_v50 = vpop.f32.mrb[29].mxu1 }
 0xc63   : > { %v2597_v52 = vpop.f32.mrb[30].mxu1 }
 0xc64   : > { %v2684_v47 = vpack.c.bf16 %v2597_v52, %v2593_v46  ;;  %2709 = vrot.lane.b32.xlu1 %v2686_v44, %s5641_s25  ;;  %2698 = vrot.lane.b32.xlu0 %v2686_v44, %s5636_s2  ;;  %v2599_v28 = vpop.f32.mrb[31].mxu1 }
 0xc65   : > { %v2685_v35 = vpack.c.bf16 %v2599_v28, %v2595_v50  ;;  %2848 = vmatpush1.bf16.msra.mxu1 %v2686_v44 }
 0xc66   : > { %2849 = vmatprep.subr.bf16.mxu1 %v5664_v33 }
 0xc67   : > { %2804 = vmatprep.subr.bf16.mxu0 %v2685_v35 }
 0xc68   : > { %2731 = vrot.lane.b32.xlu1 %v2686_v44, %s5646_s26  ;;  %2720 = vrot.lane.b32.xlu0 %v2686_v44, %s5645_s27 }
 0xc69   : > { %2805 = vmatpush1.bf16.msra.mxu0 %v2684_v47 }
 0xc6c   : > { %2705 = vrot.lane.b32.xlu0 %v2684_v47, %s5641_s25  ;;  %2694 = vrot.lane.b32.xlu1 %v2684_v47, %s5636_s2 }
 0xc70   : > { %2727 = vrot.lane.b32.xlu0 %v2684_v47, %s5646_s26  ;;  %2716 = vrot.lane.b32.xlu1 %v2684_v47, %s5645_s27 }
 0xc74   : > { %2707 = vrot.lane.b32.xlu0 %v2685_v35, %s5641_s25  ;;  %2696 = vrot.lane.b32.xlu1 %v2685_v35, %s5636_s2 }
 0xc78   : > { %2742 = vrot.lane.b32.xlu0 %v2686_v44, %s5637_s23  ;;  %2738 = vrot.lane.b32.xlu1 %v2684_v47, %s5637_s23 }
 0xc7c   : > { %2729 = vrot.lane.b32.xlu0 %v2685_v35, %s5646_s26  ;;  %2718 = vrot.lane.b32.xlu1 %v2685_v35, %s5645_s27 }
 0xc80   : > { %2749 = vrot.lane.b32.xlu0 %v2684_v47, %s5647_s1  ;;  %2753 = vrot.lane.b32.xlu1 %v2686_v44, %s5647_s1 }
 0xc84   : > { %2751 = vrot.lane.b32.xlu0 %v2685_v35, %s5647_s1  ;;  %2740 = vrot.lane.b32.xlu1 %v2685_v35, %s5637_s23 }
 0xc88   : > { %2764 = vrot.lane.b32.xlu0 %v2686_v44, %s5648_s29  ;;  %2760 = vrot.lane.b32.xlu1 %v2684_v47, %s5648_s29 }
 0xc8c   : > { %2773 = vrot.lane.b32.xlu0 %v2685_v35, %s5650_s8  ;;  %2762 = vrot.lane.b32.xlu1 %v2685_v35, %s5648_s29 }
 0xc90   : > { %2771 = vrot.lane.b32.xlu0 %v2684_v47, %s5650_s8  ;;  %2775 = vrot.lane.b32.xlu1 %v2686_v44, %s5650_s8 }
 0xc94   : > { %2789 = vperm.xlu0 %4008, %v2690_v39   ;;  %2784 = vperm.xlu1 %4009, %v2689_v41  }
 0xcd6   : > { %v2710_v48 = vpop.permute.xlu1 %2709  ;;  %v2699_v51 = vpop.permute.xlu0 %2698 }
 0xcd7   : > { %2850 = vmatpush1.bf16.msra.mxu1 %v2699_v51 }
 0xcd8   : > { %2851 = vmatprep.subr.bf16.mxu1 %v5664_v33 }
 0xcda   : > { %v2732_v53 = vpop.permute.xlu1 %2731  ;;  %v2721_v57 = vpop.permute.xlu0 %2720 }
 0xcdb   : > { %2852 = vmatpush1.bf16.msra.mxu1 %v2710_v48 }
 0xcdc   : > { %2853 = vmatprep.subr.bf16.mxu1 %v5664_v33 }
 0xcde   : > { %v2706_v58 = vpop.permute.xlu0 %2705  ;;  %v2695_v42 = vpop.permute.xlu1 %2694 }
 0xcdf   : > { %2854 = vmatpush1.bf16.msra.mxu1 %v2721_v57 }
 0xce0   : > { %2855 = vmatprep.subr.bf16.mxu1 %v5664_v33 }
 0xce2   : > { %v2728_v43 = vpop.permute.xlu0 %2727  ;;  %v2717_v45 = vpop.permute.xlu1 %2716 }
 0xce3   : > { %2856 = vmatpush1.bf16.msra.mxu1 %v2732_v53 }
 0xce4   : > { %2857 = vmatprep.subr.bf16.mxu1 %v5664_v33 }
 0xce6   : > { %v2708_v46 = vpop.permute.xlu0 %2707  ;;  %v2697_v44 = vpop.permute.xlu1 %2696 }
 0xce7   : > { %v2700_v50 = vsel %vm634_vm1, %v2695_v42, %v2697_v44  ;;  %v2701_v52 = vsel %vm634_vm1, %v2697_v44, %v2699_v51  ;;  %v2712_v47 = vsel %vm646_vm2, %v2708_v46, %v2710_v48  ;;  %v2711_v37 = vsel %vm646_vm2, %v2706_v58, %v2708_v46 }
 0xce8   : > { %2806 = vmatprep.subr.bf16.mxu0 %v2701_v52 }
 0xce9   : > { %2807 = vmatpush1.bf16.msra.mxu0 %v2700_v50 }
 0xcea   : > { %v2743_v28 = vpop.permute.xlu0 %2742  ;;  %v2739_v35 = vpop.permute.xlu1 %2738  ;;  %2808 = vmatprep.subr.bf16.mxu0 %v2712_v47 }
 0xceb   : > { %2858 = vmatpush1.bf16.msra.mxu1 %v2743_v28 }
 0xcec   : > { %2859 = vmatprep.subr.bf16.mxu1 %v5664_v33 }
 0xced   : > { %2809 = vmatpush1.bf16.msra.mxu0 %v2711_v37 }
 0xcee   : > { %v2730_v39 = vpop.permute.xlu0 %2729  ;;  %v2719_v41 = vpop.permute.xlu1 %2718 }
 0xcef   : > { %v2722_v23 = vsel %vm658_vm3, %v2717_v45, %v2719_v41  ;;  %v2723_v42 = vsel %vm658_vm3, %v2719_v41, %v2721_v57  ;;  %v2734_v51 = vsel %vm670_vm4, %v2730_v39, %v2732_v53  ;;  %v2733_v50 = vsel %vm670_vm4, %v2728_v43, %v2730_v39 }
 0xcf0   : > { %2810 = vmatprep.subr.bf16.mxu0 %v2723_v42  ;;  %v4189_v42 = vld [vmem:[%s5570_s5] ss:$8 sps:$4 sm:$0xff]  }
 0xcf1   : > { %2811 = vmatpush1.bf16.msra.mxu0 %v2722_v23 }
 0xcf2   : > { %v2750_v48 = vpop.permute.xlu0 %2749  ;;  %v2754_v44 = vpop.permute.xlu1 %2753  ;;  %2812 = vmatprep.subr.bf16.mxu0 %v2734_v51 }
 0xcf3   : > { %2860 = vmatpush1.bf16.msra.mxu1 %v2754_v44 }
 0xcf4   : > { %2861 = vmatprep.subr.bf16.mxu1 %v5664_v33 }
 0xcf5   : > { %2813 = vmatpush1.bf16.msra.mxu0 %v2733_v50 }
 0xcf6   : > { %v2752_v58 = vpop.permute.xlu0 %2751  ;;  %v2741_v46 = vpop.permute.xlu1 %2740 }
 0xcf7   : > { %v2744_v52 = vsel %vm682_vm5, %v2739_v35, %v2741_v46  ;;  %v2745_v45 = vsel %vm682_vm5, %v2741_v46, %v2743_v28  ;;  %v2756_v23 = vsel %vm694_vm6, %v2752_v58, %v2754_v44  ;;  %v2755_v47 = vsel %vm694_vm6, %v2750_v48, %v2752_v58 }
 0xcf8   : > { %2814 = vmatprep.subr.bf16.mxu0 %v2745_v45 }
 0xcf9   : > { %2815 = vmatpush1.bf16.msra.mxu0 %v2744_v52 }
 0xcfa   : > { %v2765_v53 = vpop.permute.xlu0 %2764  ;;  %v2761_v57 = vpop.permute.xlu1 %2760  ;;  %2816 = vmatprep.subr.bf16.mxu0 %v2756_v23 }
 0xcfb   : > { %2862 = vmatpush1.bf16.msra.mxu1 %v2765_v53 }
 0xcfc   : > { %2863 = vmatprep.subr.bf16.mxu1 %v5664_v33 }
 0xcfd   : > { %2817 = vmatpush1.bf16.msra.mxu0 %v2755_v47 }
 0xcfe   : > { %v2774_v43 = vpop.permute.xlu0 %2773  ;;  %v2763_v37 = vpop.permute.xlu1 %2762 }
 0xcff   : > { %v2766_v39 = vsel %vm706_vm7, %v2761_v57, %v2763_v37  ;;  %v2767_v35 = vsel %vm706_vm7, %v2763_v37, %v2765_v53 }
 0xd00   : > { %2818 = vmatprep.subr.bf16.mxu0 %v2767_v35 }
 0xd01   : > { %2819 = vmatpush1.bf16.msra.mxu0 %v2766_v39  ;;  %v4215_v39 = vmov 1966171168  }
 0xd02   : > { %v2772_v28 = vpop.permute.xlu0 %2771  ;;  %v2776_v41 = vpop.permute.xlu1 %2775  ;;  %v3179_v35 = vunpack.c.l.s4 %v4215_v39  ;;  %v3288_v39 = vld [vmem:[%s5583_s18 + $0x58] sm:$0xff] }
 0xd03   : > { %v2777_v51 = vsel %vm718_vm8, %v2772_v28, %v2774_v43  ;;  %2864 = vmatpush1.bf16.msra.mxu1 %v2776_v41  ;;  %v2778_v48 = vsel %vm718_vm8, %v2774_v43, %v2776_v41  ;;  %v3181_v28 = vlaneseq }
 0xd04   : > { %2820 = vmatprep.subr.bf16.mxu0 %v2778_v48  ;;  %3798 = vmatprep.subr.bf16.mxu1 %v4840_v56  ;;  %v5668_v56 = vld [vmem:[#allocation5_spill] sm:$0xff]  ;;  %v3180_v41 = vunpack.c.0.s8 %v3179_v35 }
 0xd05   : > { %2821 = vmatpush1.bf16.msra.mxu0 %v2777_v51  ;;  %v3699_v51 = vld.sshfl [vmem:[%s5571_s6] sm:$0x11 pattern:$0x75316420] }
 0xd06   : > { %2880 = vmatmul.mubr.bf16.vlgmr.msra.gmra.mrb[32].mxu1 %v4189_v42  ;;  %2900 = vmatprep.subr.bf16.mxu0 %v4819_v49  ;;  %v5665_v49 = vld [vmem:[#allocation2_spill] sm:$0xff]  ;;  %v3177_v48 = vcombine.high %v3699_v51, %v3699_v51 }
 0xd07   : > { %3799 = vmatpush3.bf16.msra.mxu1 %v4859_v62  ;;  %v5671_v62 = vld [vmem:[#allocation8_spill] sm:$0xff] }
 0xd08   : > { %2837 = vmatmul.mubr.bf16.vlgmr.msra.gmra.mrb[40].mxu0 %v4189_v42  ;;  %3800 = vmatprep.subr.bf16.mxu1 %v4865_v1  ;;  %v5672_v1 = vld [vmem:[#allocation9_spill] sm:$0xff]  ;;  %v3182_v42 = vshrl.u32 %v3181_v28, 7 }
 0xd09   : > { %2901 = vmatpush1.bf16.msra.mxu0 %v4829_v54  ;;  %v5666_v54 = vld [vmem:[#allocation3_spill] sm:$0xff] }
 0xd0a   : > { %2902 = vmatprep.subr.bf16.mxu0 %v4835_v55  ;;  %v5667_v55 = vld [vmem:[#allocation4_spill] sm:$0xff] }
 0xd0b   : > { %3801 = vmatpush3.bf16.msra.mxu1 %v4965_v14 }
 0xd0c   : > { %3802 = vmatprep.subr.bf16.mxu1 %v4976_v16 }
 0xd0d   : > { %2903 = vmatpush1.bf16.msra.mxu0 %v4848_v59  ;;  %v5669_v59 = vld [vmem:[#allocation6_spill] sm:$0xff] }
 0xd0e   : > { %2904 = vmatprep.subr.bf16.mxu0 %v4854_v60  ;;  %v5670_v60 = vld [vmem:[#allocation7_spill] sm:$0xff] }
 0xd0f   : > { %3803 = vmatpush3.bf16.msra.mxu1 %v4986_v18 }
 0xd10   : > { %3804 = vmatprep.subr.bf16.mxu1 %v4998_v20 }
 0xd11   : > { %2905 = vmatpush1.bf16.msra.mxu0 %v4872_v63  ;;  %v5673_v63 = vld [vmem:[#allocation10_spill] sm:$0xff] }
 0xd12   : > { %2906 = vmatprep.subr.bf16.mxu0 %v4878_v2  ;;  %v5674_v2 = vld [vmem:[#allocation11_spill] sm:$0xff] }
 0xd13   : > { %3805 = vmatpush3.bf16.msra.mxu1 %v5010_v22 }
 0xd14   : > { %3806 = vmatprep.subr.bf16.mxu1 %v5024_v25 }
 0xd15   : > { %2907 = vmatpush1.bf16.msra.mxu0 %v4886_v24  ;;  %v2785_v24 = vpop.permute.xlu1 %2784 }
 0xd16   : > { %2908 = vmatprep.subr.bf16.mxu0 %v4892_v3 }
 0xd17   : > { %3807 = vmatpush3.bf16.msra.mxu1 %v5034_v27 }
 0xd18   : > { %3808 = vmatprep.subr.bf16.mxu1 %v5048_v29 }
 0xd19   : > { %2909 = vmatpush1.bf16.msra.mxu0 %v4898_v61  ;;  %v2790_v61 = vpop.permute.xlu0 %2789 }
 0xd1a   : > { %2910 = vmatprep.subr.bf16.mxu0 %v4904_v4 }
 0xd1b   : > { %3809 = vmatpush3.bf16.msra.mxu1 %v5058_v32 }
 0xd1c   : > { %3810 = vmatprep.subr.bf16.mxu1 %v5072_v34  ;;  %v5675_v34 = vld [vmem:[#allocation12_spill] sm:$0xff] }
 0xd1d   : > { %2911 = vmatpush1.bf16.msra.mxu0 %v4910_v5 }
 0xd1e   : > { %2912 = vmatprep.subr.bf16.mxu0 %v4916_v6 }
 0xd1f   : > { %3811 = vmatpush3.bf16.msra.mxu1 %v5082_v36 }
 0xd20   : > { %3812 = vmatprep.subr.bf16.mxu1 %v5096_v38 }
 0xd21   : > { %2913 = vmatpush1.bf16.msra.mxu0 %v4922_v7 }
 0xd22   : > { %2914 = vmatprep.subr.bf16.mxu0 %v4928_v8 }
 0xd23   : > { %3813 = vmatpush3.bf16.msra.mxu1 %v5106_v40 }
 0xd24   : > { %3883 = vmatprep.subr.bf16.mxu1 %v5663_v31 }
 0xd25   : > { %2915 = vmatpush1.bf16.msra.mxu0 %v4934_v9 }
 0xd26   : > { %2916 = vmatprep.subr.bf16.mxu0 %v4940_v10 }
 0xd29   : > { %2917 = vmatpush1.bf16.msra.mxu0 %v4946_v11 }
 0xd2a   : > { %2918 = vmatprep.subr.bf16.mxu0 %v4952_v12 }
 0xd2d   : > { %2919 = vmatpush1.bf16.msra.mxu0 %v4958_v13 }
 0xd2e   : > { %2920 = vmatprep.subr.bf16.mxu0 %v4971_v15 }
 0xd31   : > { %2921 = vmatpush1.bf16.msra.mxu0 %v4981_v17 }
 0xd32   : > { %2922 = vmatprep.subr.bf16.mxu0 %v4993_v19 }
 0xd35   : > { %2923 = vmatpush1.bf16.msra.mxu0 %v5665_v49  ;;  %v3183_v49 = vsub.s32 %v3180_v41, %v3182_v42  ;;  %v3285_v41 = vld [vmem:[%s5583_s18 + $0x40] sm:$0xff]  ;;  %v3287_v42 = vld [vmem:[%s5583_s18 + $0x50] sm:$0xff] }
 0xd36   : > { %2924 = vmatprep.subr.bf16.mxu0 %v5666_v54 }
 0xd37   : > { %v3191_v54 = vrot.slane %v3177_v48, %v3183_v49  ;;  %v3292_v48 = vld [vmem:[%s5583_s18 + $0x78] sm:$0xff] }
 0xd39   : > { %2925 = vmatpush1.bf16.msra.mxu0 %v5667_v55  ;;  %v5302_v55 = vrot.slane %v3699_v51, %v3183_v49  ;;  %v3290_v51 = vld [vmem:[%s5583_s18 + $0x68] sm:$0xff]  ;;  %v3901_v49 = vpack.c.bf16 %v3287_v42, %v3285_v41  ;;  %v3332_v41 = vld [vmem:[%s5583_s18 + $0x1b8] sm:$0xff] }
 0xd3a   : > { %2926 = vmatprep.subr.bf16.mxu0 %v5668_v56  ;;  %v3072_v56 = vld [vmem:[%s5577_s12] sm:$0x3] }
 0xd3d   : > { %2927 = vmatpush1.bf16.msra.mxu0 %v5669_v59 }
 0xd3e   : > { %2928 = vmatprep.subr.bf16.mxu0 %v5670_v60 }
 0xd41   : > { %2929 = vmatpush1.bf16.msra.mxu0 %v5671_v62 }
 0xd42   : > { %2930 = vmatprep.subr.bf16.mxu0 %v5672_v1 }
 0xd45   : > { %2931 = vmatpush1.bf16.msra.mxu0 %v5673_v63 }
 0xd46   : > { %2943 = vmatprep.subr.bf16.mxu0 %v5674_v2 }
 0xdd9   : > { %v2881_v3 = vpop.f32.mrb[32].mxu1 }
 0xdda   : > { %v2882_v4 = vadd.f32 %v2881_v3, %v2785_v24  ;;  %v2883_v5 = vpop.f32.mrb[33].mxu1 }
 0xddb   : > { %v2838_v6 = vpop.f32.mrb[40].mxu0  ;;  %v2884_v7 = vpop.f32.mrb[34].mxu1 }
 0xddc   : > { %v2839_v8 = vadd.f32 %v2838_v6, %v2785_v24  ;;  %v2885_v9 = vadd.f32 %v2884_v7, %v2790_v61  ;;  %v2840_v10 = vpop.f32.mrb[41].mxu0  ;;  %v2886_v11 = vpop.f32.mrb[35].mxu1  ;;  %v2890_v14 = vmax.f32 %v2882_v4, 0.0 }
 0xddd   : > { %v2841_v12 = vadd.f32 %v2840_v10, %v2785_v24  ;;  %v2842_v13 = vpop.f32.mrb[42].mxu0 }
 0xdde   : > { %v2893_v15 = vmax.f32 %v2885_v9, 0.0  ;;  %v2843_v16 = vadd.f32 %v2842_v13, %v2790_v61  ;;  %v2844_v17 = vpop.f32.mrb[43].mxu0  ;;  %v2888_v19 = vmax.f32 %v2839_v8, 0.0 }
 0xddf   : > { %v2845_v18 = vadd.f32 %v2844_v17, %v2790_v61  ;;  %v2889_v25 = vmax.f32 %v2841_v12, 0.0 }
 0xde0   : > { %v2896_v20 = vpack.c.bf16 %v2893_v15, %v2890_v14  ;;  %v2891_v22 = vmax.f32 %v2843_v16, 0.0 }
 0xde1   : > { %v2892_v27 = vmax.f32 %v2845_v18, 0.0 }
 0xde2   : > { %v2894_v29 = vpack.c.bf16 %v2891_v22, %v2888_v19 }
 0xde3   : > { %v2895_v32 = vpack.c.bf16 %v2892_v27, %v2889_v25 }
 0xde5   : > { %2932 = vmatprep.mubr.bf16.mxu0 %v2895_v32  ;;  %3018 = vmatprep.mubr.bf16.mxu1 %v2895_v32 }
 0xde6   : > { %2933 = vmatmul.mubr.bf16.vlgmr.msra.gmra.mrb[44].mxu0 %v2894_v29  ;;  %3019 = vmatmul.mubr.bf16.vlgmr.msra.gmra.mrb[36].mxu1 %v2894_v29 }
 0xde7   : > { %3884 = vmatpush3.bf16.msra.mxu1 %v5122_v0  ;;  %2944 = vmatpush1.bf16.msra.mxu0 %v5127_v30 }
 0xde8   : > { %3885 = vmatprep.subr.bf16.mxu1 %v5663_v31  ;;  %3887 = vmatprep.mubr.msk.bf16.mxu1 %vm4209_vm11, %v5663_v31 }
 0xde9   : > { %2945 = vmatprep.subr.bf16.mxu0 %v5132_v26  ;;  %2975 = vmatprep.mubr.bf16.mxu0 %v5664_v33 }
 0xdeb   : > { %3886 = vmatpush3.bf16.msra.mxu1 %v5139_v21  ;;  %2946 = vmatpush1.bf16.msra.mxu0 %v5675_v34 }
 0xdec   : > { %3237 = vmatprep.subr.bf16.mxu0 %v5664_v33 }
 0xdee   : > { %3888 = vmatmul.mubr.msk.bf16.vlgmr.msra.gmra.mrb[40].mxu1 %vm1972_vm12, %v2896_v20 }
 0xdef   : > { %3700 = vmatprep.mubr.msk.bf16.mxu1 %vm743_vm0, %v3191_v54 }
 0xdf2   : > { %3697 = vmatmul.mubr.msk.bf16.vlgmr.msra.gmra.mrb[44].mxu0 %vm1972_vm12, %v2896_v20 }
 0xdf3   : > { %3701 = vmatprep.mubr.msk.bf16.mxu0 %vm743_vm0, %v3191_v54  ;;  %v3903_v54 = vpack.c.bf16 %v3292_v48, %v3290_v51  ;;  %v3329_v48 = vld [vmem:[%s5583_s18 + $0x1a0] sm:$0xff] }
 0xeb9   : > { %v3814_v36 = vpop.f32.mrb[36].mxu1 }
 0xeba   : > { %v3815_v38 = vpop.f32.mrb[37].mxu1 }
 0xebb   : > { %v3816_v40 = vadd.f32 %v3815_v38, %v3814_v36  ;;  %v3817_v0 = vpop.f32.mrb[38].mxu1 }
 0xebc   : > { %v3818_v30 = vpop.f32.mrb[39].mxu1 }
 0xebd   : > { %v3819_v44 = vadd.f32 %v3818_v30, %v3817_v0  ;;  %v3278_v30 = vld [vmem:[%s5583_s18 + $0x8] sm:$0xff] }
 0xec1   : > { %v3061_v50 = vpop.f32.mrb[40].mxu1 }
 0xec2   : > { %v3062_v26 = vadd.f32 %v3816_v40, %v3061_v50  ;;  %v3889_v58 = vpop.f32.mrb[41].mxu1 }
 0xec3   : > { %v3064_v46 = vpop.f32.mrb[42].mxu1  ;;  %v3277_v58 = vld [vmem:[%s5583_s18] sm:$0xff] }
 0xec4   : > { %v3065_v52 = vadd.f32 %v3819_v44, %v3064_v46  ;;  %v3890_v21 = vpop.f32.mrb[43].mxu1  ;;  %v3280_v44 = vld [vmem:[%s5583_s18 + $0x18] sm:$0xff]  ;;  %v3279_v46 = vld [vmem:[%s5583_s18 + $0x10] sm:$0xff] }
 0xec5   : > { %v2977_v45 = vpop.f32.mrb[44].mxu0 }
 0xec6   : > { %v3070_v23 = vpack.c.bf16 %v3065_v52, %v3062_v26  ;;  %v2979_v53 = vpop.f32.mrb[45].mxu0 }
 0xec7   : > { %v2981_v57 = vpop.f32.mrb[46].mxu0 }
 0xec8   : > { %v3068_v47 = vpack.c.bf16 %v2981_v57, %v2977_v45  ;;  %3091 = vrot.lane.b32.xlu1 %v3070_v23, %s5641_s25  ;;  %3080 = vrot.lane.b32.xlu0 %v3070_v23, %s5636_s2  ;;  %v2983_v43 = vpop.f32.mrb[47].mxu0  ;;  %v3282_v45 = vld [vmem:[%s5583_s18 + $0x28] sm:$0xff] }
 0xec9   : > { %v3069_v37 = vpack.c.bf16 %v2983_v43, %v2979_v53  ;;  %3238 = vmatpush1.bf16.msra.mxu0 %v3070_v23  ;;  %v3893_v53 = vpack.c.bf16 %v3279_v46, %v3277_v58  ;;  %v3283_v43 = vld [vmem:[%s5583_s18 + $0x30] sm:$0xff]  ;;  %v3322_v46 = vld [vmem:[%s5583_s18 + $0x168] sm:$0xff] }
 0xeca   : > { %3239 = vmatprep.subr.bf16.mxu0 %v5664_v33  ;;  %v3319_v58 = vld [vmem:[%s5583_s18 + $0x150] sm:$0xff] }
 0xecb   : > { %3196 = vmatprep.subr.bf16.mxu1 %v3069_v37 }
 0xecc   : > { %3113 = vrot.lane.b32.xlu1 %v3070_v23, %s5646_s26  ;;  %3102 = vrot.lane.b32.xlu0 %v3070_v23, %s5645_s27 }
 0xecd   : > { %3197 = vmatpush1.bf16.msra.mxu1 %v3068_v47 }
 0xed0   : > { %3087 = vrot.lane.b32.xlu0 %v3068_v47, %s5641_s25  ;;  %3076 = vrot.lane.b32.xlu1 %v3068_v47, %s5636_s2 }
 0xed4   : > { %3109 = vrot.lane.b32.xlu0 %v3068_v47, %s5646_s26  ;;  %3098 = vrot.lane.b32.xlu1 %v3068_v47, %s5645_s27 }
 0xed8   : > { %3089 = vrot.lane.b32.xlu0 %v3069_v37, %s5641_s25  ;;  %3078 = vrot.lane.b32.xlu1 %v3069_v37, %s5636_s2 }
 0xedc   : > { %3124 = vrot.lane.b32.xlu0 %v3070_v23, %s5637_s23  ;;  %3120 = vrot.lane.b32.xlu1 %v3068_v47, %s5637_s23 }
 0xee0   : > { %3111 = vrot.lane.b32.xlu0 %v3069_v37, %s5646_s26  ;;  %3100 = vrot.lane.b32.xlu1 %v3069_v37, %s5645_s27  ;;  %s3706_s27 = sshll.u32 %s5677_s30, 2 }
 0xee4   : > { %3131 = vrot.lane.b32.xlu0 %v3068_v47, %s5647_s1  ;;  %3135 = vrot.lane.b32.xlu1 %v3070_v23, %s5647_s1 }
 0xee8   : > { %3133 = vrot.lane.b32.xlu0 %v3069_v37, %s5647_s1  ;;  %3122 = vrot.lane.b32.xlu1 %v3069_v37, %s5637_s23 }
 0xeec   : > { %3146 = vrot.lane.b32.xlu0 %v3070_v23, %s5648_s29  ;;  %3142 = vrot.lane.b32.xlu1 %v3068_v47, %s5648_s29 }
 0xef0   : > { %3155 = vrot.lane.b32.xlu0 %v3069_v37, %s5650_s8  ;;  %3144 = vrot.lane.b32.xlu1 %v3069_v37, %s5648_s29  ;;  %v3286_v37 = vld [vmem:[%s5583_s18 + $0x48] sm:$0xff]  ;;  %s602_s29 = scalar_lea.vmem %s5584_s19, %s3706_s27 }
 0xef1   : > { %v3899_v28 = vpack.c.bf16 %v3288_v39, %v3286_v37  ;;  %v3325_v39 = vld [vmem:[%s5583_s18 + $0x180] sm:$0xff] }
 0xef4   : > { %3153 = vrot.lane.b32.xlu0 %v3068_v47, %s5650_s8  ;;  %3157 = vrot.lane.b32.xlu1 %v3070_v23, %s5650_s8  ;;  %v3284_v23 = vld [vmem:[%s5583_s18 + $0x38] sm:$0xff]  ;;  %v3281_v47 = vld [vmem:[%s5583_s18 + $0x20] sm:$0xff] }
 0xef5   : > { %v3895_v57 = vpack.c.bf16 %v3284_v23, %v3282_v45  ;;  %v3897_v35 = vpack.c.bf16 %v3283_v43, %v3281_v47  ;;  %v3321_v23 = vld [vmem:[%s5583_s18 + $0x160] sm:$0xff]  ;;  %v3328_v47 = vld [vmem:[%s5583_s18 + $0x198] sm:$0xff] }
 0xef8   : > { %3166 = vperm.xlu1 %4009, %v3072_v56   ;;  %v3291_v56 = vld [vmem:[%s5583_s18 + $0x70] sm:$0xff] }
 0xf3a   : > { %v3092_v59 = vpop.permute.xlu1 %3091  ;;  %v3081_v60 = vpop.permute.xlu0 %3080 }
 0xf3b   : > { %3240 = vmatpush1.bf16.msra.mxu0 %v3081_v60 }
 0xf3c   : > { %3241 = vmatprep.subr.bf16.mxu0 %v5664_v33 }
 0xf3e   : > { %v3114_v62 = vpop.permute.xlu1 %3113  ;;  %v3103_v1 = vpop.permute.xlu0 %3102 }
 0xf3f   : > { %3242 = vmatpush1.bf16.msra.mxu0 %v3092_v59 }
 0xf40   : > { %3243 = vmatprep.subr.bf16.mxu0 %v5664_v33 }
 0xf42   : > { %v3088_v63 = vpop.permute.xlu0 %3087  ;;  %v3077_v2 = vpop.permute.xlu1 %3076 }
 0xf43   : > { %3244 = vmatpush1.bf16.msra.mxu0 %v3103_v1 }
 0xf44   : > { %3245 = vmatprep.subr.bf16.mxu0 %v5664_v33 }
 0xf46   : > { %v3110_v24 = vpop.permute.xlu0 %3109  ;;  %v3099_v3 = vpop.permute.xlu1 %3098 }
 0xf47   : > { %3246 = vmatpush1.bf16.msra.mxu0 %v3114_v62 }
 0xf48   : > { %3247 = vmatprep.subr.bf16.mxu0 %v5664_v33 }
 0xf4a   : > { %v3090_v61 = vpop.permute.xlu0 %3089  ;;  %v3079_v4 = vpop.permute.xlu1 %3078 }
 0xf4b   : > { %v3082_v5 = vsel %vm634_vm1, %v3077_v2, %v3079_v4  ;;  %v3083_v6 = vsel %vm634_vm1, %v3079_v4, %v3081_v60  ;;  %v3094_v7 = vsel %vm646_vm2, %v3090_v61, %v3092_v59  ;;  %v3093_v10 = vsel %vm646_vm2, %v3088_v63, %v3090_v61  ;;  %v3294_v59 = vld [vmem:[%s5583_s18 + $0x88] sm:$0xff]  ;;  %v3296_v60 = vld [vmem:[%s5583_s18 + $0x98] sm:$0xff]  ;;  %v3293_v63 = vld [vmem:[%s5583_s18 + $0x80] sm:$0xff] }
 0xf4c   : > { %3198 = vmatprep.subr.bf16.mxu1 %v3083_v6  ;;  %v3295_v2 = vld [vmem:[%s5583_s18 + $0x90] sm:$0xff] }
 0xf4d   : > { %3199 = vmatpush1.bf16.msra.mxu1 %v3082_v5  ;;  %v3909_v61 = vpack.c.bf16 %v3295_v2, %v3293_v63  ;;  %v3297_v5 = vld [vmem:[%s5583_s18 + $0xa0] sm:$0xff]  ;;  %v3299_v6 = vld [vmem:[%s5583_s18 + $0xb0] sm:$0xff]  ;;  %v3338_v63 = vld [vmem:[%s5583_s18 + $0x1e8] sm:$0xff] }
 0xf4e   : > { %v3125_v8 = vpop.permute.xlu0 %3124  ;;  %v3121_v9 = vpop.permute.xlu1 %3120  ;;  %3200 = vmatprep.subr.bf16.mxu1 %v3094_v7  ;;  %v3302_v7 = vld [vmem:[%s5583_s18 + $0xc8] sm:$0xff]  ;;  %v3340_v2 = vld [vmem:[%s5583_s18 + $0x1f8] sm:$0xff] }
 0xf4f   : > { %3248 = vmatpush1.bf16.msra.mxu0 %v3125_v8 }
 0xf50   : > { %3249 = vmatprep.subr.bf16.mxu0 %v5664_v33 }
 0xf51   : > { %3201 = vmatpush1.bf16.msra.mxu1 %v3093_v10 }
 0xf52   : > { %v3112_v11 = vpop.permute.xlu0 %3111  ;;  %v3101_v12 = vpop.permute.xlu1 %3100 }
 0xf53   : > { %v3104_v13 = vsel %vm658_vm3, %v3099_v3, %v3101_v12  ;;  %v3105_v14 = vsel %vm658_vm3, %v3101_v12, %v3103_v1  ;;  %v3116_v15 = vsel %vm670_vm4, %v3112_v11, %v3114_v62  ;;  %v3115_v18 = vsel %vm670_vm4, %v3110_v24, %v3112_v11  ;;  %v3298_v24 = vld [vmem:[%s5583_s18 + $0xa8] sm:$0xff]  ;;  %v3300_v3 = vld [vmem:[%s5583_s18 + $0xb8] sm:$0xff]  ;;  %v3301_v11 = vld [vmem:[%s5583_s18 + $0xc0] sm:$0xff] }
 0xf54   : > { %3202 = vmatprep.subr.bf16.mxu1 %v3105_v14  ;;  %v3907_v1 = vpack.c.bf16 %v3296_v60, %v3294_v59  ;;  %v3911_v4 = vpack.c.bf16 %v3300_v3, %v3298_v24  ;;  %v3303_v12 = vld [vmem:[%s5583_s18 + $0xd0] sm:$0xff]  ;;  %v3308_v14 = vld [vmem:[%s5583_s18 + $0xf8] sm:$0xff]  ;;  %v3333_v60 = vld [vmem:[%s5583_s18 + $0x1c0] sm:$0xff]  ;;  %v3951_v24 = vpack.c.bf16 %v3340_v2, %v3338_v63 }
 0xf55   : > { %3203 = vmatpush1.bf16.msra.mxu1 %v3104_v13  ;;  %v3306_v13 = vld [vmem:[%s5583_s18 + $0xe8] sm:$0xff]  ;;  %v3337_v3 = vld [vmem:[%s5583_s18 + $0x1e0] sm:$0xff] }
 0xf56   : > { %v3132_v16 = vpop.permute.xlu0 %3131  ;;  %v3136_v17 = vpop.permute.xlu1 %3135  ;;  %3204 = vmatprep.subr.bf16.mxu1 %v3116_v15  ;;  %v3917_v15 = vpack.c.bf16 %v3303_v12, %v3301_v11  ;;  %v3343_v11 = vld [vmem:[%s5583_s18 + $0x210] sm:$0xff] }
 0xf57   : > { %3250 = vmatpush1.bf16.msra.mxu0 %v3136_v17 }
 0xf58   : > { %3251 = vmatprep.subr.bf16.mxu0 %v5664_v33 }
 0xf59   : > { %3205 = vmatpush1.bf16.msra.mxu1 %v3115_v18  ;;  %v3307_v18 = vld [vmem:[%s5583_s18 + $0xf0] sm:$0xff] }
 0xf5a   : > { %v3134_v19 = vpop.permute.xlu0 %3133  ;;  %v3123_v20 = vpop.permute.xlu1 %3122 }
 0xf5b   : > { %v3126_v22 = vsel %vm682_vm5, %v3121_v9, %v3123_v20  ;;  %v3127_v25 = vsel %vm682_vm5, %v3123_v20, %v3125_v8  ;;  %v3138_v27 = vsel %vm694_vm6, %v3134_v19, %v3136_v17  ;;  %v3137_v34 = vsel %vm694_vm6, %v3132_v16, %v3134_v19  ;;  %v3304_v8 = vld [vmem:[%s5583_s18 + $0xd8] sm:$0xff]  ;;  %v3305_v17 = vld [vmem:[%s5583_s18 + $0xe0] sm:$0xff]  ;;  %v3310_v19 = vld [vmem:[%s5583_s18 + $0x108] sm:$0xff] }
 0xf5c   : > { %3206 = vmatprep.subr.bf16.mxu1 %v3127_v25  ;;  %v3913_v9 = vpack.c.bf16 %v3299_v6, %v3297_v5  ;;  %v3915_v10 = vpack.c.bf16 %v3304_v8, %v3302_v7  ;;  %v3919_v16 = vpack.c.bf16 %v3308_v14, %v3306_v13  ;;  %v3312_v20 = vld [vmem:[%s5583_s18 + $0x118] sm:$0xff]  ;;  %v3342_v5 = vld [vmem:[%s5583_s18 + $0x208] sm:$0xff] }
 0xf5d   : > { %3207 = vmatpush1.bf16.msra.mxu1 %v3126_v22  ;;  %v3921_v22 = vpack.c.bf16 %v3307_v18, %v3305_v17  ;;  %v3923_v25 = vpack.c.bf16 %v3312_v20, %v3310_v19  ;;  %v3344_v6 = vld [vmem:[%s5583_s18 + $0x218] sm:$0xff]  ;;  %v3346_v14 = vld [vmem:[%s5583_s18 + $0x228] sm:$0xff] }
 0xf5e   : > { %v3147_v29 = vpop.permute.xlu0 %3146  ;;  %v3143_v32 = vpop.permute.xlu1 %3142  ;;  %3208 = vmatprep.subr.bf16.mxu1 %v3138_v27  ;;  %v3309_v27 = vld [vmem:[%s5583_s18 + $0x100] sm:$0xff]  ;;  %v3955_v7 = vpack.c.bf16 %v3344_v6, %v3342_v5 }
 0xf5f   : > { %3252 = vmatpush1.bf16.msra.mxu0 %v3147_v29 }
 0xf60   : > { %3253 = vmatprep.subr.bf16.mxu0 %v5664_v33  ;;  %v3891_v33 = vpack.c.bf16 %v3280_v44, %v3278_v30  ;;  %v3318_v30 = vld [vmem:[%s5583_s18 + $0x148] sm:$0xff]  ;;  %v3320_v44 = vld [vmem:[%s5583_s18 + $0x158] sm:$0xff] }
 0xf61   : > { %3209 = vmatpush1.bf16.msra.mxu1 %v3137_v34  ;;  %v3316_v34 = vld [vmem:[%s5583_s18 + $0x138] sm:$0xff] }
 0xf62   : > { %v3156_v36 = vpop.permute.xlu0 %3155  ;;  %v3145_v38 = vpop.permute.xlu1 %3144 }
 0xf63   : > { %v3148_v40 = vsel %vm706_vm7, %v3143_v32, %v3145_v38  ;;  %v3149_v0 = vsel %vm706_vm7, %v3145_v38, %v3147_v29  ;;  %v3311_v29 = vld [vmem:[%s5583_s18 + $0x110] sm:$0xff]  ;;  %v3314_v32 = vld [vmem:[%s5583_s18 + $0x128] sm:$0xff] }
 0xf64   : > { %3210 = vmatprep.subr.bf16.mxu1 %v3149_v0  ;;  %v3927_v38 = vpack.c.bf16 %v3316_v34, %v3314_v32  ;;  %v3315_v0 = vld [vmem:[%s5583_s18 + $0x130] sm:$0xff]  ;;  %v3345_v32 = vld [vmem:[%s5583_s18 + $0x220] sm:$0xff] }
 0xf65   : > { %3211 = vmatpush1.bf16.msra.mxu1 %v3148_v40  ;;  %v3313_v40 = vld [vmem:[%s5583_s18 + $0x120] sm:$0xff]  ;;  %v3347_v34 = vld [vmem:[%s5583_s18 + $0x230] sm:$0xff] }
 0xf66   : > { %v3154_v50 = vpop.permute.xlu0 %3153  ;;  %v3158_v26 = vpop.permute.xlu1 %3157 }
 0xf67   : > { %v3159_v52 = vsel %vm718_vm8, %v3154_v50, %v3156_v36  ;;  %3254 = vmatpush1.bf16.msra.mxu0 %v3158_v26  ;;  %v3160_v21 = vsel %vm718_vm8, %v3156_v36, %v3158_v26  ;;  %v3925_v36 = vpack.c.bf16 %v3311_v29, %v3309_v27  ;;  %v3929_v50 = vpack.c.bf16 %v3315_v0, %v3313_v40 }
 0xf68   : > { %3212 = vmatprep.subr.bf16.mxu1 %v3160_v21  ;;  %v3931_v26 = vpack.c.bf16 %v3320_v44, %v3318_v30 }
 0xf69   : > { %3213 = vmatpush1.bf16.msra.mxu1 %v3159_v52  ;;  %v3324_v52 = vld [vmem:[%s5583_s18 + $0x178] sm:$0xff] }
 0xf6a   : > { %3270 = vmatmul.mubr.bf16.vlgmr.msra.gmra.mrb[48].mxu0 %v5302_v55  ;;  %3892 = vmatprep.subr.bf16.mxu1 %v3891_v33  ;;  %v3317_v33 = vld [vmem:[%s5583_s18 + $0x140] sm:$0xff]  ;;  %v3935_v45 = vpack.c.bf16 %v3324_v52, %v3322_v46 }
 0xf6b   : > { %v3933_v21 = vpack.c.bf16 %v3319_v58, %v3317_v33 }
 0xf6c   : > { %3229 = vmatmul.mubr.bf16.vlgmr.msra.gmra.mrb[44].mxu1 %v5302_v55  ;;  %v3289_v55 = vld [vmem:[%s5583_s18 + $0x60] sm:$0xff] }
 0xf6d   : > { %3894 = vmatpush1.bf16.msra.mxu1 %v3893_v53  ;;  %v3905_v62 = vpack.c.bf16 %v3291_v56, %v3289_v55  ;;  %v3323_v53 = vld [vmem:[%s5583_s18 + $0x170] sm:$0xff]  ;;  %v3336_v55 = vld [vmem:[%s5583_s18 + $0x1d8] sm:$0xff] }
 0xf6e   : > { %3896 = vmatprep.subr.bf16.mxu1 %v3895_v57  ;;  %v3326_v57 = vld [vmem:[%s5583_s18 + $0x188] sm:$0xff]  ;;  %v3937_v43 = vpack.c.bf16 %v3323_v53, %v3321_v23 }
 0xf6f   : > { %v3939_v37 = vpack.c.bf16 %v3328_v47, %v3326_v57 }
 0xf71   : > { %3898 = vmatpush1.bf16.msra.mxu1 %v3897_v35  ;;  %v3327_v35 = vld [vmem:[%s5583_s18 + $0x190] sm:$0xff] }
 0xf72   : > { %3900 = vmatprep.subr.bf16.mxu1 %v3899_v28  ;;  %v3330_v28 = vld [vmem:[%s5583_s18 + $0x1a8] sm:$0xff]  ;;  %v3941_v42 = vpack.c.bf16 %v3327_v35, %v3325_v39 }
 0xf73   : > { %v3943_v51 = vpack.c.bf16 %v3332_v41, %v3330_v28 }
 0xf75   : > { %3902 = vmatpush1.bf16.msra.mxu1 %v3901_v49  ;;  %v3331_v49 = vld [vmem:[%s5583_s18 + $0x1b0] sm:$0xff] }
 0xf76   : > { %3904 = vmatprep.subr.bf16.mxu1 %v3903_v54  ;;  %v3334_v54 = vld [vmem:[%s5583_s18 + $0x1c8] sm:$0xff]  ;;  %v3945_v56 = vpack.c.bf16 %v3331_v49, %v3329_v48 }
 0xf77   : > { %v3947_v59 = vpack.c.bf16 %v3336_v55, %v3334_v54 }
 0xf79   : > { %3906 = vmatpush1.bf16.msra.mxu1 %v3905_v62  ;;  %v3335_v62 = vld [vmem:[%s5583_s18 + $0x1d0] sm:$0xff] }
 0xf7a   : > { %3908 = vmatprep.subr.bf16.mxu1 %v3907_v1  ;;  %v3949_v1 = vpack.c.bf16 %v3335_v62, %v3333_v60 }
 0xf7d   : > { %3910 = vmatpush1.bf16.msra.mxu1 %v3909_v61  ;;  %v3339_v61 = vld [vmem:[%s5583_s18 + $0x1f0] sm:$0xff] }
 0xf7e   : > { %3912 = vmatprep.subr.bf16.mxu1 %v3911_v4  ;;  %v3953_v4 = vpack.c.bf16 %v3339_v61, %v3337_v3 }
 0xf81   : > { %3914 = vmatpush1.bf16.msra.mxu1 %v3913_v9  ;;  %v3167_v9 = vpop.permute.xlu1 %3166 }
 0xf82   : > { %3916 = vmatprep.subr.bf16.mxu1 %v3915_v10  ;;  %v3341_v10 = vld [vmem:[%s5583_s18 + $0x200] sm:$0xff] }
 0xf85   : > { %3918 = vmatpush1.bf16.msra.mxu1 %v3917_v15  ;;  %v3348_v15 = vld [vmem:[%s5583_s18 + $0x238] sm:$0xff] }
 0xf86   : > { %3920 = vmatprep.subr.bf16.mxu1 %v3919_v16  ;;  %v3959_v29 = vpack.c.bf16 %v3348_v15, %v3346_v14 }
 0xf89   : > { %3922 = vmatpush1.bf16.msra.mxu1 %v3921_v22  ;;  %v3957_v22 = vpack.c.bf16 %v3343_v11, %v3341_v10 }
 0xf8a   : > { %3924 = vmatprep.subr.bf16.mxu1 %v3923_v25 }
 0xf8d   : > { %3926 = vmatpush1.bf16.msra.mxu1 %v3925_v36  ;;  %v3961_v36 = vpack.c.bf16 %v3347_v34, %v3345_v32 }
 0xf8e   : > { %3928 = vmatprep.subr.bf16.mxu1 %v3927_v38 }
 0xf91   : > { %3930 = vmatpush1.bf16.msra.mxu1 %v3929_v50 }
 0xf92   : > { %3932 = vmatprep.subr.bf16.mxu1 %v3931_v26 }
 0xf95   : > { %3934 = vmatpush1.bf16.msra.mxu1 %v3933_v21 }
 0xf96   : > { %3936 = vmatprep.subr.bf16.mxu1 %v3935_v45 }
 0xf99   : > { %3938 = vmatpush1.bf16.msra.mxu1 %v3937_v43 }
 0xf9a   : > { %3940 = vmatprep.subr.bf16.mxu1 %v3939_v37 }
 0xf9d   : > { %3942 = vmatpush1.bf16.msra.mxu1 %v3941_v42 }
 0xf9e   : > { %3944 = vmatprep.subr.bf16.mxu1 %v3943_v51 }
 0xfa1   : > { %3946 = vmatpush1.bf16.msra.mxu1 %v3945_v56 }
 0xfa2   : > { %3948 = vmatprep.subr.bf16.mxu1 %v3947_v59 }
 0xfa5   : > { %3950 = vmatpush1.bf16.msra.mxu1 %v3949_v1 }
 0xfa6   : > { %3952 = vmatprep.subr.bf16.mxu1 %v3951_v24 }
 0xfa9   : > { %3954 = vmatpush1.bf16.msra.mxu1 %v3953_v4 }
 0xfaa   : > { %3956 = vmatprep.subr.bf16.mxu1 %v3955_v7 }
0x103d   : > { %v3271_v8 = vpop.f32.mrb[48].mxu0 }
0x103e   : > { %v3273_v12 = vpop.f32.mrb[49].mxu0  ;;  %v3272_v38 = vadd.f32 %v3271_v8, %v3167_v9 }
0x103f   : > { %v3230_v13 = vpop.f32.mrb[44].mxu1  ;;  %v3274_v16 = vpop.f32.mrb[50].mxu0 }
0x1040   : > { %v3232_v17 = vpop.f32.mrb[45].mxu1  ;;  %v3275_v18 = vpop.f32.mrb[51].mxu0  ;;  %v3231_v25 = vadd.f32 %v3230_v13, %v3167_v9 }
0x1041   : > { %v3233_v19 = vadd.f32 %v3232_v17, %v3167_v9  ;;  %v3234_v20 = vpop.f32.mrb[46].mxu1 }
0x1042   : > { %v3235_v27 = vpop.f32.mrb[47].mxu1 }
0x1043   : > { %3416 = vmatprep.mubr.f32.mxu1 %v3233_v19 }
0x1044   : > { %3417 = vmatmul.mubr.f32.vlgmr.msra.gmra.mrb[48].mxu1 %v3231_v25 }
0x1045   : > { %3958 = vmatpush1.bf16.msra.mxu1 %v3957_v22  ;;  %3487 = vmatprep.mubr.f32.mxu1 %v5663_v31 }
0x1046   : > { %3960 = vmatprep.subr.bf16.mxu1 %v3959_v29 }
0x1049   : > { %3962 = vmatpush1.bf16.msra.mxu1 %v3961_v36 }
0x104c   : > { %3702 = vmatmul.mubr.msk.f32.vlgmr.msra.gmra.mrb[48].mxu1 %vm1972_vm12, %v3272_v38 }
0x111f   : > { %v3489_v40 = vpop.f32.mrb[48].mxu1 }
0x1120   : > { %v3491_v0 = vpop.f32.mrb[49].mxu1 }
0x1121   : > { %v3496_v30 = vcombine.low %v3489_v40, %v3491_v0 }
0x1123   : > { %3703 = vst.sshfl [vmem:[%s602_s29] sm:$0x33 pattern:$0x76325410] %v3496_v30 }
0x1124 PF: > { %s29_s0 = sadd.s32 1, %s4196_s0  }
0x1125   : > { %p26_p4 = scmp.ge.s32.totalorder %s29_s0, 4  }
0x1127   :  { %28 = sbr.rel (!%p26_p4) target bundleno = 11 (0xb), region = 126 }

</bundles_post_ra>
